<compile_context>
chip_gen: v7x
topology: tpu7x:2x2x1
jax: 0.10.0
libtpu: 0.0.40
codegen_flags: <defaults>
</compile_context>

<pallas_src>
import jax
import jax.numpy as jnp
from jax.experimental import pallas as pl
from jax.experimental.pallas import tpu as pltpu


_VMEM_BUDGET = 16 * 1024 * 1024   # per-layer tile-set target (fits every gen)
_VMEM_LIMIT = 32 * 1024 * 1024    # explicit scoped-VMEM limit for the kernel
_MAX_TM = 16 * 1024               # diminishing returns past ~16K lanes


# ---------------------------------------------------------------------------
# Pallas kernel: fused (W' @ patches^T) + shift (bias / folded BN) + leaky_relu
# ---------------------------------------------------------------------------
def _fused_kernel(w_ref, x_ref, shift_ref, o_ref):
    # w_ref: (Cout, K) bf16 with BN/bias scale pre-folded, x_ref: (K, tm) bf16,
    # shift_ref: (Cout, 1) f32.  Epilogue stays f32 (v5e-friendly), cast at store.
    y = jnp.dot(w_ref[...], x_ref[...], preferred_element_type=jnp.float32)
    y = y + shift_ref[...]                       # sublane-broadcast (Cout, 1)
    o_ref[...] = jnp.where(y > 0, y, 0.2 * y).astype(o_ref.dtype)


def _max_tm(K, cout, out_itemsize):
    # Accurate VMEM model: double-buffered streamed patches/output (real dtypes),
    # double-buffered resident weights + shift, one f32 (Cout, tm) matmul /
    # epilogue temp.  ~16 MiB headroom is left under _VMEM_LIMIT for Mosaic
    # internal scratch, so this never tips into spills even on v7x / v5e.
    fixed = 2 * cout * K * 2 + 2 * cout * 4            # bf16 weights + f32 shift
    per_col = 2 * K * 2 + 2 * cout * out_itemsize + cout * 4
    avail = max(_VMEM_BUDGET - fixed, 128 * per_col)
    return int(min(_MAX_TM, avail // per_col))


def _choose_tm(M, max_tm):
    """Pick the M tile: an exact divisor of M that is a multiple of 128 (lane-
    dense stores, no padding pass), as large as the VMEM budget allows, and
    giving >=2 grid steps when possible so both v7x TensorCores get work."""
    if M < 128:
        return 128, True                               # tiny layer: one padded tile
    cands = [M // g for g in range(1, M // 128 + 1)
             if M % g == 0 and (M // g) % 128 == 0 and M // g <= max_tm]
    if cands:                                          # decreasing tile size
        multi = [t for t in cands if t < M]            # tiles giving >= 2 steps
        return (multi[0] if multi else cands[0]), False
    # ragged M: fall back to one padded lane-dense tile size
    tm = max(128, (min(max_tm, pl.cdiv(M, 128) * 128) // 128) * 128)
    return tm, True


def fused_matmul_T(wT, patchesT, shift, out_dtype):
    """wT: (Cout, K) bf16 (scale pre-folded), patchesT: (K, M) bf16,
    shift: (Cout, 1) f32.  Returns y^T of shape (Cout, M) in `out_dtype`."""
    Cout, K = wT.shape
    _, M = patchesT.shape
    tm, _ = _choose_tm(M, _max_tm(K, Cout, jnp.dtype(out_dtype).itemsize))
    M_pad = pl.cdiv(M, tm) * tm
    if M_pad != M:                                     # ragged / tiny-M fallback only
        patchesT = jnp.pad(patchesT, ((0, 0), (0, M_pad - M)))

    out = pl.pallas_call(
        _fused_kernel,
        out_shape=jax.ShapeDtypeStruct((Cout, M_pad), out_dtype),
        grid_spec=pltpu.PrefetchScalarGridSpec(
            num_scalar_prefetch=0,
            grid=(M_pad // tm,),
            in_specs=[
                pl.BlockSpec((Cout, K), lambda i: (0, 0)),   # weights: resident
                pl.BlockSpec((K, tm), lambda i: (0, i)),     # patches: streamed
                pl.BlockSpec((Cout, 1), lambda i: (0, 0)),   # shift: resident
            ],
            out_specs=pl.BlockSpec((Cout, tm), lambda i: (0, i)),
        ),
        compiler_params=pltpu.CompilerParams(
            dimension_semantics=("parallel",),               # independent M tiles
            vmem_limit_bytes=_VMEM_LIMIT),
    )(wT, patchesT, shift)
    return out[:, :M] if M_pad != M else out


# ---------------------------------------------------------------------------
# JAX glue: im2col producing the TRANSPOSED patch matrix (K, M) from CNHW input
# ---------------------------------------------------------------------------
def im2col_T(x_cnhw, k, stride, pad):
    """x_cnhw: (C, N, H, W) -> patches^T (C*k*k, N*HO*WO), K ordered (C, kh, kw)."""
    C, N, H, W = x_cnhw.shape
    xp = jnp.pad(x_cnhw, ((0, 0), (0, 0), (pad, pad), (pad, pad)))
    HO = (H + 2 * pad - k) // stride + 1
    WO = (W + 2 * pad - k) // stride + 1
    slabs = []
    for di in range(k):
        for dj in range(k):
            slabs.append(
                xp[:, :, di:di + stride * HO:stride, dj:dj + stride * WO:stride])
    p = jnp.stack(slabs, axis=1)                       # (C, k*k, N, HO, WO)
    return p.reshape(C * k * k, N * HO * WO), HO, WO


def conv_layer(x_cnhw, w, scale, shift, stride, pad, out_dtype=jnp.bfloat16):
    """x_cnhw: (Cin, N, H, W) bf16;  w: (Cout, Cin, k, k) PyTorch layout (f32).

    Returns the activation in CNHW layout: (Cout, N, HO, WO) in `out_dtype`.
    """
    Cout, Cin, k, _ = w.shape
    _, N, _, _ = x_cnhw.shape
    patchesT, HO, WO = im2col_T(x_cnhw, k, stride, pad)      # stays bf16
    # Fold BN / bias scale into the weights in f32, cast once to bf16:
    #   scale*(W@x) + shift == (scale*W)@x + shift  -> one fewer VPU mul/elem.
    wT = (w.reshape(Cout, Cin * k * k)
          * scale.reshape(-1, 1).astype(jnp.float32)).astype(jnp.bfloat16)
    yT = fused_matmul_T(wT, patchesT.astype(jnp.bfloat16),
                        shift.reshape(-1, 1).astype(jnp.float32), out_dtype)
    return yT.reshape(Cout, N, HO, WO)                 # stays CNHW: no transpose


def conv6_sigmoid(x5_cnhw, w, b):
    # conv6 is a degenerate 4x4/s1/p0 conv on a 4x4 map: an (M=batch, N=1) matmul.
    # A fully-masked Pallas launch costs more than the math -> plain JAX.
    Cout, Cin, k, _ = w.shape
    patchesT, _, _ = im2col_T(x5_cnhw.astype(jnp.float32), k, 1, 0)
    y = w.reshape(Cout, -1).astype(jnp.float32) @ patchesT + b.reshape(-1, 1)
    return jax.nn.sigmoid(y)                           # (1, N*HO*WO)


# ---------------------------------------------------------------------------
# Parameters (deterministic synthetic init, shapes match the nn.Module)
# ---------------------------------------------------------------------------
def init_params(key, d):
    conv_specs = [("conv1", 3, d), ("conv2", d, 2 * d), ("conv3", 2 * d, 4 * d),
                  ("conv4", 4 * d, 8 * d), ("conv5", 8 * d, 16 * d),
                  ("conv6", 16 * d, 1)]
    params = {}
    for name, cin, cout in conv_specs:
        key, kw, kb = jax.random.split(key, 3)
        params[name + "_w"] = 0.02 * jax.random.normal(kw, (cout, cin, 4, 4), jnp.float32)
        params[name + "_b"] = 0.02 * jax.random.normal(kb, (cout,), jnp.float32)
    for name, c in [("bn2", 2 * d), ("bn3", 4 * d), ("bn4", 8 * d), ("bn5", 16 * d)]:
        key, kg, kb = jax.random.split(key, 3)
        params[name + "_gamma"] = 1.0 + 0.02 * jax.random.normal(kg, (c,), jnp.float32)
        params[name + "_beta"] = 0.02 * jax.random.normal(kb, (c,), jnp.float32)
        params[name + "_mean"] = jnp.zeros((c,), jnp.float32)
        params[name + "_var"] = jnp.ones((c,), jnp.float32)
    return params


def _bn_fold(params, bn_name, conv_bias, eps=1e-5):
    s = params[bn_name + "_gamma"] / jnp.sqrt(params[bn_name + "_var"] + eps)
    sh = (conv_bias - params[bn_name + "_mean"]) * s + params[bn_name + "_beta"]
    return s, sh


# ---------------------------------------------------------------------------
# Discriminator forward (mirrors the PyTorch module)
# ---------------------------------------------------------------------------
def discriminator_forward(params, x, matching=False):
    ones = lambda c: jnp.ones((c,), jnp.float32)
    # NCHW -> CNHW once at entry, and drop to bf16 so all im2col glue and MXU
    # operands are half-width; f32 only in the MXU accumulator / epilogue.
    xc = jnp.transpose(x, (1, 0, 2, 3)).astype(jnp.bfloat16)

    # conv1 + leaky_relu (no BN)
    xc = conv_layer(xc, params["conv1_w"], ones(params["conv1_w"].shape[0]),
                    params["conv1_b"], 2, 1)
    # conv2..conv4 + BN + leaky_relu (BN folded into weight scale / shift)
    for i in (2, 3, 4):
        s, sh = _bn_fold(params, f"bn{i}", params[f"conv{i}_b"])
        xc = conv_layer(xc, params[f"conv{i}_w"], s, sh, 2, 1)
    # conv5 + BN + leaky_relu  (x_intermediate, kept f32: user-visible return)
    s, sh = _bn_fold(params, "bn5", params["conv5_b"])
    x5 = conv_layer(xc, params["conv5_w"], s, sh, 2, 1, out_dtype=jnp.float32)
    # conv6 + sigmoid, then .view(-1, 1).squeeze(1)
    output = conv6_sigmoid(x5, params["conv6_w"], params["conv6_b"]).reshape(-1)
    if matching:
        x_intermediate = jnp.transpose(x5, (1, 0, 2, 3))   # back to NCHW for return
        return output, x_intermediate
    return output


# ---------------------------------------------------------------------------
# Pure-JAX f32 reference (same math, no Pallas, no bf16) for a sanity check
# ---------------------------------------------------------------------------
def _ref_conv(x_cnhw, w, scale, shift, stride, pad):
    Cout, Cin, k, _ = w.shape
    _, N, _, _ = x_cnhw.shape
    patchesT, HO, WO = im2col_T(x_cnhw, k, stride, pad)
    y = w.reshape(Cout, -1) @ patchesT
    y = y * scale.reshape(-1, 1) + shift.reshape(-1, 1)
    y = jnp.where(y > 0, y, 0.2 * y)
    return y.reshape(Cout, N, HO, WO)


def discriminator_ref(params, x):
    ones = lambda c: jnp.ones((c,), jnp.float32)
    xc = jnp.transpose(x, (1, 0, 2, 3))
    xc = _ref_conv(xc, params["conv1_w"], ones(params["conv1_w"].shape[0]),
                   params["conv1_b"], 2, 1)
    for i in (2, 3, 4):
        s, sh = _bn_fold(params, f"bn{i}", params[f"conv{i}_b"])
        xc = _ref_conv(xc, params[f"conv{i}_w"], s, sh, 2, 1)
    s, sh = _bn_fold(params, "bn5", params["conv5_b"])
    x5 = _ref_conv(xc, params["conv5_w"], s, sh, 2, 1)
    return conv6_sigmoid(x5, params["conv6_w"], params["conv6_b"]).reshape(-1)


if __name__ == "__main__":
    d = 8                       # small feature multiplier (module default is 16)
    batch = 2
    key = jax.random.PRNGKey(0)
    kparams, kx = jax.random.split(key)
    params = init_params(kparams, d)
    # spatial must be 128 so conv6 (4x4, stride 1, pad 0) reduces 4x4 -> 1x1
    x = jax.random.normal(kx, (batch, 3, 128, 128), jnp.float32)

    fwd = jax.jit(discriminator_forward, static_argnames=("matching",))
    out, x_inter = jax.block_until_ready(fwd(params, x, matching=True))
    assert out.shape == (batch,), out.shape
    assert x_inter.shape == (batch, 16 * d, 4, 4), x_inter.shape

    ref = jax.block_until_ready(discriminator_ref(params, x))
    assert jnp.allclose(out, ref, rtol=1e-2, atol=1e-2), (out, ref)

    print("KERNEL_OK")
</pallas_src>

<mosaic_0001>
module attributes {stable_mosaic.version = 11 : i64} {
  func.func @_fused_kernel(%arg0: i32, %arg1: memref<8x48xbf16, #tpu.memory_space<vmem>>, %arg2: memref<48x4096xbf16, #tpu.memory_space<vmem>>, %arg3: memref<8x1xf32, #tpu.memory_space<vmem>>, %arg4: memref<8x4096xbf16, #tpu.memory_space<vmem>>) attributes {dimension_semantics = [#tpu.dimension_semantics<parallel>], iteration_bounds = array<i64: 2>, scalar_prefetch = 0 : i64, scratch_operands = 0 : i64, tpu.core_type = #tpu.core_type<tc>, window_params = [{pipeline_mode = #tpu.pipeline_mode<synchronous>, transform_indices = @transform_0, window_bounds = array<i64: 8, 48>}, {transform_indices = @transform_1, window_bounds = array<i64: 48, 4096>}, {pipeline_mode = #tpu.pipeline_mode<synchronous>, transform_indices = @transform_2, window_bounds = array<i64: 8, 1>}, {transform_indices = @transform_3, window_bounds = array<i64: 8, 4096>}]} {
    %c0 = arith.constant 0 : index
    %c0_0 = arith.constant 0 : index
    %0 = vector.load %arg1[%c0, %c0_0] : memref<8x48xbf16, #tpu.memory_space<vmem>>, vector<8x48xbf16>
    %c0_1 = arith.constant 0 : index
    %c0_2 = arith.constant 0 : index
    %1 = vector.load %arg2[%c0_1, %c0_2] : memref<48x4096xbf16, #tpu.memory_space<vmem>>, vector<48x4096xbf16>
    %cst = arith.constant dense<0.000000e+00> : vector<8x4096xf32>
    %2 = tpu.matmul %0, %1, %cst {dimension_numbers = #tpu.dot_dimension_numbers<[1], [0], [0], [1], [0, 0, 1, 1], [], []>} : vector<8x48xbf16>, vector<48x4096xbf16>, vector<8x4096xf32> -> vector<8x4096xf32>
    %c0_3 = arith.constant 0 : index
    %c0_4 = arith.constant 0 : index
    %3 = vector.load %arg3[%c0_3, %c0_4] : memref<8x1xf32, #tpu.memory_space<vmem>>, vector<8x1xf32>
    %4 = vector.broadcast %3 : vector<8x1xf32> to vector<8x4096xf32>
    %5 = arith.addf %2, %4 : vector<8x4096xf32>
    %cst_5 = arith.constant 0.000000e+00 : f32
    %6 = vector.broadcast %cst_5 : f32 to vector<8x4096xf32>
    %7 = arith.cmpf ogt, %5, %6 : vector<8x4096xf32>
    %cst_6 = arith.constant 2.000000e-01 : f32
    %8 = vector.broadcast %cst_6 : f32 to vector<8x4096xf32>
    %9 = arith.mulf %8, %5 : vector<8x4096xf32>
    %10 = arith.select %7, %5, %9 : vector<8x4096xi1>, vector<8x4096xf32>
    %11 = arith.truncf %10 : vector<8x4096xf32> to vector<8x4096xbf16>
    %c0_7 = arith.constant 0 : index
    %c0_8 = arith.constant 0 : index
    %12 = vector.load %arg4[%c0_7, %c0_8] : memref<8x4096xbf16, #tpu.memory_space<vmem>>, vector<8x4096xbf16>
    tpu.vector_store %arg4[%c0_7, %c0_8], %11 {strides = array<i32>} : memref<8x4096xbf16, #tpu.memory_space<vmem>>, vector<8x4096xbf16>,
    return
  }
  func.func @transform_0(%arg0: i32) -> (i32, i32) {
    %c0_i32 = arith.constant 0 : i32
    %c0_i32_0 = arith.constant 0 : i32
    %c0_i32_1 = arith.constant 0 : i32
    return %c0_i32, %c0_i32_0 : i32, i32
  }
  func.func @transform_1(%arg0: i32) -> (i32, i32) {
    %c0_i32 = arith.constant 0 : i32
    %c0_i32_0 = arith.constant 0 : i32
    return %c0_i32, %arg0 : i32, i32
  }
  func.func @transform_2(%arg0: i32) -> (i32, i32) {
    %c0_i32 = arith.constant 0 : i32
    %c0_i32_0 = arith.constant 0 : i32
    %c0_i32_1 = arith.constant 0 : i32
    return %c0_i32, %c0_i32_0 : i32, i32
  }
  func.func @transform_3(%arg0: i32) -> (i32, i32) {
    %c0_i32 = arith.constant 0 : i32
    %c0_i32_0 = arith.constant 0 : i32
    return %c0_i32, %arg0 : i32, i32
  }
}

module attributes {stable_mosaic.version = 11 : i64} {
  func.func @_fused_kernel(%arg0: i32, %arg1: memref<16x128xbf16, #tpu.memory_space<vmem>>, %arg2: memref<128x1024xbf16, #tpu.memory_space<vmem>>, %arg3: memref<16x1xf32, #tpu.memory_space<vmem>>, %arg4: memref<16x1024xbf16, #tpu.memory_space<vmem>>) attributes {dimension_semantics = [#tpu.dimension_semantics<parallel>], iteration_bounds = array<i64: 2>, scalar_prefetch = 0 : i64, scratch_operands = 0 : i64, tpu.core_type = #tpu.core_type<tc>, window_params = [{pipeline_mode = #tpu.pipeline_mode<synchronous>, transform_indices = @transform_0, window_bounds = array<i64: 16, 128>}, {transform_indices = @transform_1, window_bounds = array<i64: 128, 1024>}, {pipeline_mode = #tpu.pipeline_mode<synchronous>, transform_indices = @transform_2, window_bounds = array<i64: 16, 1>}, {transform_indices = @transform_3, window_bounds = array<i64: 16, 1024>}]} {
    %c0 = arith.constant 0 : index
    %c0_0 = arith.constant 0 : index
    %0 = vector.load %arg1[%c0, %c0_0] : memref<16x128xbf16, #tpu.memory_space<vmem>>, vector<16x128xbf16>
    %c0_1 = arith.constant 0 : index
    %c0_2 = arith.constant 0 : index
    %1 = vector.load %arg2[%c0_1, %c0_2] : memref<128x1024xbf16, #tpu.memory_space<vmem>>, vector<128x1024xbf16>
    %cst = arith.constant dense<0.000000e+00> : vector<16x1024xf32>
    %2 = tpu.matmul %0, %1, %cst {dimension_numbers = #tpu.dot_dimension_numbers<[1], [0], [0], [1], [0, 0, 1, 1], [], []>} : vector<16x128xbf16>, vector<128x1024xbf16>, vector<16x1024xf32> -> vector<16x1024xf32>
    %c0_3 = arith.constant 0 : index
    %c0_4 = arith.constant 0 : index
    %3 = vector.load %arg3[%c0_3, %c0_4] : memref<16x1xf32, #tpu.memory_space<vmem>>, vector<16x1xf32>
    %4 = vector.broadcast %3 : vector<16x1xf32> to vector<16x1024xf32>
    %5 = arith.addf %2, %4 : vector<16x1024xf32>
    %cst_5 = arith.constant 0.000000e+00 : f32
    %6 = vector.broadcast %cst_5 : f32 to vector<16x1024xf32>
    %7 = arith.cmpf ogt, %5, %6 : vector<16x1024xf32>
    %cst_6 = arith.constant 2.000000e-01 : f32
    %8 = vector.broadcast %cst_6 : f32 to vector<16x1024xf32>
    %9 = arith.mulf %8, %5 : vector<16x1024xf32>
    %10 = arith.select %7, %5, %9 : vector<16x1024xi1>, vector<16x1024xf32>
    %11 = arith.truncf %10 : vector<16x1024xf32> to vector<16x1024xbf16>
    %c0_7 = arith.constant 0 : index
    %c0_8 = arith.constant 0 : index
    %12 = vector.load %arg4[%c0_7, %c0_8] : memref<16x1024xbf16, #tpu.memory_space<vmem>>, vector<16x1024xbf16>
    tpu.vector_store %arg4[%c0_7, %c0_8], %11 {strides = array<i32>} : memref<16x1024xbf16, #tpu.memory_space<vmem>>, vector<16x1024xbf16>,
    return
  }
  func.func @transform_0(%arg0: i32) -> (i32, i32) {
    %c0_i32 = arith.constant 0 : i32
    %c0_i32_0 = arith.constant 0 : i32
    %c0_i32_1 = arith.constant 0 : i32
    return %c0_i32, %c0_i32_0 : i32, i32
  }
  func.func @transform_1(%arg0: i32) -> (i32, i32) {
    %c0_i32 = arith.constant 0 : i32
    %c0_i32_0 = arith.constant 0 : i32
    return %c0_i32, %arg0 : i32, i32
  }
  func.func @transform_2(%arg0: i32) -> (i32, i32) {
    %c0_i32 = arith.constant 0 : i32
    %c0_i32_0 = arith.constant 0 : i32
    %c0_i32_1 = arith.constant 0 : i32
    return %c0_i32, %c0_i32_0 : i32, i32
  }
  func.func @transform_3(%arg0: i32) -> (i32, i32) {
    %c0_i32 = arith.constant 0 : i32
    %c0_i32_0 = arith.constant 0 : i32
    return %c0_i32, %arg0 : i32, i32
  }
}

module attributes {stable_mosaic.version = 11 : i64} {
  func.func @_fused_kernel(%arg0: i32, %arg1: memref<32x256xbf16, #tpu.memory_space<vmem>>, %arg2: memref<256x256xbf16, #tpu.memory_space<vmem>>, %arg3: memref<32x1xf32, #tpu.memory_space<vmem>>, %arg4: memref<32x256xbf16, #tpu.memory_space<vmem>>) attributes {dimension_semantics = [#tpu.dimension_semantics<parallel>], iteration_bounds = array<i64: 2>, scalar_prefetch = 0 : i64, scratch_operands = 0 : i64, tpu.core_type = #tpu.core_type<tc>, window_params = [{pipeline_mode = #tpu.pipeline_mode<synchronous>, transform_indices = @transform_0, window_bounds = array<i64: 32, 256>}, {transform_indices = @transform_1, window_bounds = array<i64: 256, 256>}, {pipeline_mode = #tpu.pipeline_mode<synchronous>, transform_indices = @transform_2, window_bounds = array<i64: 32, 1>}, {transform_indices = @transform_3, window_bounds = array<i64: 32, 256>}]} {
    %c0 = arith.constant 0 : index
    %c0_0 = arith.constant 0 : index
    %0 = vector.load %arg1[%c0, %c0_0] : memref<32x256xbf16, #tpu.memory_space<vmem>>, vector<32x256xbf16>
    %c0_1 = arith.constant 0 : index
    %c0_2 = arith.constant 0 : index
    %1 = vector.load %arg2[%c0_1, %c0_2] : memref<256x256xbf16, #tpu.memory_space<vmem>>, vector<256x256xbf16>
    %cst = arith.constant dense<0.000000e+00> : vector<32x256xf32>
    %2 = tpu.matmul %0, %1, %cst {dimension_numbers = #tpu.dot_dimension_numbers<[1], [0], [0], [1], [0, 0, 1, 1], [], []>} : vector<32x256xbf16>, vector<256x256xbf16>, vector<32x256xf32> -> vector<32x256xf32>
    %c0_3 = arith.constant 0 : index
    %c0_4 = arith.constant 0 : index
    %3 = vector.load %arg3[%c0_3, %c0_4] : memref<32x1xf32, #tpu.memory_space<vmem>>, vector<32x1xf32>
    %4 = vector.broadcast %3 : vector<32x1xf32> to vector<32x256xf32>
    %5 = arith.addf %2, %4 : vector<32x256xf32>
    %cst_5 = arith.constant 0.000000e+00 : f32
    %6 = vector.broadcast %cst_5 : f32 to vector<32x256xf32>
    %7 = arith.cmpf ogt, %5, %6 : vector<32x256xf32>
    %cst_6 = arith.constant 2.000000e-01 : f32
    %8 = vector.broadcast %cst_6 : f32 to vector<32x256xf32>
    %9 = arith.mulf %8, %5 : vector<32x256xf32>
    %10 = arith.select %7, %5, %9 : vector<32x256xi1>, vector<32x256xf32>
    %11 = arith.truncf %10 : vector<32x256xf32> to vector<32x256xbf16>
    %c0_7 = arith.constant 0 : index
    %c0_8 = arith.constant 0 : index
    %12 = vector.load %arg4[%c0_7, %c0_8] : memref<32x256xbf16, #tpu.memory_space<vmem>>, vector<32x256xbf16>
    tpu.vector_store %arg4[%c0_7, %c0_8], %11 {strides = array<i32>} : memref<32x256xbf16, #tpu.memory_space<vmem>>, vector<32x256xbf16>,
    return
  }
  func.func @transform_0(%arg0: i32) -> (i32, i32) {
    %c0_i32 = arith.constant 0 : i32
    %c0_i32_0 = arith.constant 0 : i32
    %c0_i32_1 = arith.constant 0 : i32
    return %c0_i32, %c0_i32_0 : i32, i32
  }
  func.func @transform_1(%arg0: i32) -> (i32, i32) {
    %c0_i32 = arith.constant 0 : i32
    %c0_i32_0 = arith.constant 0 : i32
    return %c0_i32, %arg0 : i32, i32
  }
  func.func @transform_2(%arg0: i32) -> (i32, i32) {
    %c0_i32 = arith.constant 0 : i32
    %c0_i32_0 = arith.constant 0 : i32
    %c0_i32_1 = arith.constant 0 : i32
    return %c0_i32, %c0_i32_0 : i32, i32
  }
  func.func @transform_3(%arg0: i32) -> (i32, i32) {
    %c0_i32 = arith.constant 0 : i32
    %c0_i32_0 = arith.constant 0 : i32
    return %c0_i32, %arg0 : i32, i32
  }
}

module attributes {stable_mosaic.version = 11 : i64} {
  func.func @_fused_kernel(%arg0: i32, %arg1: memref<64x512xbf16, #tpu.memory_space<vmem>>, %arg2: memref<512x128xbf16, #tpu.memory_space<vmem>>, %arg3: memref<64x1xf32, #tpu.memory_space<vmem>>, %arg4: memref<64x128xbf16, #tpu.memory_space<vmem>>) attributes {dimension_semantics = [#tpu.dimension_semantics<parallel>], iteration_bounds = array<i64: 1>, scalar_prefetch = 0 : i64, scratch_operands = 0 : i64, tpu.core_type = #tpu.core_type<tc>, window_params = [{pipeline_mode = #tpu.pipeline_mode<synchronous>, transform_indices = @transform_0, window_bounds = array<i64: 64, 512>}, {transform_indices = @transform_1, window_bounds = array<i64: 512, 128>}, {pipeline_mode = #tpu.pipeline_mode<synchronous>, transform_indices = @transform_2, window_bounds = array<i64: 64, 1>}, {transform_indices = @transform_3, window_bounds = array<i64: 64, 128>}]} {
    %c0 = arith.constant 0 : index
    %c0_0 = arith.constant 0 : index
    %0 = vector.load %arg1[%c0, %c0_0] : memref<64x512xbf16, #tpu.memory_space<vmem>>, vector<64x512xbf16>
    %c0_1 = arith.constant 0 : index
    %c0_2 = arith.constant 0 : index
    %1 = vector.load %arg2[%c0_1, %c0_2] : memref<512x128xbf16, #tpu.memory_space<vmem>>, vector<512x128xbf16>
    %cst = arith.constant dense<0.000000e+00> : vector<64x128xf32>
    %2 = tpu.matmul %0, %1, %cst {dimension_numbers = #tpu.dot_dimension_numbers<[1], [0], [0], [1], [0, 0, 1, 1], [], []>} : vector<64x512xbf16>, vector<512x128xbf16>, vector<64x128xf32> -> vector<64x128xf32>
    %c0_3 = arith.constant 0 : index
    %c0_4 = arith.constant 0 : index
    %3 = vector.load %arg3[%c0_3, %c0_4] : memref<64x1xf32, #tpu.memory_space<vmem>>, vector<64x1xf32>
    %4 = vector.broadcast %3 : vector<64x1xf32> to vector<64x128xf32>
    %5 = arith.addf %2, %4 : vector<64x128xf32>
    %cst_5 = arith.constant 0.000000e+00 : f32
    %6 = vector.broadcast %cst_5 : f32 to vector<64x128xf32>
    %7 = arith.cmpf ogt, %5, %6 : vector<64x128xf32>
    %cst_6 = arith.constant 2.000000e-01 : f32
    %8 = vector.broadcast %cst_6 : f32 to vector<64x128xf32>
    %9 = arith.mulf %8, %5 : vector<64x128xf32>
    %10 = arith.select %7, %5, %9 : vector<64x128xi1>, vector<64x128xf32>
    %11 = arith.truncf %10 : vector<64x128xf32> to vector<64x128xbf16>
    %c0_7 = arith.constant 0 : index
    %c0_8 = arith.constant 0 : index
    %12 = vector.load %arg4[%c0_7, %c0_8] : memref<64x128xbf16, #tpu.memory_space<vmem>>, vector<64x128xbf16>
    tpu.vector_store %arg4[%c0_7, %c0_8], %11 {strides = array<i32>} : memref<64x128xbf16, #tpu.memory_space<vmem>>, vector<64x128xbf16>,
    return
  }
  func.func @transform_0(%arg0: i32) -> (i32, i32) {
    %c0_i32 = arith.constant 0 : i32
    %c0_i32_0 = arith.constant 0 : i32
    %c0_i32_1 = arith.constant 0 : i32
    return %c0_i32, %c0_i32_0 : i32, i32
  }
  func.func @transform_1(%arg0: i32) -> (i32, i32) {
    %c0_i32 = arith.constant 0 : i32
    %c0_i32_0 = arith.constant 0 : i32
    return %c0_i32, %arg0 : i32, i32
  }
  func.func @transform_2(%arg0: i32) -> (i32, i32) {
    %c0_i32 = arith.constant 0 : i32
    %c0_i32_0 = arith.constant 0 : i32
    %c0_i32_1 = arith.constant 0 : i32
    return %c0_i32, %c0_i32_0 : i32, i32
  }
  func.func @transform_3(%arg0: i32) -> (i32, i32) {
    %c0_i32 = arith.constant 0 : i32
    %c0_i32_0 = arith.constant 0 : i32
    return %c0_i32, %arg0 : i32, i32
  }
}

module attributes {stable_mosaic.version = 11 : i64} {
  func.func @_fused_kernel(%arg0: i32, %arg1: memref<128x1024xbf16, #tpu.memory_space<vmem>>, %arg2: memref<1024x128xbf16, #tpu.memory_space<vmem>>, %arg3: memref<128x1xf32, #tpu.memory_space<vmem>>, %arg4: memref<128x128xf32, #tpu.memory_space<vmem>>) attributes {dimension_semantics = [#tpu.dimension_semantics<parallel>], iteration_bounds = array<i64: 1>, scalar_prefetch = 0 : i64, scratch_operands = 0 : i64, tpu.core_type = #tpu.core_type<tc>, window_params = [{pipeline_mode = #tpu.pipeline_mode<synchronous>, transform_indices = @transform_0, window_bounds = array<i64: 128, 1024>}, {transform_indices = @transform_1, window_bounds = array<i64: 1024, 128>}, {pipeline_mode = #tpu.pipeline_mode<synchronous>, transform_indices = @transform_2, window_bounds = array<i64: 128, 1>}, {transform_indices = @transform_3, window_bounds = array<i64: 128, 128>}]} {
    %c0 = arith.constant 0 : index
    %c0_0 = arith.constant 0 : index
    %0 = vector.load %arg1[%c0, %c0_0] : memref<128x1024xbf16, #tpu.memory_space<vmem>>, vector<128x1024xbf16>
    %c0_1 = arith.constant 0 : index
    %c0_2 = arith.constant 0 : index
    %1 = vector.load %arg2[%c0_1, %c0_2] : memref<1024x128xbf16, #tpu.memory_space<vmem>>, vector<1024x128xbf16>
    %cst = arith.constant dense<0.000000e+00> : vector<128x128xf32>
    %2 = tpu.matmul %0, %1, %cst {dimension_numbers = #tpu.dot_dimension_numbers<[1], [0], [0], [1], [0, 0, 1, 1], [], []>} : vector<128x1024xbf16>, vector<1024x128xbf16>, vector<128x128xf32> -> vector<128x128xf32>
    %c0_3 = arith.constant 0 : index
    %c0_4 = arith.constant 0 : index
    %3 = vector.load %arg3[%c0_3, %c0_4] : memref<128x1xf32, #tpu.memory_space<vmem>>, vector<128x1xf32>
    %4 = vector.broadcast %3 : vector<128x1xf32> to vector<128x128xf32>
    %5 = arith.addf %2, %4 : vector<128x128xf32>
    %cst_5 = arith.constant 0.000000e+00 : f32
    %6 = vector.broadcast %cst_5 : f32 to vector<128x128xf32>
    %7 = arith.cmpf ogt, %5, %6 : vector<128x128xf32>
    %cst_6 = arith.constant 2.000000e-01 : f32
    %8 = vector.broadcast %cst_6 : f32 to vector<128x128xf32>
    %9 = arith.mulf %8, %5 : vector<128x128xf32>
    %10 = arith.select %7, %5, %9 : vector<128x128xi1>, vector<128x128xf32>
    %c0_7 = arith.constant 0 : index
    %c0_8 = arith.constant 0 : index
    %11 = vector.load %arg4[%c0_7, %c0_8] : memref<128x128xf32, #tpu.memory_space<vmem>>, vector<128x128xf32>
    tpu.vector_store %arg4[%c0_7, %c0_8], %10 {strides = array<i32>} : memref<128x128xf32, #tpu.memory_space<vmem>>, vector<128x128xf32>,
    return
  }
  func.func @transform_0(%arg0: i32) -> (i32, i32) {
    %c0_i32 = arith.constant 0 : i32
    %c0_i32_0 = arith.constant 0 : i32
    %c0_i32_1 = arith.constant 0 : i32
    return %c0_i32, %c0_i32_0 : i32, i32
  }
  func.func @transform_1(%arg0: i32) -> (i32, i32) {
    %c0_i32 = arith.constant 0 : i32
    %c0_i32_0 = arith.constant 0 : i32
    return %c0_i32, %arg0 : i32, i32
  }
  func.func @transform_2(%arg0: i32) -> (i32, i32) {
    %c0_i32 = arith.constant 0 : i32
    %c0_i32_0 = arith.constant 0 : i32
    %c0_i32_1 = arith.constant 0 : i32
    return %c0_i32, %c0_i32_0 : i32, i32
  }
  func.func @transform_3(%arg0: i32) -> (i32, i32) {
    %c0_i32 = arith.constant 0 : i32
    %c0_i32_0 = arith.constant 0 : i32
    return %c0_i32, %arg0 : i32, i32
  }
}

</mosaic_0001>

<bundles_post_ra>
// kernel: discriminator_forward.5
= control target key start
LH: loop header
LB: loop body
LE: loop exit
PB: predicated region body
PF: predicated region fallthrough
CT: control target
= control target key end

     0   :  { %s2158_s12 = smov 0   ;;  %s2160_s13 = smov 0   ;;  %s2613_s0 = inlined_call_operand.vmem [shape: bf16[8,48], index: 0, kind: input, shape index: {}]   ;;  %s2614_s1 = inlined_call_operand.vmem [shape: bf16[48,8192], index: 1, kind: input, shape index: {}]   ;;  %s2615_s2 = inlined_call_operand.vmem [shape: f32[8,1], index: 2, kind: input, shape index: {}]   ;;  %s2616_s3 = inlined_call_operand.vmem [shape: bf16[8,8192], index: 3, kind: output, shape index: {}]  }
   0x1   :  { %s2162_s14 = smov 0  }
   0x2 LB: > { %s1929_s15 = sadd.s32 4294967295, %s2135_s14   ;;  %s2175_s16 = sadd.s32 1, %s2135_s14   ;;  %s2135_s14 = sphi %s2162_s14, %s2619_s14   ;;  %s2131_s13 = sphi %s2160_s13, %s2618_s13   ;;  %s2127_s12 = sphi %s2158_s12, %s2617_s12  }
   0x3   : > { %s38_s17 = ssub.s32 %s2135_s14, %s2175_s16  ;;  %s41_s18 = sadd.s32 1, %s2131_s13 }
   0x4   : > { %p39_p0 = scmp.eq.s32.totalorder %s38_s17, 0  ;;  %p48_p1 = scmp.ne.s32.totalorder %s2131_s13, %s2127_s12 }
   0x5   : > { %p49_p2 = scmp.eq.s32.totalorder %s2135_s14, 0  ;;  %p1932_p4 = scmp.ge.s32.totalorder %s2135_s14, 2 }
   0x6   : > { %s2184_s19 = scalar_select %p39_p0, %s2131_s13, %s41_s18  }
   0x7   : > { %p50_p3 = por %p49_p2, %p48_p1  ;;  %127 = sbr.rel (%p1932_p4) target bundleno = 67 (0x43), region = 24 }
   0xe   : > { %130 = sbr.rel (!%p50_p3) target bundleno = 67 (0x43), region = 28  ;;  %s132_s20 = sand.u32 (%p50_p3), 1, %s2131_s13  }
   0xf   : > { %s2068_s21 = sshll.u32 (%p50_p3), %s2135_s14, 7  ;;  %s2085_s22 = smul.u32 (%p50_p3), 768, %s132_s20 }
  0x10   : > { %s2192_s25 = scalar_lea.vmem (%p50_p3), %s2614_s1, %s2068_s21 }
  0x11   : > { %v150_v0 = vld [vmem:[%s2192_s25] sm:$0xff] (%p50_p3)  ;;  %v152_v1 = vld [vmem:[%s2192_s25 + $0x8] sm:$0xff] (%p50_p3)  ;;  %v154_v2 = vld [vmem:[%s2192_s25 + $0x10] sm:$0xff] (%p50_p3)  ;;  %s2200_s26 = scalar_lea.vmem (%p50_p3), [#allocation2], %s2085_s22 }
  0x12   : > { %v156_v3 = vld [vmem:[%s2192_s25 + $0x18] sm:$0xff] (%p50_p3)  ;;  %v158_v4 = vld [vmem:[%s2192_s25 + $0x20] sm:$0xff] (%p50_p3)  ;;  %v160_v5 = vld [vmem:[%s2192_s25 + $0x28] sm:$0xff] (%p50_p3)  ;;  %151 = vst [vmem:[%s2200_s26] sm:$0xff] (%p50_p3), %v150_v0 }
  0x13   : > { %153 = vst [vmem:[%s2200_s26 + $0x8] sm:$0xff] (%p50_p3), %v152_v1  ;;  %155 = vst [vmem:[%s2200_s26 + $0x10] sm:$0xff] (%p50_p3), %v154_v2  ;;  %v162_v6 = vld [vmem:[%s2192_s25 + $0x30] sm:$0xff] (%p50_p3)  ;;  %v164_v7 = vld [vmem:[%s2192_s25 + $0x38] sm:$0xff] (%p50_p3) }
  0x14   : > { %157 = vst [vmem:[%s2200_s26 + $0x18] sm:$0xff] (%p50_p3), %v156_v3  ;;  %159 = vst [vmem:[%s2200_s26 + $0x20] sm:$0xff] (%p50_p3), %v158_v4  ;;  %v166_v8 = vld [vmem:[%s2192_s25 + $0x40] sm:$0xff] (%p50_p3)  ;;  %v168_v9 = vld [vmem:[%s2192_s25 + $0x48] sm:$0xff] (%p50_p3) }
  0x15   : > { %161 = vst [vmem:[%s2200_s26 + $0x28] sm:$0xff] %v160_v5  ;;  %163 = vst [vmem:[%s2200_s26 + $0x30] sm:$0xff] %v162_v6  ;;  %v170_v10 = vld [vmem:[%s2192_s25 + $0x50] sm:$0xff]  ;;  %v172_v11 = vld [vmem:[%s2192_s25 + $0x58] sm:$0xff] }
  0x16   : > { %165 = vst [vmem:[%s2200_s26 + $0x38] sm:$0xff] %v164_v7  ;;  %167 = vst [vmem:[%s2200_s26 + $0x40] sm:$0xff] %v166_v8  ;;  %v174_v12 = vld [vmem:[%s2192_s25 + $0x60] sm:$0xff]  ;;  %v176_v13 = vld [vmem:[%s2192_s25 + $0x68] sm:$0xff] }
  0x17   : > { %169 = vst [vmem:[%s2200_s26 + $0x48] sm:$0xff] %v168_v9  ;;  %171 = vst [vmem:[%s2200_s26 + $0x50] sm:$0xff] %v170_v10  ;;  %v178_v14 = vld [vmem:[%s2192_s25 + $0x70] sm:$0xff]  ;;  %v180_v15 = vld [vmem:[%s2192_s25 + $0x78] sm:$0xff] }
  0x18   : > { %173 = vst [vmem:[%s2200_s26 + $0x58] sm:$0xff] %v172_v11  ;;  %175 = vst [vmem:[%s2200_s26 + $0x60] sm:$0xff] %v174_v12  ;;  %v182_v16 = vld [vmem:[%s2192_s25 + $0x100] sm:$0xff]  ;;  %v184_v17 = vld [vmem:[%s2192_s25 + $0x108] sm:$0xff] }
  0x19   : > { %177 = vst [vmem:[%s2200_s26 + $0x68] sm:$0xff] %v176_v13  ;;  %179 = vst [vmem:[%s2200_s26 + $0x70] sm:$0xff] %v178_v14  ;;  %v186_v18 = vld [vmem:[%s2192_s25 + $0x110] sm:$0xff]  ;;  %v188_v19 = vld [vmem:[%s2192_s25 + $0x118] sm:$0xff] }
  0x1a   : > { %181 = vst [vmem:[%s2200_s26 + $0x78] sm:$0xff] %v180_v15  ;;  %183 = vst [vmem:[%s2200_s26 + $0x80] sm:$0xff] %v182_v16  ;;  %v190_v20 = vld [vmem:[%s2192_s25 + $0x120] sm:$0xff]  ;;  %v192_v21 = vld [vmem:[%s2192_s25 + $0x128] sm:$0xff] }
  0x1b   : > { %185 = vst [vmem:[%s2200_s26 + $0x88] sm:$0xff] %v184_v17  ;;  %187 = vst [vmem:[%s2200_s26 + $0x90] sm:$0xff] %v186_v18  ;;  %v194_v22 = vld [vmem:[%s2192_s25 + $0x130] sm:$0xff]  ;;  %v196_v23 = vld [vmem:[%s2192_s25 + $0x138] sm:$0xff] }
  0x1c   : > { %189 = vst [vmem:[%s2200_s26 + $0x98] sm:$0xff] %v188_v19  ;;  %191 = vst [vmem:[%s2200_s26 + $0xa0] sm:$0xff] %v190_v20  ;;  %v198_v24 = vld [vmem:[%s2192_s25 + $0x140] sm:$0xff]  ;;  %v200_v25 = vld [vmem:[%s2192_s25 + $0x148] sm:$0xff] }
  0x1d   : > { %193 = vst [vmem:[%s2200_s26 + $0xa8] sm:$0xff] %v192_v21  ;;  %195 = vst [vmem:[%s2200_s26 + $0xb0] sm:$0xff] %v194_v22  ;;  %v202_v26 = vld [vmem:[%s2192_s25 + $0x150] sm:$0xff]  ;;  %v204_v27 = vld [vmem:[%s2192_s25 + $0x158] sm:$0xff] }
  0x1e   : > { %197 = vst [vmem:[%s2200_s26 + $0xb8] sm:$0xff] %v196_v23  ;;  %199 = vst [vmem:[%s2200_s26 + $0xc0] sm:$0xff] %v198_v24  ;;  %v206_v28 = vld [vmem:[%s2192_s25 + $0x160] sm:$0xff]  ;;  %v208_v29 = vld [vmem:[%s2192_s25 + $0x168] sm:$0xff] }
  0x1f   : > { %201 = vst [vmem:[%s2200_s26 + $0xc8] sm:$0xff] %v200_v25  ;;  %203 = vst [vmem:[%s2200_s26 + $0xd0] sm:$0xff] %v202_v26  ;;  %v210_v30 = vld [vmem:[%s2192_s25 + $0x170] sm:$0xff]  ;;  %v212_v31 = vld [vmem:[%s2192_s25 + $0x178] sm:$0xff] }
  0x20   : > { %205 = vst [vmem:[%s2200_s26 + $0xd8] sm:$0xff] %v204_v27  ;;  %207 = vst [vmem:[%s2200_s26 + $0xe0] sm:$0xff] %v206_v28  ;;  %v214_v32 = vld [vmem:[%s2192_s25 + $0x200] sm:$0xff]  ;;  %v216_v33 = vld [vmem:[%s2192_s25 + $0x208] sm:$0xff] }
  0x21   : > { %209 = vst [vmem:[%s2200_s26 + $0xe8] sm:$0xff] %v208_v29  ;;  %211 = vst [vmem:[%s2200_s26 + $0xf0] sm:$0xff] %v210_v30  ;;  %v218_v34 = vld [vmem:[%s2192_s25 + $0x210] sm:$0xff]  ;;  %v220_v35 = vld [vmem:[%s2192_s25 + $0x218] sm:$0xff] }
  0x22   : > { %213 = vst [vmem:[%s2200_s26 + $0xf8] sm:$0xff] %v212_v31  ;;  %215 = vst [vmem:[%s2200_s26 + $0x100] sm:$0xff] %v214_v32  ;;  %v222_v36 = vld [vmem:[%s2192_s25 + $0x220] sm:$0xff]  ;;  %v224_v37 = vld [vmem:[%s2192_s25 + $0x228] sm:$0xff] }
  0x23   : > { %217 = vst [vmem:[%s2200_s26 + $0x108] sm:$0xff] %v216_v33  ;;  %219 = vst [vmem:[%s2200_s26 + $0x110] sm:$0xff] %v218_v34  ;;  %v226_v38 = vld [vmem:[%s2192_s25 + $0x230] sm:$0xff]  ;;  %v228_v39 = vld [vmem:[%s2192_s25 + $0x238] sm:$0xff] }
  0x24   : > { %221 = vst [vmem:[%s2200_s26 + $0x118] sm:$0xff] %v220_v35  ;;  %223 = vst [vmem:[%s2200_s26 + $0x120] sm:$0xff] %v222_v36  ;;  %v230_v40 = vld [vmem:[%s2192_s25 + $0x240] sm:$0xff]  ;;  %v232_v41 = vld [vmem:[%s2192_s25 + $0x248] sm:$0xff] }
  0x25   : > { %225 = vst [vmem:[%s2200_s26 + $0x128] sm:$0xff] %v224_v37  ;;  %227 = vst [vmem:[%s2200_s26 + $0x130] sm:$0xff] %v226_v38  ;;  %v234_v42 = vld [vmem:[%s2192_s25 + $0x250] sm:$0xff]  ;;  %v236_v43 = vld [vmem:[%s2192_s25 + $0x258] sm:$0xff] }
  0x26   : > { %229 = vst [vmem:[%s2200_s26 + $0x138] sm:$0xff] %v228_v39  ;;  %231 = vst [vmem:[%s2200_s26 + $0x140] sm:$0xff] %v230_v40  ;;  %v238_v44 = vld [vmem:[%s2192_s25 + $0x260] sm:$0xff]  ;;  %v240_v45 = vld [vmem:[%s2192_s25 + $0x268] sm:$0xff] }
  0x27   : > { %233 = vst [vmem:[%s2200_s26 + $0x148] sm:$0xff] %v232_v41  ;;  %235 = vst [vmem:[%s2200_s26 + $0x150] sm:$0xff] %v234_v42  ;;  %v242_v46 = vld [vmem:[%s2192_s25 + $0x270] sm:$0xff]  ;;  %v244_v47 = vld [vmem:[%s2192_s25 + $0x278] sm:$0xff] }
  0x28   : > { %237 = vst [vmem:[%s2200_s26 + $0x158] sm:$0xff] %v236_v43  ;;  %239 = vst [vmem:[%s2200_s26 + $0x160] sm:$0xff] %v238_v44  ;;  %v246_v48 = vld [vmem:[%s2192_s25 + $0x300] sm:$0xff]  ;;  %v248_v49 = vld [vmem:[%s2192_s25 + $0x308] sm:$0xff] }
  0x29   : > { %241 = vst [vmem:[%s2200_s26 + $0x168] sm:$0xff] %v240_v45  ;;  %243 = vst [vmem:[%s2200_s26 + $0x170] sm:$0xff] %v242_v46  ;;  %v250_v50 = vld [vmem:[%s2192_s25 + $0x310] sm:$0xff]  ;;  %v252_v51 = vld [vmem:[%s2192_s25 + $0x318] sm:$0xff] }
  0x2a   : > { %245 = vst [vmem:[%s2200_s26 + $0x178] sm:$0xff] %v244_v47  ;;  %247 = vst [vmem:[%s2200_s26 + $0x180] sm:$0xff] %v246_v48  ;;  %v254_v52 = vld [vmem:[%s2192_s25 + $0x320] sm:$0xff]  ;;  %v256_v53 = vld [vmem:[%s2192_s25 + $0x328] sm:$0xff] }
  0x2b   : > { %249 = vst [vmem:[%s2200_s26 + $0x188] sm:$0xff] %v248_v49  ;;  %251 = vst [vmem:[%s2200_s26 + $0x190] sm:$0xff] %v250_v50  ;;  %v258_v54 = vld [vmem:[%s2192_s25 + $0x330] sm:$0xff]  ;;  %v260_v55 = vld [vmem:[%s2192_s25 + $0x338] sm:$0xff] }
  0x2c   : > { %253 = vst [vmem:[%s2200_s26 + $0x198] sm:$0xff] %v252_v51  ;;  %255 = vst [vmem:[%s2200_s26 + $0x1a0] sm:$0xff] %v254_v52  ;;  %v262_v56 = vld [vmem:[%s2192_s25 + $0x340] sm:$0xff]  ;;  %v264_v57 = vld [vmem:[%s2192_s25 + $0x348] sm:$0xff] }
  0x2d   : > { %257 = vst [vmem:[%s2200_s26 + $0x1a8] sm:$0xff] %v256_v53  ;;  %259 = vst [vmem:[%s2200_s26 + $0x1b0] sm:$0xff] %v258_v54  ;;  %v266_v58 = vld [vmem:[%s2192_s25 + $0x350] sm:$0xff]  ;;  %v268_v59 = vld [vmem:[%s2192_s25 + $0x358] sm:$0xff] }
  0x2e   : > { %261 = vst [vmem:[%s2200_s26 + $0x1b8] sm:$0xff] %v260_v55  ;;  %263 = vst [vmem:[%s2200_s26 + $0x1c0] sm:$0xff] %v262_v56  ;;  %v270_v60 = vld [vmem:[%s2192_s25 + $0x360] sm:$0xff]  ;;  %v272_v61 = vld [vmem:[%s2192_s25 + $0x368] sm:$0xff] }
  0x2f   : > { %265 = vst [vmem:[%s2200_s26 + $0x1c8] sm:$0xff] %v264_v57  ;;  %267 = vst [vmem:[%s2200_s26 + $0x1d0] sm:$0xff] %v266_v58  ;;  %v274_v62 = vld [vmem:[%s2192_s25 + $0x370] sm:$0xff]  ;;  %v276_v63 = vld [vmem:[%s2192_s25 + $0x378] sm:$0xff] }
  0x30   : > { %269 = vst [vmem:[%s2200_s26 + $0x1d8] sm:$0xff] %v268_v59  ;;  %271 = vst [vmem:[%s2200_s26 + $0x1e0] sm:$0xff] %v270_v60  ;;  %v278_v0 = vld [vmem:[%s2192_s25 + $0x400] sm:$0xff]  ;;  %v280_v1 = vld [vmem:[%s2192_s25 + $0x408] sm:$0xff] }
  0x31   : > { %273 = vst [vmem:[%s2200_s26 + $0x1e8] sm:$0xff] %v272_v61  ;;  %275 = vst [vmem:[%s2200_s26 + $0x1f0] sm:$0xff] %v274_v62  ;;  %v282_v2 = vld [vmem:[%s2192_s25 + $0x410] sm:$0xff]  ;;  %v284_v3 = vld [vmem:[%s2192_s25 + $0x418] sm:$0xff] }
  0x32   : > { %277 = vst [vmem:[%s2200_s26 + $0x1f8] sm:$0xff] %v276_v63  ;;  %279 = vst [vmem:[%s2200_s26 + $0x200] sm:$0xff] %v278_v0  ;;  %v286_v4 = vld [vmem:[%s2192_s25 + $0x420] sm:$0xff]  ;;  %v288_v5 = vld [vmem:[%s2192_s25 + $0x428] sm:$0xff] }
  0x33   : > { %281 = vst [vmem:[%s2200_s26 + $0x208] sm:$0xff] %v280_v1  ;;  %283 = vst [vmem:[%s2200_s26 + $0x210] sm:$0xff] %v282_v2  ;;  %v290_v6 = vld [vmem:[%s2192_s25 + $0x430] sm:$0xff]  ;;  %v292_v7 = vld [vmem:[%s2192_s25 + $0x438] sm:$0xff] }
  0x34   : > { %285 = vst [vmem:[%s2200_s26 + $0x218] sm:$0xff] %v284_v3  ;;  %287 = vst [vmem:[%s2200_s26 + $0x220] sm:$0xff] %v286_v4  ;;  %v294_v8 = vld [vmem:[%s2192_s25 + $0x440] sm:$0xff]  ;;  %v296_v9 = vld [vmem:[%s2192_s25 + $0x448] sm:$0xff] }
  0x35   : > { %289 = vst [vmem:[%s2200_s26 + $0x228] sm:$0xff] %v288_v5  ;;  %291 = vst [vmem:[%s2200_s26 + $0x230] sm:$0xff] %v290_v6  ;;  %v298_v10 = vld [vmem:[%s2192_s25 + $0x450] sm:$0xff]  ;;  %v300_v11 = vld [vmem:[%s2192_s25 + $0x458] sm:$0xff] }
  0x36   : > { %293 = vst [vmem:[%s2200_s26 + $0x238] sm:$0xff] %v292_v7  ;;  %295 = vst [vmem:[%s2200_s26 + $0x240] sm:$0xff] %v294_v8  ;;  %v302_v12 = vld [vmem:[%s2192_s25 + $0x460] sm:$0xff]  ;;  %v304_v13 = vld [vmem:[%s2192_s25 + $0x468] sm:$0xff] }
  0x37   : > { %297 = vst [vmem:[%s2200_s26 + $0x248] sm:$0xff] %v296_v9  ;;  %299 = vst [vmem:[%s2200_s26 + $0x250] sm:$0xff] %v298_v10  ;;  %v306_v14 = vld [vmem:[%s2192_s25 + $0x470] sm:$0xff]  ;;  %v308_v15 = vld [vmem:[%s2192_s25 + $0x478] sm:$0xff] }
  0x38   : > { %301 = vst [vmem:[%s2200_s26 + $0x258] sm:$0xff] %v300_v11  ;;  %303 = vst [vmem:[%s2200_s26 + $0x260] sm:$0xff] %v302_v12  ;;  %v310_v16 = vld [vmem:[%s2192_s25 + $0x500] sm:$0xff]  ;;  %v312_v17 = vld [vmem:[%s2192_s25 + $0x508] sm:$0xff] }
  0x39   : > { %305 = vst [vmem:[%s2200_s26 + $0x268] sm:$0xff] %v304_v13  ;;  %307 = vst [vmem:[%s2200_s26 + $0x270] sm:$0xff] %v306_v14  ;;  %v314_v18 = vld [vmem:[%s2192_s25 + $0x510] sm:$0xff]  ;;  %v316_v19 = vld [vmem:[%s2192_s25 + $0x518] sm:$0xff] }
  0x3a   : > { %309 = vst [vmem:[%s2200_s26 + $0x278] sm:$0xff] %v308_v15  ;;  %311 = vst [vmem:[%s2200_s26 + $0x280] sm:$0xff] %v310_v16  ;;  %v318_v20 = vld [vmem:[%s2192_s25 + $0x520] sm:$0xff]  ;;  %v320_v21 = vld [vmem:[%s2192_s25 + $0x528] sm:$0xff] }
  0x3b   : > { %313 = vst [vmem:[%s2200_s26 + $0x288] sm:$0xff] %v312_v17  ;;  %315 = vst [vmem:[%s2200_s26 + $0x290] sm:$0xff] %v314_v18  ;;  %v322_v22 = vld [vmem:[%s2192_s25 + $0x530] sm:$0xff]  ;;  %v324_v23 = vld [vmem:[%s2192_s25 + $0x538] sm:$0xff] }
  0x3c   : > { %317 = vst [vmem:[%s2200_s26 + $0x298] sm:$0xff] %v316_v19  ;;  %319 = vst [vmem:[%s2200_s26 + $0x2a0] sm:$0xff] %v318_v20  ;;  %v326_v24 = vld [vmem:[%s2192_s25 + $0x540] sm:$0xff]  ;;  %v328_v25 = vld [vmem:[%s2192_s25 + $0x548] sm:$0xff] }
  0x3d   : > { %321 = vst [vmem:[%s2200_s26 + $0x2a8] sm:$0xff] %v320_v21  ;;  %323 = vst [vmem:[%s2200_s26 + $0x2b0] sm:$0xff] %v322_v22  ;;  %v330_v26 = vld [vmem:[%s2192_s25 + $0x550] sm:$0xff]  ;;  %v332_v27 = vld [vmem:[%s2192_s25 + $0x558] sm:$0xff] }
  0x3e   : > { %325 = vst [vmem:[%s2200_s26 + $0x2b8] sm:$0xff] %v324_v23  ;;  %327 = vst [vmem:[%s2200_s26 + $0x2c0] sm:$0xff] %v326_v24  ;;  %v334_v28 = vld [vmem:[%s2192_s25 + $0x560] sm:$0xff]  ;;  %v336_v29 = vld [vmem:[%s2192_s25 + $0x568] sm:$0xff] }
  0x3f   : > { %329 = vst [vmem:[%s2200_s26 + $0x2c8] sm:$0xff] %v328_v25  ;;  %331 = vst [vmem:[%s2200_s26 + $0x2d0] sm:$0xff] %v330_v26  ;;  %v338_v30 = vld [vmem:[%s2192_s25 + $0x570] sm:$0xff]  ;;  %v340_v31 = vld [vmem:[%s2192_s25 + $0x578] sm:$0xff] }
  0x40   : > { %333 = vst [vmem:[%s2200_s26 + $0x2d8] sm:$0xff] %v332_v27  ;;  %335 = vst [vmem:[%s2200_s26 + $0x2e0] sm:$0xff] %v334_v28 }
  0x41   : > { %337 = vst [vmem:[%s2200_s26 + $0x2e8] sm:$0xff] %v336_v29  ;;  %339 = vst [vmem:[%s2200_s26 + $0x2f0] sm:$0xff] %v338_v30 }
  0x42   : > { %341 = vst [vmem:[%s2200_s26 + $0x2f8] sm:$0xff] %v340_v31 }
  0x43 PF: > { %p1935_p5 = scmp.ge.s32.totalorder %s2135_s14, 1  ;;  %p346_p6 = scmp.lt.s32.totalorder %s2135_s14, 3 }
  0x45   : > { %p347_p7 = pnand %p1935_p5, %p346_p6 }
  0x46   : > { %s353_s27 = sand.u32 (!%p347_p7), 1, %s2127_s12   ;;  %v481_v32 = vld [vmem:[%s2615_s2] sm:$0xff] (!%p347_p7)  ;;  %v2137_v33 = vmov (!%p347_p7), 0   ;;  %vm967_vm0 = vcmask (!%p347_p7), 392192   ;;  %s1936_s7 = sshll.u32 (!%p347_p7), %s1929_s15, 5 }
  0x47   : > { %350 = sbr.rel (%p347_p7) target bundleno = 397 (0x18d), region = 51  ;;  %1003 = vmatprep.mubr.bf16.mxu0 (!%p347_p7), %v2137_v33  ;;  %1044 = vmatprep.mubr.bf16.mxu1 (!%p347_p7), %v2137_v33  ;;  %v2422_v4 = vld [vmem:[%s2613_s0] sm:$0xf] (!%p347_p7)  ;;  %p378_p8 = scmp.lt.s32.totalorder (!%p347_p7), %s1936_s7, 63 }
  0x48   : > { %s2086_s30 = smul.u32 (!%p347_p7), 768, %s353_s27  ;;  %2112 = vset.pattern.permute.xlu0 (!%p347_p7), %v2137_v33 }
  0x49   : > { %484 = vperm.xlu0 (!%p347_p7), %2112, %v481_v32  }
  0x4a   : > { %s2397_s4 = scalar_lea.vmem (!%p347_p7), [#allocation2], %s2086_s30 }
  0x4b   : > { %v385_v34 = vld [vmem:[%s2397_s4] sm:$0xff] (!%p347_p7)  ;;  %v386_v36 = vld [vmem:[%s2397_s4 + $0x8] sm:$0xff] (!%p347_p7)  ;;  %v387_v56 = vld [vmem:[%s2397_s4 + $0x10] sm:$0xff] (!%p347_p7) }
  0x4c   : > { %v401_v35 = vld [vmem:[%s2397_s4 + $0x80] sm:$0xff] (!%p347_p7)  ;;  %v402_v38 = vld [vmem:[%s2397_s4 + $0x88] sm:$0xff] (!%p347_p7)  ;;  %v403_v57 = vld [vmem:[%s2397_s4 + $0x90] sm:$0xff] (!%p347_p7) }
  0x4d   : > { %v1939_v37 = vcombine.high (!%p347_p7), %v385_v34, %v401_v35  ;;  %v1938_v39 = vcombine.low (!%p347_p7), %v385_v34, %v401_v35  ;;  %v417_v40 = vld [vmem:[%s2397_s4 + $0x100] sm:$0xff] (!%p347_p7)  ;;  %v1941_v42 = vcombine.high (!%p347_p7), %v386_v36, %v402_v38  ;;  %v1940_v43 = vcombine.low (!%p347_p7), %v386_v36, %v402_v38  ;;  %v418_v45 = vld [vmem:[%s2397_s4 + $0x108] sm:$0xff] (!%p347_p7)  ;;  %v388_v58 = vld [vmem:[%s2397_s4 + $0x18] sm:$0xff] (!%p347_p7) }
  0x4e   : > { %v433_v41 = vld [vmem:[%s2397_s4 + $0x180] sm:$0xff]  ;;  %v434_v46 = vld [vmem:[%s2397_s4 + $0x188] sm:$0xff]  ;;  %v404_v59 = vld [vmem:[%s2397_s4 + $0x98] sm:$0xff]  ;;  %v1943_v62 = vcombine.high %v387_v56, %v403_v57  ;;  %v1942_v5 = vcombine.low %v387_v56, %v403_v57  ;;  %s2621_s7 = smov (!%p378_p8, %s1936_s7), 63 }
  0x4f   : > { %v1971_v44 = vcombine.high %v417_v40, %v433_v41  ;;  %v449_v47 = vld [vmem:[%s2397_s4 + $0x200] sm:$0xff]  ;;  %971 = vmatprep.subr.bf16.mxu0 %v1939_v37  ;;  %v1973_v48 = vcombine.high %v418_v45, %v434_v46  ;;  %v450_v50 = vld [vmem:[%s2397_s4 + $0x208] sm:$0xff]  ;;  %1012 = vmatprep.subr.bf16.mxu1 %v1941_v42  ;;  %v1970_v52 = vcombine.low %v417_v40, %v433_v41  ;;  %v419_v0 = vld [vmem:[%s2397_s4 + $0x110] sm:$0xff]  ;;  %s1937_s8 = sshll.u32 %s2621_s7, 2 }
  0x50   : > { %v465_v49 = vld [vmem:[%s2397_s4 + $0x280] sm:$0xff]  ;;  %v466_v51 = vld [vmem:[%s2397_s4 + $0x288] sm:$0xff]  ;;  %972 = vmatpush1.bf16.msra.mxu0 %v1938_v39  ;;  %1013 = vmatpush1.bf16.msra.mxu1 %v1940_v43  ;;  %v1972_v53 = vcombine.low %v418_v45, %v434_v46  ;;  %v1945_v63 = vcombine.high %v388_v58, %v404_v59  ;;  %v435_v1 = vld [vmem:[%s2397_s4 + $0x190] sm:$0xff]  ;;  %v1944_v6 = vcombine.low %v388_v58, %v404_v59  ;;  %s2557_s11 = scalar_lea.vmem %s2616_s3, %s1937_s8 }
  0x51   : > { %973 = vmatprep.subr.bf16.mxu0 %v1971_v44  ;;  %v2003_v54 = vcombine.high %v449_v47, %v465_v49  ;;  %1014 = vmatprep.subr.bf16.mxu1 %v1973_v48  ;;  %v2005_v55 = vcombine.high %v450_v50, %v466_v51  ;;  %v2002_v60 = vcombine.low %v449_v47, %v465_v49  ;;  %v420_v2 = vld [vmem:[%s2397_s4 + $0x118] sm:$0xff]  ;;  %v451_v9 = vld [vmem:[%s2397_s4 + $0x210] sm:$0xff]  ;;  %v389_v17 = vld [vmem:[%s2397_s4 + $0x20] sm:$0xff] }
  0x52   : > { %v2004_v61 = vcombine.low %v450_v50, %v466_v51  ;;  %v436_v3 = vld [vmem:[%s2397_s4 + $0x198] sm:$0xff]  ;;  %v1975_v7 = vcombine.high %v419_v0, %v435_v1  ;;  %v467_v10 = vld [vmem:[%s2397_s4 + $0x290] sm:$0xff]  ;;  %v1974_v13 = vcombine.low %v419_v0, %v435_v1  ;;  %v405_v18 = vld [vmem:[%s2397_s4 + $0xa0] sm:$0xff] }
  0x53   : > { %v1977_v8 = vcombine.high %v420_v2, %v436_v3  ;;  %v452_v11 = vld [vmem:[%s2397_s4 + $0x218] sm:$0xff]  ;;  %v1976_v14 = vcombine.low %v420_v2, %v436_v3  ;;  %v2007_v15 = vcombine.high %v451_v9, %v467_v10  ;;  %v390_v19 = vld [vmem:[%s2397_s4 + $0x28] sm:$0xff]  ;;  %v2006_v21 = vcombine.low %v451_v9, %v467_v10  ;;  %v421_v25 = vld [vmem:[%s2397_s4 + $0x120] sm:$0xff] }
  0x54   : > { %974 = vmatpush1.bf16.msra.mxu0 %v1970_v52  ;;  %1015 = vmatpush1.bf16.msra.mxu1 %v1972_v53  ;;  %v468_v12 = vld [vmem:[%s2397_s4 + $0x298] sm:$0xff]  ;;  %v406_v20 = vld [vmem:[%s2397_s4 + $0xa8] sm:$0xff]  ;;  %v1947_v23 = vcombine.high %v389_v17, %v405_v18  ;;  %v437_v26 = vld [vmem:[%s2397_s4 + $0x1a0] sm:$0xff]  ;;  %v1946_v29 = vcombine.low %v389_v17, %v405_v18 }
  0x55   : > { %975 = vmatprep.subr.bf16.mxu0 %v2003_v54  ;;  %1016 = vmatprep.subr.bf16.mxu1 %v2005_v55  ;;  %v2009_v16 = vcombine.high %v452_v11, %v468_v12  ;;  %v2008_v22 = vcombine.low %v452_v11, %v468_v12  ;;  %v1949_v24 = vcombine.high %v390_v19, %v406_v20  ;;  %v422_v27 = vld [vmem:[%s2397_s4 + $0x128] sm:$0xff]  ;;  %v453_v34 = vld [vmem:[%s2397_s4 + $0x220] sm:$0xff]  ;;  %v391_v42 = vld [vmem:[%s2397_s4 + $0x30] sm:$0xff] }
  0x56   : > { %v438_v28 = vld [vmem:[%s2397_s4 + $0x1a8] sm:$0xff]  ;;  %v1948_v30 = vcombine.low %v390_v19, %v406_v20  ;;  %v1979_v31 = vcombine.high %v421_v25, %v437_v26  ;;  %v469_v35 = vld [vmem:[%s2397_s4 + $0x2a0] sm:$0xff]  ;;  %v1978_v38 = vcombine.low %v421_v25, %v437_v26  ;;  %v407_v43 = vld [vmem:[%s2397_s4 + $0xb0] sm:$0xff] }
  0x57   : > { %v1981_v32 = vcombine.high %v422_v27, %v438_v28  ;;  %v454_v36 = vld [vmem:[%s2397_s4 + $0x228] sm:$0xff]  ;;  %v1980_v39 = vcombine.low %v422_v27, %v438_v28  ;;  %v2011_v40 = vcombine.high %v453_v34, %v469_v35  ;;  %v392_v44 = vld [vmem:[%s2397_s4 + $0x38] sm:$0xff]  ;;  %v2010_v46 = vcombine.low %v453_v34, %v469_v35  ;;  %v423_v50 = vld [vmem:[%s2397_s4 + $0x130] sm:$0xff] }
  0x58   : > { %976 = vmatpush1.bf16.msra.mxu0 %v2002_v60  ;;  %1017 = vmatpush1.bf16.msra.mxu1 %v2004_v61  ;;  %v470_v37 = vld [vmem:[%s2397_s4 + $0x2a8] sm:$0xff]  ;;  %v408_v45 = vld [vmem:[%s2397_s4 + $0xb8] sm:$0xff]  ;;  %v1951_v48 = vcombine.high %v391_v42, %v407_v43  ;;  %v439_v51 = vld [vmem:[%s2397_s4 + $0x1b0] sm:$0xff]  ;;  %v1950_v54 = vcombine.low %v391_v42, %v407_v43 }
  0x59   : > { %1053 = vmatprep.subr.bf16.mxu0 %v1943_v62  ;;  %1094 = vmatprep.subr.bf16.mxu1 %v1945_v63  ;;  %v2013_v41 = vcombine.high %v454_v36, %v470_v37  ;;  %v2012_v47 = vcombine.low %v454_v36, %v470_v37  ;;  %v1953_v49 = vcombine.high %v392_v44, %v408_v45  ;;  %v424_v52 = vld [vmem:[%s2397_s4 + $0x138] sm:$0xff]  ;;  %v455_v58 = vld [vmem:[%s2397_s4 + $0x230] sm:$0xff]  ;;  %v393_v2 = vld [vmem:[%s2397_s4 + $0x40] sm:$0xff] }
  0x5a   : > { %v440_v53 = vld [vmem:[%s2397_s4 + $0x1b8] sm:$0xff]  ;;  %v1952_v55 = vcombine.low %v392_v44, %v408_v45  ;;  %v1983_v56 = vcombine.high %v423_v50, %v439_v51  ;;  %v471_v59 = vld [vmem:[%s2397_s4 + $0x2b0] sm:$0xff]  ;;  %v1982_v62 = vcombine.low %v423_v50, %v439_v51  ;;  %v409_v3 = vld [vmem:[%s2397_s4 + $0xc0] sm:$0xff] }
  0x5b   : > { %2034 = vmatmul.mubr.msk.bf16.vlgmr.msra.gmra.mrb[0].mxu0 %vm967_vm0, %v2422_v4  ;;  %2035 = vmatmul.mubr.msk.bf16.vlgmr.msra.gmra.mrb[0].mxu1 %vm967_vm0, %v2422_v4  ;;  %v1985_v57 = vcombine.high %v424_v52, %v440_v53  ;;  %v456_v60 = vld [vmem:[%s2397_s4 + $0x238] sm:$0xff]  ;;  %v1984_v63 = vcombine.low %v424_v52, %v440_v53  ;;  %v2015_v0 = vcombine.high %v455_v58, %v471_v59  ;;  %v425_v11 = vld [vmem:[%s2397_s4 + $0x140] sm:$0xff]  ;;  %v395_v27 = vld [vmem:[%s2397_s4 + $0x50] sm:$0xff] }
  0x5c   : > { %1054 = vmatpush1.bf16.msra.mxu0 %v1942_v5  ;;  %1095 = vmatpush1.bf16.msra.mxu1 %v1944_v6  ;;  %v472_v61 = vld [vmem:[%s2397_s4 + $0x2b8] sm:$0xff]  ;;  %v394_v5 = vld [vmem:[%s2397_s4 + $0x48] sm:$0xff]  ;;  %v1955_v9 = vcombine.high %v393_v2, %v409_v3  ;;  %v441_v12 = vld [vmem:[%s2397_s4 + $0x1c0] sm:$0xff] }
  0x5d   : > { %1055 = vmatprep.subr.bf16.mxu0 %v1975_v7  ;;  %1096 = vmatprep.subr.bf16.mxu1 %v1977_v8  ;;  %v2017_v1 = vcombine.high %v456_v60, %v472_v61  ;;  %v410_v6 = vld [vmem:[%s2397_s4 + $0xc8] sm:$0xff]  ;;  %v2014_v7 = vcombine.low %v455_v58, %v471_v59  ;;  %v2016_v8 = vcombine.low %v456_v60, %v472_v61  ;;  %v457_v19 = vld [vmem:[%s2397_s4 + $0x240] sm:$0xff]  ;;  %v411_v28 = vld [vmem:[%s2397_s4 + $0xd0] sm:$0xff] }
  0x5e   : > { %1085 = vmatprep.mubr.bf16.mxu0 %v2137_v33  ;;  %1126 = vmatprep.mubr.bf16.mxu1 %v2137_v33  ;;  %v1957_v10 = vcombine.high %v394_v5, %v410_v6  ;;  %v1987_v17 = vcombine.high %v425_v11, %v441_v12  ;;  %v473_v20 = vld [vmem:[%s2397_s4 + $0x2c0] sm:$0xff]  ;;  %v1959_v34 = vcombine.high %v395_v27, %v411_v28  ;;  %v427_v36 = vld [vmem:[%s2397_s4 + $0x150] sm:$0xff] }
  0x5f   : > { %v2019_v25 = vcombine.high %v457_v19, %v473_v20  ;;  %v443_v37 = vld [vmem:[%s2397_s4 + $0x1d0] sm:$0xff]  ;;  %v397_v52 = vld [vmem:[%s2397_s4 + $0x60] sm:$0xff] }
  0x60   : > { %1056 = vmatpush1.bf16.msra.mxu0 %v1974_v13  ;;  %1097 = vmatpush1.bf16.msra.mxu1 %v1976_v14  ;;  %v426_v13 = vld [vmem:[%s2397_s4 + $0x148] sm:$0xff]  ;;  %v1991_v42 = vcombine.high %v427_v36, %v443_v37  ;;  %v459_v44 = vld [vmem:[%s2397_s4 + $0x250] sm:$0xff]  ;;  %v413_v53 = vld [vmem:[%s2397_s4 + $0xe0] sm:$0xff] }
  0x61   : > { %1057 = vmatprep.subr.bf16.mxu0 %v2007_v15  ;;  %1098 = vmatprep.subr.bf16.mxu1 %v2009_v16  ;;  %v442_v14 = vld [vmem:[%s2397_s4 + $0x1c8] sm:$0xff]  ;;  %v1954_v15 = vcombine.low %v393_v2, %v409_v3  ;;  %v1956_v16 = vcombine.low %v394_v5, %v410_v6  ;;  %v475_v45 = vld [vmem:[%s2397_s4 + $0x2d0] sm:$0xff]  ;;  %v1963_v58 = vcombine.high %v397_v52, %v413_v53  ;;  %v429_v60 = vld [vmem:[%s2397_s4 + $0x160] sm:$0xff] }
  0x62   : > { %v1989_v18 = vcombine.high %v426_v13, %v442_v14  ;;  %v2023_v50 = vcombine.high %v459_v44, %v475_v45  ;;  %v445_v61 = vld [vmem:[%s2397_s4 + $0x1e0] sm:$0xff] }
  0x63   : > { %v1995_v2 = vcombine.high %v429_v60, %v445_v61  ;;  %v461_v5 = vld [vmem:[%s2397_s4 + $0x260] sm:$0xff] }
  0x64   : > { %1058 = vmatpush1.bf16.msra.mxu0 %v2006_v21  ;;  %1099 = vmatpush1.bf16.msra.mxu1 %v2008_v22  ;;  %v458_v21 = vld [vmem:[%s2397_s4 + $0x248] sm:$0xff]  ;;  %v477_v6 = vld [vmem:[%s2397_s4 + $0x2e0] sm:$0xff] }
  0x65   : > { %1135 = vmatprep.subr.bf16.mxu0 %v1947_v23  ;;  %1176 = vmatprep.subr.bf16.mxu1 %v1949_v24  ;;  %v474_v22 = vld [vmem:[%s2397_s4 + $0x2c8] sm:$0xff]  ;;  %v1986_v23 = vcombine.low %v425_v11, %v441_v12  ;;  %v1988_v24 = vcombine.low %v426_v13, %v442_v14  ;;  %v2027_v11 = vcombine.high %v461_v5, %v477_v6  ;;  %v399_v13 = vld [vmem:[%s2397_s4 + $0x70] sm:$0xff] }
  0x66   : > { %v2021_v26 = vcombine.high %v458_v21, %v474_v22  ;;  %v415_v14 = vld [vmem:[%s2397_s4 + $0xf0] sm:$0xff] }
  0x67   : > { %2036 = vmatmul.mubr.msk.bf16.vlgmr.msra.gmra.mrb[4].mxu0 %vm967_vm0, %v2422_v4  ;;  %2037 = vmatmul.mubr.msk.bf16.vlgmr.msra.gmra.mrb[4].mxu1 %vm967_vm0, %v2422_v4 }
  0x68   : > { %1136 = vmatpush1.bf16.msra.mxu0 %v1946_v29  ;;  %1177 = vmatpush1.bf16.msra.mxu1 %v1948_v30  ;;  %v396_v29 = vld [vmem:[%s2397_s4 + $0x58] sm:$0xff] }
  0x69   : > { %1137 = vmatprep.subr.bf16.mxu0 %v1979_v31  ;;  %1178 = vmatprep.subr.bf16.mxu1 %v1981_v32  ;;  %v412_v30 = vld [vmem:[%s2397_s4 + $0xd8] sm:$0xff]  ;;  %v2018_v31 = vcombine.low %v457_v19, %v473_v20  ;;  %v2020_v32 = vcombine.low %v458_v21, %v474_v22  ;;  %v1967_v19 = vcombine.high %v399_v13, %v415_v14  ;;  %v431_v21 = vld [vmem:[%s2397_s4 + $0x170] sm:$0xff] }
  0x6a   : > { %1167 = vmatprep.mubr.bf16.mxu0 %v2137_v33  ;;  %1208 = vmatprep.mubr.bf16.mxu1 %v2137_v33  ;;  %v1961_v35 = vcombine.high %v396_v29, %v412_v30  ;;  %v447_v22 = vld [vmem:[%s2397_s4 + $0x1f0] sm:$0xff] }
  0x6c   : > { %1138 = vmatpush1.bf16.msra.mxu0 %v1978_v38  ;;  %1179 = vmatpush1.bf16.msra.mxu1 %v1980_v39  ;;  %v428_v38 = vld [vmem:[%s2397_s4 + $0x158] sm:$0xff] }
  0x6d   : > { %1139 = vmatprep.subr.bf16.mxu0 %v2011_v40  ;;  %1180 = vmatprep.subr.bf16.mxu1 %v2013_v41  ;;  %v444_v39 = vld [vmem:[%s2397_s4 + $0x1d8] sm:$0xff]  ;;  %v1958_v40 = vcombine.low %v395_v27, %v411_v28  ;;  %v1960_v41 = vcombine.low %v396_v29, %v412_v30  ;;  %v1999_v27 = vcombine.high %v431_v21, %v447_v22  ;;  %v463_v29 = vld [vmem:[%s2397_s4 + $0x270] sm:$0xff] }
  0x6e   : > { %v1993_v43 = vcombine.high %v428_v38, %v444_v39  ;;  %v479_v30 = vld [vmem:[%s2397_s4 + $0x2f0] sm:$0xff] }
  0x70   : > { %1140 = vmatpush1.bf16.msra.mxu0 %v2010_v46  ;;  %1181 = vmatpush1.bf16.msra.mxu1 %v2012_v47  ;;  %v460_v46 = vld [vmem:[%s2397_s4 + $0x258] sm:$0xff] }
  0x71   : > { %1217 = vmatprep.subr.bf16.mxu0 %v1951_v48  ;;  %1258 = vmatprep.subr.bf16.mxu1 %v1953_v49  ;;  %v476_v47 = vld [vmem:[%s2397_s4 + $0x2d8] sm:$0xff]  ;;  %v1990_v48 = vcombine.low %v427_v36, %v443_v37  ;;  %v1992_v49 = vcombine.low %v428_v38, %v444_v39  ;;  %v2031_v36 = vcombine.high %v463_v29, %v479_v30 }
  0x72   : > { %v2025_v51 = vcombine.high %v460_v46, %v476_v47  ;;  %v2030_v38 = vcombine.low %v463_v29, %v479_v30 }
  0x73   : > { %2038 = vmatmul.mubr.msk.bf16.vlgmr.msra.gmra.mrb[8].mxu0 %vm967_vm0, %v2422_v4  ;;  %2039 = vmatmul.mubr.msk.bf16.vlgmr.msra.gmra.mrb[8].mxu1 %vm967_vm0, %v2422_v4 }
  0x74   : > { %1218 = vmatpush1.bf16.msra.mxu0 %v1950_v54  ;;  %1259 = vmatpush1.bf16.msra.mxu1 %v1952_v55  ;;  %v398_v54 = vld [vmem:[%s2397_s4 + $0x68] sm:$0xff] }
  0x75   : > { %1219 = vmatprep.subr.bf16.mxu0 %v1983_v56  ;;  %1260 = vmatprep.subr.bf16.mxu1 %v1985_v57  ;;  %v414_v55 = vld [vmem:[%s2397_s4 + $0xe8] sm:$0xff]  ;;  %v2022_v56 = vcombine.low %v459_v44, %v475_v45  ;;  %v2024_v57 = vcombine.low %v460_v46, %v476_v47 }
  0x76   : > { %1249 = vmatprep.mubr.bf16.mxu0 %v2137_v33  ;;  %1290 = vmatprep.mubr.bf16.mxu1 %v2137_v33  ;;  %v1965_v59 = vcombine.high %v398_v54, %v414_v55 }
  0x78   : > { %1220 = vmatpush1.bf16.msra.mxu0 %v1982_v62  ;;  %1261 = vmatpush1.bf16.msra.mxu1 %v1984_v63  ;;  %v430_v62 = vld [vmem:[%s2397_s4 + $0x168] sm:$0xff] }
  0x79   : > { %1221 = vmatprep.subr.bf16.mxu0 %v2015_v0  ;;  %1262 = vmatprep.subr.bf16.mxu1 %v2017_v1  ;;  %v446_v63 = vld [vmem:[%s2397_s4 + $0x1e8] sm:$0xff]  ;;  %v1962_v0 = vcombine.low %v397_v52, %v413_v53  ;;  %v1964_v1 = vcombine.low %v398_v54, %v414_v55 }
  0x7a   : > { %v1997_v3 = vcombine.high %v430_v62, %v446_v63 }
  0x7c   : > { %1222 = vmatpush1.bf16.msra.mxu0 %v2014_v7  ;;  %1263 = vmatpush1.bf16.msra.mxu1 %v2016_v8  ;;  %v462_v7 = vld [vmem:[%s2397_s4 + $0x268] sm:$0xff] }
  0x7d   : > { %1299 = vmatprep.subr.bf16.mxu0 %v1955_v9  ;;  %1340 = vmatprep.subr.bf16.mxu1 %v1957_v10  ;;  %v478_v8 = vld [vmem:[%s2397_s4 + $0x2e8] sm:$0xff]  ;;  %v1994_v9 = vcombine.low %v429_v60, %v445_v61  ;;  %v1996_v10 = vcombine.low %v430_v62, %v446_v63 }
  0x7e   : > { %v2029_v12 = vcombine.high %v462_v7, %v478_v8 }
  0x7f   : > { %2040 = vmatmul.mubr.msk.bf16.vlgmr.msra.gmra.mrb[12].mxu0 %vm967_vm0, %v2422_v4  ;;  %2041 = vmatmul.mubr.msk.bf16.vlgmr.msra.gmra.mrb[12].mxu1 %vm967_vm0, %v2422_v4 }
  0x80   : > { %1300 = vmatpush1.bf16.msra.mxu0 %v1954_v15  ;;  %1341 = vmatpush1.bf16.msra.mxu1 %v1956_v16  ;;  %v400_v15 = vld [vmem:[%s2397_s4 + $0x78] sm:$0xff] }
  0x81   : > { %1301 = vmatprep.subr.bf16.mxu0 %v1987_v17  ;;  %1342 = vmatprep.subr.bf16.mxu1 %v1989_v18  ;;  %v416_v16 = vld [vmem:[%s2397_s4 + $0xf8] sm:$0xff]  ;;  %v2026_v17 = vcombine.low %v461_v5, %v477_v6  ;;  %v2028_v18 = vcombine.low %v462_v7, %v478_v8 }
  0x82   : > { %1331 = vmatprep.mubr.bf16.mxu0 %v2137_v33  ;;  %1372 = vmatprep.mubr.bf16.mxu1 %v2137_v33  ;;  %v1969_v20 = vcombine.high %v400_v15, %v416_v16 }
  0x84   : > { %1302 = vmatpush1.bf16.msra.mxu0 %v1986_v23  ;;  %1343 = vmatpush1.bf16.msra.mxu1 %v1988_v24  ;;  %v432_v23 = vld [vmem:[%s2397_s4 + $0x178] sm:$0xff] }
  0x85   : > { %1303 = vmatprep.subr.bf16.mxu0 %v2019_v25  ;;  %1344 = vmatprep.subr.bf16.mxu1 %v2021_v26  ;;  %v448_v24 = vld [vmem:[%s2397_s4 + $0x1f8] sm:$0xff]  ;;  %v1966_v25 = vcombine.low %v399_v13, %v415_v14  ;;  %v1968_v26 = vcombine.low %v400_v15, %v416_v16 }
  0x86   : > { %v2001_v28 = vcombine.high %v432_v23, %v448_v24 }
  0x88   : > { %1304 = vmatpush1.bf16.msra.mxu0 %v2018_v31  ;;  %1345 = vmatpush1.bf16.msra.mxu1 %v2020_v32  ;;  %v464_v31 = vld [vmem:[%s2397_s4 + $0x278] sm:$0xff] }
  0x89   : > { %1381 = vmatprep.subr.bf16.mxu0 %v1959_v34  ;;  %1422 = vmatprep.subr.bf16.mxu1 %v1961_v35  ;;  %v480_v32 = vld [vmem:[%s2397_s4 + $0x2f8] sm:$0xff]  ;;  %v1998_v34 = vcombine.low %v431_v21, %v447_v22  ;;  %v2000_v35 = vcombine.low %v432_v23, %v448_v24 }
  0x8a   : > { %v2033_v37 = vcombine.high %v464_v31, %v480_v32  ;;  %v2032_v39 = vcombine.low %v464_v31, %v480_v32 }
  0x8b   : > { %2042 = vmatmul.mubr.msk.bf16.vlgmr.msra.gmra.mrb[16].mxu0 %vm967_vm0, %v2422_v4  ;;  %2043 = vmatmul.mubr.msk.bf16.vlgmr.msra.gmra.mrb[16].mxu1 %vm967_vm0, %v2422_v4 }
  0x8c   : > { %1382 = vmatpush1.bf16.msra.mxu0 %v1958_v40  ;;  %1423 = vmatpush1.bf16.msra.mxu1 %v1960_v41 }
  0x8d   : > { %1383 = vmatprep.subr.bf16.mxu0 %v1991_v42  ;;  %1424 = vmatprep.subr.bf16.mxu1 %v1993_v43 }
  0x8e   : > { %1413 = vmatprep.mubr.bf16.mxu0 %v2137_v33  ;;  %1454 = vmatprep.mubr.bf16.mxu1 %v2137_v33 }
  0x90   : > { %1384 = vmatpush1.bf16.msra.mxu0 %v1990_v48  ;;  %1425 = vmatpush1.bf16.msra.mxu1 %v1992_v49 }
  0x91   : > { %1385 = vmatprep.subr.bf16.mxu0 %v2023_v50  ;;  %1426 = vmatprep.subr.bf16.mxu1 %v2025_v51 }
  0x94   : > { %1386 = vmatpush1.bf16.msra.mxu0 %v2022_v56  ;;  %1427 = vmatpush1.bf16.msra.mxu1 %v2024_v57 }
  0x95   : > { %1463 = vmatprep.subr.bf16.mxu0 %v1963_v58  ;;  %1504 = vmatprep.subr.bf16.mxu1 %v1965_v59 }
  0x97   : > { %2044 = vmatmul.mubr.msk.bf16.vlgmr.msra.gmra.mrb[20].mxu0 %vm967_vm0, %v2422_v4  ;;  %2045 = vmatmul.mubr.msk.bf16.vlgmr.msra.gmra.mrb[20].mxu1 %vm967_vm0, %v2422_v4 }
  0x98   : > { %1464 = vmatpush1.bf16.msra.mxu0 %v1962_v0  ;;  %1505 = vmatpush1.bf16.msra.mxu1 %v1964_v1 }
  0x99   : > { %1465 = vmatprep.subr.bf16.mxu0 %v1995_v2  ;;  %1506 = vmatprep.subr.bf16.mxu1 %v1997_v3 }
  0x9a   : > { %1495 = vmatprep.mubr.bf16.mxu0 %v2137_v33  ;;  %1536 = vmatprep.mubr.bf16.mxu1 %v2137_v33 }
  0x9c   : > { %1466 = vmatpush1.bf16.msra.mxu0 %v1994_v9  ;;  %1507 = vmatpush1.bf16.msra.mxu1 %v1996_v10 }
  0x9d   : > { %1467 = vmatprep.subr.bf16.mxu0 %v2027_v11  ;;  %1508 = vmatprep.subr.bf16.mxu1 %v2029_v12 }
  0xa0   : > { %1468 = vmatpush1.bf16.msra.mxu0 %v2026_v17  ;;  %1509 = vmatpush1.bf16.msra.mxu1 %v2028_v18 }
  0xa1   : > { %1545 = vmatprep.subr.bf16.mxu0 %v1967_v19  ;;  %1586 = vmatprep.subr.bf16.mxu1 %v1969_v20 }
  0xa3   : > { %2046 = vmatmul.mubr.msk.bf16.vlgmr.msra.gmra.mrb[24].mxu0 %vm967_vm0, %v2422_v4  ;;  %2047 = vmatmul.mubr.msk.bf16.vlgmr.msra.gmra.mrb[24].mxu1 %vm967_vm0, %v2422_v4 }
  0xa4   : > { %1546 = vmatpush1.bf16.msra.mxu0 %v1966_v25  ;;  %1587 = vmatpush1.bf16.msra.mxu1 %v1968_v26 }
  0xa5   : > { %1547 = vmatprep.subr.bf16.mxu0 %v1999_v27  ;;  %1588 = vmatprep.subr.bf16.mxu1 %v2001_v28 }
  0xa6   : > { %1577 = vmatprep.mubr.bf16.mxu0 %v2137_v33  ;;  %1618 = vmatprep.mubr.bf16.mxu1 %v2137_v33 }
  0xa8   : > { %1548 = vmatpush1.bf16.msra.mxu0 %v1998_v34  ;;  %1589 = vmatpush1.bf16.msra.mxu1 %v2000_v35 }
  0xa9   : > { %1549 = vmatprep.subr.bf16.mxu0 %v2031_v36  ;;  %1590 = vmatprep.subr.bf16.mxu1 %v2033_v37 }
  0xac   : > { %1550 = vmatpush1.bf16.msra.mxu0 %v2030_v38  ;;  %1591 = vmatpush1.bf16.msra.mxu1 %v2032_v39 }
  0xaf   : > { %2048 = vmatmul.mubr.msk.bf16.vlgmr.msra.gmra.mrb[28].mxu0 %vm967_vm0, %v2422_v4  ;;  %2049 = vmatmul.mubr.msk.bf16.vlgmr.msra.gmra.mrb[28].mxu1 %vm967_vm0, %v2422_v4 }
  0xc8   : > { %v2548_v40 = vpop.permute.xlu0 %484 }
 0x12e   : > { %v1005_v33 = vpop.f32.mrb[0].mxu0  ;;  %v1046_v42 = vpop.f32.mrb[0].mxu1 }
 0x12f   : > { %v1006_v41 = vadd.f32 %v1005_v33, %v2548_v40  ;;  %v1007_v43 = vpop.f32.mrb[1].mxu0  ;;  %v1047_v44 = vadd.f32 %v1046_v42, %v2548_v40  ;;  %v1048_v46 = vpop.f32.mrb[1].mxu1 }
 0x130   : > { %v1008_v45 = vadd.f32 %v1007_v43, %v2548_v40  ;;  %v1009_v47 = vpop.f32.mrb[2].mxu0  ;;  %v1049_v4 = vadd.f32 %v1048_v46, %v2548_v40  ;;  %v1050_v49 = vpop.f32.mrb[2].mxu1 }
 0x131   : > { %vm1627_vm1 = vcmp.gt.f32.partialorder %v1006_v41, 0.0  ;;  %v1659_v48 = vmul.f32 0.2, %v1006_v41  ;;  %v1010_v50 = vpop.f32.mrb[3].mxu0  ;;  %vm1629_vm2 = vcmp.gt.f32.partialorder %v1047_v44, 0.0  ;;  %v1051_v55 = vpop.f32.mrb[3].mxu1 }
 0x132   : > { %v1661_v51 = vmul.f32 0.2, %v1047_v44  ;;  %vm1628_vm3 = vcmp.gt.f32.partialorder %v1008_v45, 0.0  ;;  %v1660_v52 = vmul.f32 0.2, %v1008_v45  ;;  %vm1630_vm4 = vcmp.gt.f32.partialorder %v1049_v4, 0.0 }
 0x133   : > { %v1691_v53 = vsel %vm1627_vm1, %v1006_v41, %v1659_v48  ;;  %v1662_v54 = vmul.f32 0.2, %v1049_v4 }
 0x134   : > { %v1693_v56 = vsel %vm1629_vm2, %v1047_v44, %v1661_v51  ;;  %v1692_v57 = vsel %vm1628_vm3, %v1008_v45, %v1660_v52 }
 0x135   : > { %v2069_v58 = vpack.c.bf16 %v1692_v57, %v1691_v53  ;;  %v1694_v59 = vsel %vm1630_vm4, %v1049_v4, %v1662_v54 }
 0x136   : > { %v2070_v60 = vpack.c.bf16 %v1694_v59, %v1693_v56 }
 0x137   : > { %1851 = vst [vmem:[%s2557_s11] sm:$0xff] %v2069_v58 }
 0x138   : > { %1852 = vst [vmem:[%s2557_s11 + $0x8] sm:$0xff] %v2070_v60 }
 0x13a   : > { %v1087_v61 = vpop.f32.mrb[4].mxu0  ;;  %v1128_v63 = vpop.f32.mrb[4].mxu1 }
 0x13b   : > { %v1088_v62 = vadd.f32 %v1087_v61, %v2548_v40  ;;  %v1089_v0 = vpop.f32.mrb[5].mxu0  ;;  %v1129_v1 = vadd.f32 %v1128_v63, %v2548_v40  ;;  %v1130_v3 = vpop.f32.mrb[5].mxu1 }
 0x13c   : > { %v1090_v2 = vadd.f32 %v1089_v0, %v2548_v40  ;;  %v1091_v5 = vpop.f32.mrb[6].mxu0  ;;  %v1131_v7 = vadd.f32 %v1130_v3, %v2548_v40  ;;  %v1132_v8 = vpop.f32.mrb[6].mxu1 }
 0x13d   : > { %vm1631_vm5 = vcmp.gt.f32.partialorder %v1088_v62, 0.0  ;;  %v1663_v6 = vmul.f32 0.2, %v1088_v62  ;;  %v1092_v9 = vpop.f32.mrb[7].mxu0  ;;  %vm1633_vm6 = vcmp.gt.f32.partialorder %v1129_v1, 0.0  ;;  %v1133_v14 = vpop.f32.mrb[7].mxu1 }
 0x13e   : > { %v1665_v10 = vmul.f32 0.2, %v1129_v1  ;;  %vm1632_vm7 = vcmp.gt.f32.partialorder %v1090_v2, 0.0  ;;  %v1664_v11 = vmul.f32 0.2, %v1090_v2  ;;  %vm1634_vm8 = vcmp.gt.f32.partialorder %v1131_v7, 0.0 }
 0x13f   : > { %v1695_v12 = vsel %vm1631_vm5, %v1088_v62, %v1663_v6  ;;  %v1666_v13 = vmul.f32 0.2, %v1131_v7 }
 0x140   : > { %v1697_v15 = vsel %vm1633_vm6, %v1129_v1, %v1665_v10  ;;  %v1696_v16 = vsel %vm1632_vm7, %v1090_v2, %v1664_v11 }
 0x141   : > { %v2071_v17 = vpack.c.bf16 %v1696_v16, %v1695_v12  ;;  %v1698_v18 = vsel %vm1634_vm8, %v1131_v7, %v1666_v13 }
 0x142   : > { %v2072_v19 = vpack.c.bf16 %v1698_v18, %v1697_v15 }
 0x143   : > { %1853 = vst [vmem:[%s2557_s11 + $0x10] sm:$0xff] %v2071_v17 }
 0x144   : > { %1854 = vst [vmem:[%s2557_s11 + $0x18] sm:$0xff] %v2072_v19 }
 0x146   : > { %v1169_v20 = vpop.f32.mrb[8].mxu0  ;;  %v1210_v22 = vpop.f32.mrb[8].mxu1 }
 0x147   : > { %v1170_v21 = vadd.f32 %v1169_v20, %v2548_v40  ;;  %v1171_v23 = vpop.f32.mrb[9].mxu0  ;;  %v1211_v24 = vadd.f32 %v1210_v22, %v2548_v40  ;;  %v1212_v26 = vpop.f32.mrb[9].mxu1 }
 0x148   : > { %v1172_v25 = vadd.f32 %v1171_v23, %v2548_v40  ;;  %v1173_v27 = vpop.f32.mrb[10].mxu0  ;;  %v1213_v29 = vadd.f32 %v1212_v26, %v2548_v40  ;;  %v1214_v30 = vpop.f32.mrb[10].mxu1 }
 0x149   : > { %vm1635_vm9 = vcmp.gt.f32.partialorder %v1170_v21, 0.0  ;;  %v1667_v28 = vmul.f32 0.2, %v1170_v21  ;;  %v1174_v31 = vpop.f32.mrb[11].mxu0  ;;  %vm1637_vm10 = vcmp.gt.f32.partialorder %v1211_v24, 0.0  ;;  %v1215_v37 = vpop.f32.mrb[11].mxu1 }
 0x14a   : > { %v1669_v32 = vmul.f32 0.2, %v1211_v24  ;;  %vm1636_vm11 = vcmp.gt.f32.partialorder %v1172_v25, 0.0  ;;  %v1668_v34 = vmul.f32 0.2, %v1172_v25  ;;  %vm1638_vm12 = vcmp.gt.f32.partialorder %v1213_v29, 0.0 }
 0x14b   : > { %v1699_v35 = vsel %vm1635_vm9, %v1170_v21, %v1667_v28  ;;  %v1670_v36 = vmul.f32 0.2, %v1213_v29 }
 0x14c   : > { %v1701_v38 = vsel %vm1637_vm10, %v1211_v24, %v1669_v32  ;;  %v1700_v39 = vsel %vm1636_vm11, %v1172_v25, %v1668_v34 }
 0x14d   : > { %v2073_v33 = vpack.c.bf16 %v1700_v39, %v1699_v35  ;;  %v1702_v41 = vsel %vm1638_vm12, %v1213_v29, %v1670_v36 }
 0x14e   : > { %v2074_v42 = vpack.c.bf16 %v1702_v41, %v1701_v38 }
 0x14f   : > { %1855 = vst [vmem:[%s2557_s11 + $0x20] sm:$0xff] %v2073_v33 }
 0x150   : > { %1856 = vst [vmem:[%s2557_s11 + $0x28] sm:$0xff] %v2074_v42 }
 0x152   : > { %v1251_v43 = vpop.f32.mrb[12].mxu0  ;;  %v1292_v45 = vpop.f32.mrb[12].mxu1 }
 0x153   : > { %v1252_v44 = vadd.f32 %v1251_v43, %v2548_v40  ;;  %v1253_v46 = vpop.f32.mrb[13].mxu0  ;;  %v1293_v47 = vadd.f32 %v1292_v45, %v2548_v40  ;;  %v1294_v4 = vpop.f32.mrb[13].mxu1 }
 0x154   : > { %v1254_v48 = vadd.f32 %v1253_v46, %v2548_v40  ;;  %v1255_v49 = vpop.f32.mrb[14].mxu0  ;;  %v1295_v51 = vadd.f32 %v1294_v4, %v2548_v40  ;;  %v1296_v52 = vpop.f32.mrb[14].mxu1 }
 0x155   : > { %vm1639_vm13 = vcmp.gt.f32.partialorder %v1252_v44, 0.0  ;;  %v1671_v50 = vmul.f32 0.2, %v1252_v44  ;;  %v1256_v53 = vpop.f32.mrb[15].mxu0  ;;  %vm1641_vm14 = vcmp.gt.f32.partialorder %v1293_v47, 0.0  ;;  %v1297_v58 = vpop.f32.mrb[15].mxu1 }
 0x156   : > { %v1673_v54 = vmul.f32 0.2, %v1293_v47  ;;  %vm1640_vm15 = vcmp.gt.f32.partialorder %v1254_v48, 0.0  ;;  %v1672_v55 = vmul.f32 0.2, %v1254_v48  ;;  %vm1642_vm0 = vcmp.gt.f32.partialorder %v1295_v51, 0.0 }
 0x157   : > { %v1703_v56 = vsel %vm1639_vm13, %v1252_v44, %v1671_v50  ;;  %v1674_v57 = vmul.f32 0.2, %v1295_v51 }
 0x158   : > { %v1705_v59 = vsel %vm1641_vm14, %v1293_v47, %v1673_v54  ;;  %v1704_v60 = vsel %vm1640_vm15, %v1254_v48, %v1672_v55 }
 0x159   : > { %v2075_v61 = vpack.c.bf16 %v1704_v60, %v1703_v56  ;;  %v1706_v62 = vsel %vm1642_vm0, %v1295_v51, %v1674_v57 }
 0x15a   : > { %v2076_v63 = vpack.c.bf16 %v1706_v62, %v1705_v59 }
 0x15b   : > { %1857 = vst [vmem:[%s2557_s11 + $0x30] sm:$0xff] %v2075_v61 }
 0x15c   : > { %1858 = vst [vmem:[%s2557_s11 + $0x38] sm:$0xff] %v2076_v63 }
 0x15e   : > { %v1333_v0 = vpop.f32.mrb[16].mxu0  ;;  %v1374_v2 = vpop.f32.mrb[16].mxu1 }
 0x15f   : > { %v1334_v1 = vadd.f32 %v1333_v0, %v2548_v40  ;;  %v1335_v3 = vpop.f32.mrb[17].mxu0  ;;  %v1375_v5 = vadd.f32 %v1374_v2, %v2548_v40  ;;  %v1376_v7 = vpop.f32.mrb[17].mxu1 }
 0x160   : > { %v1336_v6 = vadd.f32 %v1335_v3, %v2548_v40  ;;  %v1337_v8 = vpop.f32.mrb[18].mxu0  ;;  %v1377_v10 = vadd.f32 %v1376_v7, %v2548_v40  ;;  %v1378_v11 = vpop.f32.mrb[18].mxu1 }
 0x161   : > { %vm1643_vm1 = vcmp.gt.f32.partialorder %v1334_v1, 0.0  ;;  %v1675_v9 = vmul.f32 0.2, %v1334_v1  ;;  %v1338_v12 = vpop.f32.mrb[19].mxu0  ;;  %vm1645_vm2 = vcmp.gt.f32.partialorder %v1375_v5, 0.0  ;;  %v1379_v17 = vpop.f32.mrb[19].mxu1 }
 0x162   : > { %v1677_v13 = vmul.f32 0.2, %v1375_v5  ;;  %vm1644_vm3 = vcmp.gt.f32.partialorder %v1336_v6, 0.0  ;;  %v1676_v14 = vmul.f32 0.2, %v1336_v6  ;;  %vm1646_vm4 = vcmp.gt.f32.partialorder %v1377_v10, 0.0 }
 0x163   : > { %v1707_v15 = vsel %vm1643_vm1, %v1334_v1, %v1675_v9  ;;  %v1678_v16 = vmul.f32 0.2, %v1377_v10 }
 0x164   : > { %v1709_v18 = vsel %vm1645_vm2, %v1375_v5, %v1677_v13  ;;  %v1708_v19 = vsel %vm1644_vm3, %v1336_v6, %v1676_v14 }
 0x165   : > { %v2077_v20 = vpack.c.bf16 %v1708_v19, %v1707_v15  ;;  %v1710_v21 = vsel %vm1646_vm4, %v1377_v10, %v1678_v16 }
 0x166   : > { %v2078_v22 = vpack.c.bf16 %v1710_v21, %v1709_v18 }
 0x167   : > { %1859 = vst [vmem:[%s2557_s11 + $0x40] sm:$0xff] %v2077_v20 }
 0x168   : > { %1860 = vst [vmem:[%s2557_s11 + $0x48] sm:$0xff] %v2078_v22 }
 0x16a   : > { %v1415_v23 = vpop.f32.mrb[20].mxu0  ;;  %v1456_v25 = vpop.f32.mrb[20].mxu1 }
 0x16b   : > { %v1416_v24 = vadd.f32 %v1415_v23, %v2548_v40  ;;  %v1417_v26 = vpop.f32.mrb[21].mxu0  ;;  %v1457_v27 = vadd.f32 %v1456_v25, %v2548_v40  ;;  %v1458_v29 = vpop.f32.mrb[21].mxu1 }
 0x16c   : > { %v1418_v28 = vadd.f32 %v1417_v26, %v2548_v40  ;;  %v1419_v30 = vpop.f32.mrb[22].mxu0  ;;  %v1459_v32 = vadd.f32 %v1458_v29, %v2548_v40  ;;  %v1460_v34 = vpop.f32.mrb[22].mxu1 }
 0x16d   : > { %vm1647_vm5 = vcmp.gt.f32.partialorder %v1416_v24, 0.0  ;;  %v1679_v31 = vmul.f32 0.2, %v1416_v24  ;;  %v1420_v35 = vpop.f32.mrb[23].mxu0  ;;  %vm1649_vm6 = vcmp.gt.f32.partialorder %v1457_v27, 0.0  ;;  %v1461_v33 = vpop.f32.mrb[23].mxu1 }
 0x16e   : > { %v1681_v36 = vmul.f32 0.2, %v1457_v27  ;;  %vm1648_vm7 = vcmp.gt.f32.partialorder %v1418_v28, 0.0  ;;  %v1680_v37 = vmul.f32 0.2, %v1418_v28  ;;  %vm1650_vm8 = vcmp.gt.f32.partialorder %v1459_v32, 0.0 }
 0x16f   : > { %v1711_v38 = vsel %vm1647_vm5, %v1416_v24, %v1679_v31  ;;  %v1682_v39 = vmul.f32 0.2, %v1459_v32 }
 0x170   : > { %v1713_v41 = vsel %vm1649_vm6, %v1457_v27, %v1681_v36  ;;  %v1712_v42 = vsel %vm1648_vm7, %v1418_v28, %v1680_v37 }
 0x171   : > { %v2079_v43 = vpack.c.bf16 %v1712_v42, %v1711_v38  ;;  %v1714_v44 = vsel %vm1650_vm8, %v1459_v32, %v1682_v39 }
 0x172   : > { %v2080_v45 = vpack.c.bf16 %v1714_v44, %v1713_v41 }
 0x173   : > { %1861 = vst [vmem:[%s2557_s11 + $0x50] sm:$0xff] %v2079_v43 }
 0x174   : > { %1862 = vst [vmem:[%s2557_s11 + $0x58] sm:$0xff] %v2080_v45 }
 0x176   : > { %v1497_v46 = vpop.f32.mrb[24].mxu0  ;;  %v1538_v48 = vpop.f32.mrb[24].mxu1 }
 0x177   : > { %v1498_v47 = vadd.f32 %v1497_v46, %v2548_v40  ;;  %v1499_v4 = vpop.f32.mrb[25].mxu0  ;;  %v1539_v49 = vadd.f32 %v1538_v48, %v2548_v40  ;;  %v1540_v51 = vpop.f32.mrb[25].mxu1 }
 0x178   : > { %v1500_v50 = vadd.f32 %v1499_v4, %v2548_v40  ;;  %v1501_v52 = vpop.f32.mrb[26].mxu0  ;;  %v1541_v54 = vadd.f32 %v1540_v51, %v2548_v40  ;;  %v1542_v55 = vpop.f32.mrb[26].mxu1 }
 0x179   : > { %vm1651_vm9 = vcmp.gt.f32.partialorder %v1498_v47, 0.0  ;;  %v1683_v53 = vmul.f32 0.2, %v1498_v47  ;;  %v1502_v56 = vpop.f32.mrb[27].mxu0  ;;  %vm1653_vm10 = vcmp.gt.f32.partialorder %v1539_v49, 0.0  ;;  %v1543_v61 = vpop.f32.mrb[27].mxu1 }
 0x17a   : > { %v1685_v57 = vmul.f32 0.2, %v1539_v49  ;;  %vm1652_vm11 = vcmp.gt.f32.partialorder %v1500_v50, 0.0  ;;  %v1684_v58 = vmul.f32 0.2, %v1500_v50  ;;  %vm1654_vm12 = vcmp.gt.f32.partialorder %v1541_v54, 0.0 }
 0x17b   : > { %v1715_v59 = vsel %vm1651_vm9, %v1498_v47, %v1683_v53  ;;  %v1686_v60 = vmul.f32 0.2, %v1541_v54 }
 0x17c   : > { %v1717_v62 = vsel %vm1653_vm10, %v1539_v49, %v1685_v57  ;;  %v1716_v63 = vsel %vm1652_vm11, %v1500_v50, %v1684_v58 }
 0x17d   : > { %v2081_v0 = vpack.c.bf16 %v1716_v63, %v1715_v59  ;;  %v1718_v1 = vsel %vm1654_vm12, %v1541_v54, %v1686_v60 }
 0x17e   : > { %v2082_v2 = vpack.c.bf16 %v1718_v1, %v1717_v62 }
 0x17f   : > { %1863 = vst [vmem:[%s2557_s11 + $0x60] sm:$0xff] %v2081_v0 }
 0x180   : > { %1864 = vst [vmem:[%s2557_s11 + $0x68] sm:$0xff] %v2082_v2 }
 0x182   : > { %v1579_v3 = vpop.f32.mrb[28].mxu0  ;;  %v1620_v6 = vpop.f32.mrb[28].mxu1 }
 0x183   : > { %v1580_v5 = vadd.f32 %v1579_v3, %v2548_v40  ;;  %v1581_v7 = vpop.f32.mrb[29].mxu0  ;;  %v1621_v8 = vadd.f32 %v1620_v6, %v2548_v40  ;;  %v1622_v10 = vpop.f32.mrb[29].mxu1 }
 0x184   : > { %v1582_v9 = vadd.f32 %v1581_v7, %v2548_v40  ;;  %v1583_v11 = vpop.f32.mrb[30].mxu0  ;;  %v1623_v13 = vadd.f32 %v1622_v10, %v2548_v40  ;;  %v1624_v14 = vpop.f32.mrb[30].mxu1 }
 0x185   : > { %vm1655_vm13 = vcmp.gt.f32.partialorder %v1580_v5, 0.0  ;;  %v1687_v12 = vmul.f32 0.2, %v1580_v5  ;;  %v1584_v15 = vpop.f32.mrb[31].mxu0  ;;  %vm1657_vm14 = vcmp.gt.f32.partialorder %v1621_v8, 0.0  ;;  %v1625_v20 = vpop.f32.mrb[31].mxu1 }
 0x186   : > { %v1689_v16 = vmul.f32 0.2, %v1621_v8  ;;  %vm1656_vm15 = vcmp.gt.f32.partialorder %v1582_v9, 0.0  ;;  %v1688_v17 = vmul.f32 0.2, %v1582_v9  ;;  %vm1658_vm0 = vcmp.gt.f32.partialorder %v1623_v13, 0.0 }
 0x187   : > { %v1719_v18 = vsel %vm1655_vm13, %v1580_v5, %v1687_v12  ;;  %v1690_v19 = vmul.f32 0.2, %v1623_v13 }
 0x188   : > { %v1721_v21 = vsel %vm1657_vm14, %v1621_v8, %v1689_v16  ;;  %v1720_v22 = vsel %vm1656_vm15, %v1582_v9, %v1688_v17 }
 0x189   : > { %v2083_v23 = vpack.c.bf16 %v1720_v22, %v1719_v18  ;;  %v1722_v24 = vsel %vm1658_vm0, %v1623_v13, %v1690_v19 }
 0x18a   : > { %v2084_v25 = vpack.c.bf16 %v1722_v24, %v1721_v21 }
 0x18b   : > { %1865 = vst [vmem:[%s2557_s11 + $0x70] sm:$0xff] %v2083_v23 }
 0x18c   : > { %1866 = vst [vmem:[%s2557_s11 + $0x78] sm:$0xff] %v2084_v25 }
 0x18d PF: > { %p10_p9 = scmp.ge.s32.totalorder %s2175_s16, 4   ;;  %s2617_s12 = smov %s2131_s13 }
 0x18e   : > { %s2618_s13 = smov %s2184_s19  ;;  %s2619_s14 = smov %s2175_s16 }
 0x18f   :  { %12 = sbr.rel (!%p10_p9) target bundleno = 2 (0x2), region = 90 }

// kernel: discriminator_forward.6
= control target key start
LH: loop header
LB: loop body
LE: loop exit
PB: predicated region body
PF: predicated region fallthrough
CT: control target
= control target key end

     0   :  { %s1261_s12 = smov 0   ;;  %s1263_s13 = smov 0   ;;  %s1571_s0 = inlined_call_operand.vmem [shape: bf16[16,128], index: 0, kind: input, shape index: {}]   ;;  %s1572_s1 = inlined_call_operand.vmem [shape: bf16[128,2048], index: 1, kind: input, shape index: {}]   ;;  %s1573_s2 = inlined_call_operand.vmem [shape: f32[16,1], index: 2, kind: input, shape index: {}]   ;;  %s1574_s3 = inlined_call_operand.vmem [shape: bf16[16,2048], index: 3, kind: output, shape index: {}]  }
   0x1   :  { %s1265_s14 = smov 0  }
   0x2 LB: > { %s1091_s15 = sadd.s32 4294967295, %s1238_s14   ;;  %s1278_s16 = sadd.s32 1, %s1238_s14   ;;  %s1238_s14 = sphi %s1265_s14, %s1578_s14   ;;  %s1234_s13 = sphi %s1263_s13, %s1577_s13   ;;  %s1230_s12 = sphi %s1261_s12, %s1576_s12  }
   0x3   : > { %s38_s17 = ssub.s32 %s1238_s14, %s1278_s16  ;;  %s41_s18 = sadd.s32 1, %s1234_s13 }
   0x4   : > { %p39_p0 = scmp.eq.s32.totalorder %s38_s17, 0  ;;  %p48_p1 = scmp.ne.s32.totalorder %s1234_s13, %s1230_s12 }
   0x5   : > { %p49_p2 = scmp.eq.s32.totalorder %s1238_s14, 0  ;;  %p99_p3 = scmp.eq.s32.totalorder %s1091_s15, 1 }
   0x6   : > { %s1289_s19 = scalar_select %p39_p0, %s1234_s13, %s41_s18  }
   0x7   : > { %p50_p4 = por %p49_p2, %p48_p1  ;;  %p1291_p5 = por %p99_p3, %p48_p1 }
   0x8   : > { %p1094_p6 = scmp.ge.s32.totalorder %s1238_s14, 2 }
   0xa   : > { %127 = sbr.rel (%p1094_p6) target bundleno = 53 (0x35), region = 24 }
  0x11   : > { %130 = sbr.rel (!%p50_p4) target bundleno = 53 (0x35), region = 28  ;;  %s132_s21 = sand.u32 (%p50_p4), 1, %s1234_s13  }
  0x12   : > { %s1179_s22 = sshll.u32 (%p50_p4), %s1238_s14, 5  ;;  %s1095_s23 = sshll.u32 (%p50_p4), %s132_s21, 9 }
  0x13   : > { %s1301_s26 = scalar_lea.vmem (%p50_p4), %s1572_s1, %s1179_s22  ;;  %s1306_s27 = scalar_lea.vmem (%p50_p4), [#allocation2], %s1095_s23 }
  0x14   : > { %v150_v0 = vld [vmem:[%s1301_s26] sm:$0xff] (%p50_p4)  ;;  %v152_v1 = vld [vmem:[%s1301_s26 + $0x8] sm:$0xff] (%p50_p4)  ;;  %v154_v2 = vld [vmem:[%s1301_s26 + $0x10] sm:$0xff] (%p50_p4) }
  0x15   : > { %151 = vst [vmem:[%s1306_s27] sm:$0xff] (%p50_p4), %v150_v0  ;;  %153 = vst [vmem:[%s1306_s27 + $0x8] sm:$0xff] (%p50_p4), %v152_v1  ;;  %v156_v3 = vld [vmem:[%s1301_s26 + $0x18] sm:$0xff] (%p50_p4)  ;;  %v158_v4 = vld [vmem:[%s1301_s26 + $0x40] sm:$0xff] (%p50_p4) }
  0x16   : > { %155 = vst [vmem:[%s1306_s27 + $0x10] sm:$0xff] (%p50_p4), %v154_v2  ;;  %v160_v5 = vld [vmem:[%s1301_s26 + $0x48] sm:$0xff] (%p50_p4)  ;;  %157 = vst [vmem:[%s1306_s27 + $0x18] sm:$0xff] (%p50_p4), %v156_v3  ;;  %v162_v6 = vld [vmem:[%s1301_s26 + $0x50] sm:$0xff] (%p50_p4) }
  0x17   : > { %159 = vst [vmem:[%s1306_s27 + $0x20] sm:$0xff] (%p50_p4), %v158_v4  ;;  %161 = vst [vmem:[%s1306_s27 + $0x28] sm:$0xff] (%p50_p4), %v160_v5  ;;  %v164_v7 = vld [vmem:[%s1301_s26 + $0x58] sm:$0xff] (%p50_p4)  ;;  %v166_v8 = vld [vmem:[%s1301_s26 + $0x80] sm:$0xff] (%p50_p4) }
  0x18   : > { %163 = vst [vmem:[%s1306_s27 + $0x30] sm:$0xff] %v162_v6  ;;  %165 = vst [vmem:[%s1306_s27 + $0x38] sm:$0xff] %v164_v7  ;;  %v168_v9 = vld [vmem:[%s1301_s26 + $0x88] sm:$0xff]  ;;  %v170_v10 = vld [vmem:[%s1301_s26 + $0x90] sm:$0xff] }
  0x19   : > { %167 = vst [vmem:[%s1306_s27 + $0x40] sm:$0xff] %v166_v8  ;;  %v172_v11 = vld [vmem:[%s1301_s26 + $0x98] sm:$0xff]  ;;  %169 = vst [vmem:[%s1306_s27 + $0x48] sm:$0xff] %v168_v9  ;;  %v174_v12 = vld [vmem:[%s1301_s26 + $0xc0] sm:$0xff] }
  0x1a   : > { %171 = vst [vmem:[%s1306_s27 + $0x50] sm:$0xff] %v170_v10  ;;  %173 = vst [vmem:[%s1306_s27 + $0x58] sm:$0xff] %v172_v11  ;;  %v176_v13 = vld [vmem:[%s1301_s26 + $0xc8] sm:$0xff]  ;;  %v178_v14 = vld [vmem:[%s1301_s26 + $0xd0] sm:$0xff] }
  0x1b   : > { %175 = vst [vmem:[%s1306_s27 + $0x60] sm:$0xff] %v174_v12  ;;  %177 = vst [vmem:[%s1306_s27 + $0x68] sm:$0xff] %v176_v13  ;;  %v180_v15 = vld [vmem:[%s1301_s26 + $0xd8] sm:$0xff]  ;;  %v182_v16 = vld [vmem:[%s1301_s26 + $0x100] sm:$0xff] }
  0x1c   : > { %179 = vst [vmem:[%s1306_s27 + $0x70] sm:$0xff] %v178_v14  ;;  %v184_v17 = vld [vmem:[%s1301_s26 + $0x108] sm:$0xff]  ;;  %181 = vst [vmem:[%s1306_s27 + $0x78] sm:$0xff] %v180_v15  ;;  %v186_v18 = vld [vmem:[%s1301_s26 + $0x110] sm:$0xff] }
  0x1d   : > { %183 = vst [vmem:[%s1306_s27 + $0x80] sm:$0xff] %v182_v16  ;;  %185 = vst [vmem:[%s1306_s27 + $0x88] sm:$0xff] %v184_v17  ;;  %v188_v19 = vld [vmem:[%s1301_s26 + $0x118] sm:$0xff]  ;;  %v190_v20 = vld [vmem:[%s1301_s26 + $0x140] sm:$0xff] }
  0x1e   : > { %187 = vst [vmem:[%s1306_s27 + $0x90] sm:$0xff] %v186_v18  ;;  %189 = vst [vmem:[%s1306_s27 + $0x98] sm:$0xff] %v188_v19  ;;  %v192_v21 = vld [vmem:[%s1301_s26 + $0x148] sm:$0xff]  ;;  %v194_v22 = vld [vmem:[%s1301_s26 + $0x150] sm:$0xff] }
  0x1f   : > { %191 = vst [vmem:[%s1306_s27 + $0xa0] sm:$0xff] %v190_v20  ;;  %v196_v23 = vld [vmem:[%s1301_s26 + $0x158] sm:$0xff]  ;;  %193 = vst [vmem:[%s1306_s27 + $0xa8] sm:$0xff] %v192_v21  ;;  %v198_v24 = vld [vmem:[%s1301_s26 + $0x180] sm:$0xff] }
  0x20   : > { %195 = vst [vmem:[%s1306_s27 + $0xb0] sm:$0xff] %v194_v22  ;;  %197 = vst [vmem:[%s1306_s27 + $0xb8] sm:$0xff] %v196_v23  ;;  %v200_v25 = vld [vmem:[%s1301_s26 + $0x188] sm:$0xff]  ;;  %v202_v26 = vld [vmem:[%s1301_s26 + $0x190] sm:$0xff] }
  0x21   : > { %199 = vst [vmem:[%s1306_s27 + $0xc0] sm:$0xff] %v198_v24  ;;  %201 = vst [vmem:[%s1306_s27 + $0xc8] sm:$0xff] %v200_v25  ;;  %v204_v27 = vld [vmem:[%s1301_s26 + $0x198] sm:$0xff]  ;;  %v206_v28 = vld [vmem:[%s1301_s26 + $0x1c0] sm:$0xff] }
  0x22   : > { %203 = vst [vmem:[%s1306_s27 + $0xd0] sm:$0xff] %v202_v26  ;;  %v208_v29 = vld [vmem:[%s1301_s26 + $0x1c8] sm:$0xff]  ;;  %205 = vst [vmem:[%s1306_s27 + $0xd8] sm:$0xff] %v204_v27  ;;  %v210_v30 = vld [vmem:[%s1301_s26 + $0x1d0] sm:$0xff] }
  0x23   : > { %207 = vst [vmem:[%s1306_s27 + $0xe0] sm:$0xff] %v206_v28  ;;  %209 = vst [vmem:[%s1306_s27 + $0xe8] sm:$0xff] %v208_v29  ;;  %v212_v31 = vld [vmem:[%s1301_s26 + $0x1d8] sm:$0xff]  ;;  %v214_v32 = vld [vmem:[%s1301_s26 + $0x200] sm:$0xff] }
  0x24   : > { %211 = vst [vmem:[%s1306_s27 + $0xf0] sm:$0xff] %v210_v30  ;;  %213 = vst [vmem:[%s1306_s27 + $0xf8] sm:$0xff] %v212_v31  ;;  %v216_v33 = vld [vmem:[%s1301_s26 + $0x208] sm:$0xff]  ;;  %v218_v34 = vld [vmem:[%s1301_s26 + $0x210] sm:$0xff] }
  0x25   : > { %215 = vst [vmem:[%s1306_s27 + $0x100] sm:$0xff] %v214_v32  ;;  %v220_v35 = vld [vmem:[%s1301_s26 + $0x218] sm:$0xff]  ;;  %217 = vst [vmem:[%s1306_s27 + $0x108] sm:$0xff] %v216_v33  ;;  %v222_v36 = vld [vmem:[%s1301_s26 + $0x240] sm:$0xff] }
  0x26   : > { %219 = vst [vmem:[%s1306_s27 + $0x110] sm:$0xff] %v218_v34  ;;  %221 = vst [vmem:[%s1306_s27 + $0x118] sm:$0xff] %v220_v35  ;;  %v224_v37 = vld [vmem:[%s1301_s26 + $0x248] sm:$0xff]  ;;  %v226_v38 = vld [vmem:[%s1301_s26 + $0x250] sm:$0xff] }
  0x27   : > { %223 = vst [vmem:[%s1306_s27 + $0x120] sm:$0xff] %v222_v36  ;;  %225 = vst [vmem:[%s1306_s27 + $0x128] sm:$0xff] %v224_v37  ;;  %v228_v39 = vld [vmem:[%s1301_s26 + $0x258] sm:$0xff]  ;;  %v230_v40 = vld [vmem:[%s1301_s26 + $0x280] sm:$0xff] }
  0x28   : > { %227 = vst [vmem:[%s1306_s27 + $0x130] sm:$0xff] %v226_v38  ;;  %v232_v41 = vld [vmem:[%s1301_s26 + $0x288] sm:$0xff]  ;;  %229 = vst [vmem:[%s1306_s27 + $0x138] sm:$0xff] %v228_v39  ;;  %v234_v42 = vld [vmem:[%s1301_s26 + $0x290] sm:$0xff] }
  0x29   : > { %231 = vst [vmem:[%s1306_s27 + $0x140] sm:$0xff] %v230_v40  ;;  %233 = vst [vmem:[%s1306_s27 + $0x148] sm:$0xff] %v232_v41  ;;  %v236_v43 = vld [vmem:[%s1301_s26 + $0x298] sm:$0xff]  ;;  %v238_v44 = vld [vmem:[%s1301_s26 + $0x2c0] sm:$0xff] }
  0x2a   : > { %235 = vst [vmem:[%s1306_s27 + $0x150] sm:$0xff] %v234_v42  ;;  %237 = vst [vmem:[%s1306_s27 + $0x158] sm:$0xff] %v236_v43  ;;  %v240_v45 = vld [vmem:[%s1301_s26 + $0x2c8] sm:$0xff]  ;;  %v242_v46 = vld [vmem:[%s1301_s26 + $0x2d0] sm:$0xff] }
  0x2b   : > { %239 = vst [vmem:[%s1306_s27 + $0x160] sm:$0xff] %v238_v44  ;;  %v244_v47 = vld [vmem:[%s1301_s26 + $0x2d8] sm:$0xff]  ;;  %241 = vst [vmem:[%s1306_s27 + $0x168] sm:$0xff] %v240_v45  ;;  %v246_v48 = vld [vmem:[%s1301_s26 + $0x300] sm:$0xff] }
  0x2c   : > { %243 = vst [vmem:[%s1306_s27 + $0x170] sm:$0xff] %v242_v46  ;;  %245 = vst [vmem:[%s1306_s27 + $0x178] sm:$0xff] %v244_v47  ;;  %v248_v49 = vld [vmem:[%s1301_s26 + $0x308] sm:$0xff]  ;;  %v250_v50 = vld [vmem:[%s1301_s26 + $0x310] sm:$0xff] }
  0x2d   : > { %247 = vst [vmem:[%s1306_s27 + $0x180] sm:$0xff] %v246_v48  ;;  %249 = vst [vmem:[%s1306_s27 + $0x188] sm:$0xff] %v248_v49  ;;  %v252_v51 = vld [vmem:[%s1301_s26 + $0x318] sm:$0xff]  ;;  %v254_v52 = vld [vmem:[%s1301_s26 + $0x340] sm:$0xff] }
  0x2e   : > { %251 = vst [vmem:[%s1306_s27 + $0x190] sm:$0xff] %v250_v50  ;;  %v256_v53 = vld [vmem:[%s1301_s26 + $0x348] sm:$0xff]  ;;  %253 = vst [vmem:[%s1306_s27 + $0x198] sm:$0xff] %v252_v51  ;;  %v258_v54 = vld [vmem:[%s1301_s26 + $0x350] sm:$0xff] }
  0x2f   : > { %255 = vst [vmem:[%s1306_s27 + $0x1a0] sm:$0xff] %v254_v52  ;;  %257 = vst [vmem:[%s1306_s27 + $0x1a8] sm:$0xff] %v256_v53  ;;  %v260_v55 = vld [vmem:[%s1301_s26 + $0x358] sm:$0xff]  ;;  %v262_v56 = vld [vmem:[%s1301_s26 + $0x380] sm:$0xff] }
  0x30   : > { %259 = vst [vmem:[%s1306_s27 + $0x1b0] sm:$0xff] %v258_v54  ;;  %261 = vst [vmem:[%s1306_s27 + $0x1b8] sm:$0xff] %v260_v55  ;;  %v264_v57 = vld [vmem:[%s1301_s26 + $0x388] sm:$0xff]  ;;  %v266_v58 = vld [vmem:[%s1301_s26 + $0x390] sm:$0xff] }
  0x31   : > { %263 = vst [vmem:[%s1306_s27 + $0x1c0] sm:$0xff] %v262_v56  ;;  %v268_v59 = vld [vmem:[%s1301_s26 + $0x398] sm:$0xff]  ;;  %265 = vst [vmem:[%s1306_s27 + $0x1c8] sm:$0xff] %v264_v57  ;;  %v270_v60 = vld [vmem:[%s1301_s26 + $0x3c0] sm:$0xff] }
  0x32   : > { %267 = vst [vmem:[%s1306_s27 + $0x1d0] sm:$0xff] %v266_v58  ;;  %269 = vst [vmem:[%s1306_s27 + $0x1d8] sm:$0xff] %v268_v59  ;;  %v272_v61 = vld [vmem:[%s1301_s26 + $0x3c8] sm:$0xff]  ;;  %v274_v62 = vld [vmem:[%s1301_s26 + $0x3d0] sm:$0xff] }
  0x33   : > { %271 = vst [vmem:[%s1306_s27 + $0x1e0] sm:$0xff] %v270_v60  ;;  %273 = vst [vmem:[%s1306_s27 + $0x1e8] sm:$0xff] %v272_v61  ;;  %v276_v63 = vld [vmem:[%s1301_s26 + $0x3d8] sm:$0xff] }
  0x34   : > { %275 = vst [vmem:[%s1306_s27 + $0x1f0] sm:$0xff] %v274_v62  ;;  %277 = vst [vmem:[%s1306_s27 + $0x1f8] sm:$0xff] %v276_v63 }
  0x35 PF: > { %p1098_p7 = scmp.ge.s32.totalorder %s1238_s14, 1  ;;  %p282_p8 = scmp.lt.s32.totalorder %s1238_s14, 3 }
  0x37   : > { %p283_p9 = pnand %p1098_p7, %p282_p8 }
  0x38   : > { %s289_s28 = sand.u32 (!%p283_p9), 1, %s1230_s12   ;;  %v1240_v0 = vmov (!%p283_p9), 0   ;;  %v380_v1 = vld [vmem:[%s1573_s2] sm:$0xff] (!%p283_p9)  ;;  %v381_v21 = vld [vmem:[%s1573_s2 + $0x8] sm:$0xff] (!%p283_p9) }
  0x39   : > { %286 = sbr.rel (%p283_p9) target bundleno = 361 (0x169), region = 51  ;;  %s1099_s29 = sshll.u32 (!%p283_p9), %s289_s28, 9  ;;  %750 = vmatprep.mubr.bf16.mxu0 (!%p283_p9), %v1240_v0  ;;  %793 = vmatprep.mubr.bf16.mxu1 (!%p283_p9), %v1240_v0 }
  0x3a   : > { %1214 = vset.pattern.permute.xlu0 (!%p283_p9), %v1240_v0  ;;  %s1444_s5 = scalar_lea.vmem (!%p283_p9), [#allocation2], %s1099_s29  ;;  %s1100_s10 = sshll.u32 (!%p283_p9), %s289_s28, 6 }
  0x3b   : > { %v316_v2 = vld [vmem:[%s1444_s5] sm:$0xff] (!%p283_p9)  ;;  %v317_v4 = vld [vmem:[%s1444_s5 + $0x8] sm:$0xff] (!%p283_p9)  ;;  %384 = vperm.xlu0 (!%p283_p9), %1214, %v380_v1   ;;  %s1532_s11 = scalar_lea.vmem (!%p283_p9), [#allocation3], %s1100_s10 }
  0x3c   : > { %v320_v3 = vld [vmem:[%s1444_s5 + $0x20] sm:$0xff] (!%p283_p9)  ;;  %v321_v6 = vld [vmem:[%s1444_s5 + $0x28] sm:$0xff] (!%p283_p9) }
  0x3d   : > { %v1103_v5 = vcombine.high (!%p283_p9), %v316_v2, %v320_v3  ;;  %v1102_v7 = vcombine.low (!%p283_p9), %v316_v2, %v320_v3  ;;  %v324_v8 = vld [vmem:[%s1444_s5 + $0x40] sm:$0xff] (!%p283_p9)  ;;  %v1105_v10 = vcombine.high (!%p283_p9), %v317_v4, %v321_v6  ;;  %v1104_v11 = vcombine.low (!%p283_p9), %v317_v4, %v321_v6  ;;  %v325_v13 = vld [vmem:[%s1444_s5 + $0x48] sm:$0xff] (!%p283_p9)  ;;  %v318_v2 = vld [vmem:[%s1444_s5 + $0x10] sm:$0xff] (!%p283_p9) }
  0x3e   : > { %v328_v9 = vld [vmem:[%s1444_s5 + $0x60] sm:$0xff] (!%p283_p9)  ;;  %v329_v14 = vld [vmem:[%s1444_s5 + $0x68] sm:$0xff] (!%p283_p9)  ;;  %v322_v3 = vld [vmem:[%s1444_s5 + $0x30] sm:$0xff] (!%p283_p9) }
  0x3f   : > { %v1111_v12 = vcombine.high (!%p283_p9), %v324_v8, %v328_v9  ;;  %v332_v15 = vld [vmem:[%s1444_s5 + $0x80] sm:$0xff] (!%p283_p9)  ;;  %718 = vmatprep.subr.bf16.mxu0 (!%p283_p9), %v1103_v5  ;;  %v1113_v16 = vcombine.high (!%p283_p9), %v325_v13, %v329_v14  ;;  %v333_v18 = vld [vmem:[%s1444_s5 + $0x88] sm:$0xff] (!%p283_p9)  ;;  %761 = vmatprep.subr.bf16.mxu1 (!%p283_p9), %v1105_v10  ;;  %v1110_v20 = vcombine.low (!%p283_p9), %v324_v8, %v328_v9  ;;  %v319_v4 = vld [vmem:[%s1444_s5 + $0x18] sm:$0xff] (!%p283_p9) }
  0x40   : > { %v336_v17 = vld [vmem:[%s1444_s5 + $0xa0] sm:$0xff]  ;;  %v337_v19 = vld [vmem:[%s1444_s5 + $0xa8] sm:$0xff]  ;;  %719 = vmatpush1.bf16.msra.mxu0 %v1102_v7  ;;  %762 = vmatpush1.bf16.msra.mxu1 %v1104_v11  ;;  %v1112_v22 = vcombine.low %v325_v13, %v329_v14  ;;  %v323_v5 = vld [vmem:[%s1444_s5 + $0x38] sm:$0xff]  ;;  %v1107_v8 = vcombine.high %v318_v2, %v322_v3  ;;  %s1188_s12 = sshll.u32 (%p1291_p5), %s1091_s15, 5 }
  0x41   : > { %720 = vmatprep.subr.bf16.mxu0 %v1111_v12  ;;  %v1119_v23 = vcombine.high %v332_v15, %v336_v17  ;;  %763 = vmatprep.subr.bf16.mxu1 %v1113_v16  ;;  %v1121_v24 = vcombine.high %v333_v18, %v337_v19  ;;  %v340_v25 = vld [vmem:[%s1444_s5 + $0xc0] sm:$0xff]  ;;  %v341_v27 = vld [vmem:[%s1444_s5 + $0xc8] sm:$0xff]  ;;  %v1118_v29 = vcombine.low %v332_v15, %v336_v17  ;;  %v326_v10 = vld [vmem:[%s1444_s5 + $0x50] sm:$0xff]  ;;  %s1003_s21 = scalar_lea.vmem (%p1291_p5), %s1574_s3, %s1188_s12 }
  0x42   : > { %v344_v26 = vld [vmem:[%s1444_s5 + $0xe0] sm:$0xff]  ;;  %v345_v28 = vld [vmem:[%s1444_s5 + $0xe8] sm:$0xff]  ;;  %389 = vperm.xlu0 %1214, %v381_v21   ;;  %v1120_v30 = vcombine.low %v333_v18, %v337_v19  ;;  %v1109_v9 = vcombine.high %v319_v4, %v323_v5  ;;  %v330_v11 = vld [vmem:[%s1444_s5 + $0x70] sm:$0xff]  ;;  %v1106_v15 = vcombine.low %v318_v2, %v322_v3  ;;  %v1108_v16 = vcombine.low %v319_v4, %v323_v5 }
  0x43   : > { %v1127_v31 = vcombine.high %v340_v25, %v344_v26  ;;  %v1129_v32 = vcombine.high %v341_v27, %v345_v28  ;;  %v348_v33 = vld [vmem:[%s1444_s5 + $0x100] sm:$0xff]  ;;  %v349_v35 = vld [vmem:[%s1444_s5 + $0x108] sm:$0xff]  ;;  %v1126_v37 = vcombine.low %v340_v25, %v344_v26  ;;  %v1128_v38 = vcombine.low %v341_v27, %v345_v28  ;;  %v327_v13 = vld [vmem:[%s1444_s5 + $0x58] sm:$0xff] }
  0x44   : > { %721 = vmatpush1.bf16.msra.mxu0 %v1110_v20  ;;  %764 = vmatpush1.bf16.msra.mxu1 %v1112_v22  ;;  %v352_v34 = vld [vmem:[%s1444_s5 + $0x120] sm:$0xff]  ;;  %v353_v36 = vld [vmem:[%s1444_s5 + $0x128] sm:$0xff]  ;;  %v331_v14 = vld [vmem:[%s1444_s5 + $0x78] sm:$0xff]  ;;  %v1115_v17 = vcombine.high %v326_v10, %v330_v11 }
  0x45   : > { %722 = vmatprep.subr.bf16.mxu0 %v1119_v23  ;;  %765 = vmatprep.subr.bf16.mxu1 %v1121_v24  ;;  %v1135_v39 = vcombine.high %v348_v33, %v352_v34  ;;  %v1137_v40 = vcombine.high %v349_v35, %v353_v36  ;;  %v356_v41 = vld [vmem:[%s1444_s5 + $0x140] sm:$0xff]  ;;  %v357_v43 = vld [vmem:[%s1444_s5 + $0x148] sm:$0xff]  ;;  %v1134_v45 = vcombine.low %v348_v33, %v352_v34  ;;  %v334_v19 = vld [vmem:[%s1444_s5 + $0x90] sm:$0xff] }
  0x46   : > { %v360_v42 = vld [vmem:[%s1444_s5 + $0x160] sm:$0xff]  ;;  %v361_v44 = vld [vmem:[%s1444_s5 + $0x168] sm:$0xff]  ;;  %v1136_v46 = vcombine.low %v349_v35, %v353_v36  ;;  %v1117_v18 = vcombine.high %v327_v13, %v331_v14  ;;  %v338_v20 = vld [vmem:[%s1444_s5 + $0xb0] sm:$0xff]  ;;  %v1114_v23 = vcombine.low %v326_v10, %v330_v11  ;;  %v1116_v24 = vcombine.low %v327_v13, %v331_v14 }
  0x47   : > { %v1143_v47 = vcombine.high %v356_v41, %v360_v42  ;;  %v1145_v48 = vcombine.high %v357_v43, %v361_v44  ;;  %v364_v49 = vld [vmem:[%s1444_s5 + $0x180] sm:$0xff]  ;;  %v365_v51 = vld [vmem:[%s1444_s5 + $0x188] sm:$0xff]  ;;  %v1142_v53 = vcombine.low %v356_v41, %v360_v42  ;;  %v1144_v54 = vcombine.low %v357_v43, %v361_v44  ;;  %v335_v21 = vld [vmem:[%s1444_s5 + $0x98] sm:$0xff] }
  0x48   : > { %723 = vmatpush1.bf16.msra.mxu0 %v1118_v29  ;;  %766 = vmatpush1.bf16.msra.mxu1 %v1120_v30  ;;  %v368_v50 = vld [vmem:[%s1444_s5 + $0x1a0] sm:$0xff]  ;;  %v369_v52 = vld [vmem:[%s1444_s5 + $0x1a8] sm:$0xff]  ;;  %v339_v22 = vld [vmem:[%s1444_s5 + $0xb8] sm:$0xff]  ;;  %v1123_v25 = vcombine.high %v334_v19, %v338_v20 }
  0x49   : > { %724 = vmatprep.subr.bf16.mxu0 %v1127_v31  ;;  %767 = vmatprep.subr.bf16.mxu1 %v1129_v32  ;;  %v1151_v55 = vcombine.high %v364_v49, %v368_v50  ;;  %v1153_v56 = vcombine.high %v365_v51, %v369_v52  ;;  %v372_v57 = vld [vmem:[%s1444_s5 + $0x1c0] sm:$0xff]  ;;  %v373_v59 = vld [vmem:[%s1444_s5 + $0x1c8] sm:$0xff]  ;;  %v1150_v61 = vcombine.low %v364_v49, %v368_v50  ;;  %v342_v27 = vld [vmem:[%s1444_s5 + $0xd0] sm:$0xff] }
  0x4a   : > { %v376_v58 = vld [vmem:[%s1444_s5 + $0x1e0] sm:$0xff]  ;;  %v377_v60 = vld [vmem:[%s1444_s5 + $0x1e8] sm:$0xff]  ;;  %v1152_v62 = vcombine.low %v365_v51, %v369_v52  ;;  %v1125_v26 = vcombine.high %v335_v21, %v339_v22  ;;  %v346_v28 = vld [vmem:[%s1444_s5 + $0xf0] sm:$0xff]  ;;  %v1122_v31 = vcombine.low %v334_v19, %v338_v20  ;;  %v1124_v32 = vcombine.low %v335_v21, %v339_v22 }
  0x4b   : > { %v1159_v63 = vcombine.high %v372_v57, %v376_v58  ;;  %v1161_v1 = vcombine.high %v373_v59, %v377_v60  ;;  %v1158_v6 = vcombine.low %v372_v57, %v376_v58  ;;  %v1160_v7 = vcombine.low %v373_v59, %v377_v60  ;;  %v1490_v12 = vld [vmem:[%s1571_s0] sm:$0xff]   ;;  %v343_v29 = vld [vmem:[%s1444_s5 + $0xd8] sm:$0xff]  ;;  %v350_v35 = vld [vmem:[%s1444_s5 + $0x110] sm:$0xff] }
  0x4c   : > { %725 = vmatpush1.bf16.msra.mxu0 %v1126_v37  ;;  %768 = vmatpush1.bf16.msra.mxu1 %v1128_v38  ;;  %v347_v30 = vld [vmem:[%s1444_s5 + $0xf8] sm:$0xff]  ;;  %v1131_v33 = vcombine.high %v342_v27, %v346_v28  ;;  %v354_v36 = vld [vmem:[%s1444_s5 + $0x130] sm:$0xff] }
  0x4d   : > { %726 = vmatprep.subr.bf16.mxu0 %v1135_v39  ;;  %769 = vmatprep.subr.bf16.mxu1 %v1137_v40  ;;  %v1133_v34 = vcombine.high %v343_v29, %v347_v30  ;;  %v351_v37 = vld [vmem:[%s1444_s5 + $0x118] sm:$0xff]  ;;  %v1130_v39 = vcombine.low %v342_v27, %v346_v28  ;;  %v1139_v40 = vcombine.high %v350_v35, %v354_v36  ;;  %v358_v42 = vld [vmem:[%s1444_s5 + $0x150] sm:$0xff] }
  0x4e   : > { %v355_v38 = vld [vmem:[%s1444_s5 + $0x138] sm:$0xff]  ;;  %v362_v43 = vld [vmem:[%s1444_s5 + $0x170] sm:$0xff] }
  0x4f   : > { %v1141_v41 = vcombine.high %v351_v37, %v355_v38  ;;  %v359_v44 = vld [vmem:[%s1444_s5 + $0x158] sm:$0xff]  ;;  %v366_v50 = vld [vmem:[%s1444_s5 + $0x190] sm:$0xff] }
  0x50   : > { %727 = vmatpush1.bf16.msra.mxu0 %v1134_v45  ;;  %770 = vmatpush1.bf16.msra.mxu1 %v1136_v46  ;;  %v363_v45 = vld [vmem:[%s1444_s5 + $0x178] sm:$0xff]  ;;  %v1138_v46 = vcombine.low %v350_v35, %v354_v36  ;;  %v370_v51 = vld [vmem:[%s1444_s5 + $0x1b0] sm:$0xff] }
  0x51   : > { %728 = vmatprep.subr.bf16.mxu0 %v1143_v47  ;;  %771 = vmatprep.subr.bf16.mxu1 %v1145_v48  ;;  %v1140_v47 = vcombine.low %v351_v37, %v355_v38  ;;  %v1147_v48 = vcombine.high %v358_v42, %v362_v43  ;;  %v1149_v49 = vcombine.high %v359_v44, %v363_v45  ;;  %v367_v52 = vld [vmem:[%s1444_s5 + $0x198] sm:$0xff]  ;;  %v374_v58 = vld [vmem:[%s1444_s5 + $0x1d0] sm:$0xff] }
  0x52   : > { %v378_v59 = vld [vmem:[%s1444_s5 + $0x1f0] sm:$0xff]  ;;  %v375_v60 = vld [vmem:[%s1444_s5 + $0x1d8] sm:$0xff] }
  0x53   : > { %v1162_v3 = vcombine.low %v374_v58, %v378_v59 }
  0x54   : > { %729 = vmatpush1.bf16.msra.mxu0 %v1142_v53  ;;  %772 = vmatpush1.bf16.msra.mxu1 %v1144_v54  ;;  %v371_v53 = vld [vmem:[%s1444_s5 + $0x1b8] sm:$0xff]  ;;  %v1146_v54 = vcombine.low %v358_v42, %v362_v43 }
  0x55   : > { %730 = vmatprep.subr.bf16.mxu0 %v1151_v55  ;;  %773 = vmatprep.subr.bf16.mxu1 %v1153_v56  ;;  %v1148_v55 = vcombine.low %v359_v44, %v363_v45  ;;  %v1155_v56 = vcombine.high %v366_v50, %v370_v51  ;;  %v1157_v57 = vcombine.high %v367_v52, %v371_v53 }
  0x58   : > { %731 = vmatpush1.bf16.msra.mxu0 %v1150_v61  ;;  %774 = vmatpush1.bf16.msra.mxu1 %v1152_v62  ;;  %v379_v61 = vld [vmem:[%s1444_s5 + $0x1f8] sm:$0xff]  ;;  %v1154_v62 = vcombine.low %v366_v50, %v370_v51 }
  0x59   : > { %732 = vmatprep.subr.bf16.mxu0 %v1159_v63  ;;  %775 = vmatprep.subr.bf16.mxu1 %v1161_v1  ;;  %v1156_v63 = vcombine.low %v367_v52, %v371_v53  ;;  %v1163_v1 = vcombine.high %v374_v58, %v378_v59  ;;  %v1165_v2 = vcombine.high %v375_v60, %v379_v61 }
  0x5a   : > { %v1164_v4 = vcombine.low %v375_v60, %v379_v61 }
  0x5c   : > { %733 = vmatpush1.bf16.msra.mxu0 %v1158_v6  ;;  %776 = vmatpush1.bf16.msra.mxu1 %v1160_v7 }
  0x5d   : > { %804 = vmatprep.subr.bf16.mxu0 %v1107_v8  ;;  %847 = vmatprep.subr.bf16.mxu1 %v1109_v9 }
  0x5f   : > { %751 = vmatmul.mubr.bf16.vlgmr.msra.gmra.mrb[0].mxu0 %v1490_v12  ;;  %794 = vmatmul.mubr.bf16.vlgmr.msra.gmra.mrb[0].mxu1 %v1490_v12 }
  0x60   : > { %805 = vmatpush1.bf16.msra.mxu0 %v1106_v15  ;;  %848 = vmatpush1.bf16.msra.mxu1 %v1108_v16 }
  0x61   : > { %806 = vmatprep.subr.bf16.mxu0 %v1115_v17  ;;  %849 = vmatprep.subr.bf16.mxu1 %v1117_v18 }
  0x62   : > { %836 = vmatprep.mubr.bf16.mxu0 %v1240_v0  ;;  %879 = vmatprep.mubr.bf16.mxu1 %v1240_v0  ;;  %v1132_v0 = vcombine.low %v343_v29, %v347_v30 }
  0x64   : > { %807 = vmatpush1.bf16.msra.mxu0 %v1114_v23  ;;  %850 = vmatpush1.bf16.msra.mxu1 %v1116_v24 }
  0x65   : > { %808 = vmatprep.subr.bf16.mxu0 %v1123_v25  ;;  %851 = vmatprep.subr.bf16.mxu1 %v1125_v26 }
  0x68   : > { %809 = vmatpush1.bf16.msra.mxu0 %v1122_v31  ;;  %852 = vmatpush1.bf16.msra.mxu1 %v1124_v32 }
  0x69   : > { %810 = vmatprep.subr.bf16.mxu0 %v1131_v33  ;;  %853 = vmatprep.subr.bf16.mxu1 %v1133_v34 }
  0x6c   : > { %811 = vmatpush1.bf16.msra.mxu0 %v1130_v39  ;;  %854 = vmatpush1.bf16.msra.mxu1 %v1132_v0 }
  0x6d   : > { %812 = vmatprep.subr.bf16.mxu0 %v1139_v40  ;;  %855 = vmatprep.subr.bf16.mxu1 %v1141_v41 }
  0x70   : > { %813 = vmatpush1.bf16.msra.mxu0 %v1138_v46  ;;  %856 = vmatpush1.bf16.msra.mxu1 %v1140_v47 }
  0x71   : > { %814 = vmatprep.subr.bf16.mxu0 %v1147_v48  ;;  %857 = vmatprep.subr.bf16.mxu1 %v1149_v49 }
  0x74   : > { %815 = vmatpush1.bf16.msra.mxu0 %v1146_v54  ;;  %858 = vmatpush1.bf16.msra.mxu1 %v1148_v55 }
  0x75   : > { %816 = vmatprep.subr.bf16.mxu0 %v1155_v56  ;;  %859 = vmatprep.subr.bf16.mxu1 %v1157_v57 }
  0x78   : > { %817 = vmatpush1.bf16.msra.mxu0 %v1154_v62  ;;  %860 = vmatpush1.bf16.msra.mxu1 %v1156_v63 }
  0x79   : > { %818 = vmatprep.subr.bf16.mxu0 %v1163_v1  ;;  %861 = vmatprep.subr.bf16.mxu1 %v1165_v2 }
  0x7c   : > { %819 = vmatpush1.bf16.msra.mxu0 %v1162_v3  ;;  %862 = vmatpush1.bf16.msra.mxu1 %v1164_v4 }
  0x7f   : > { %837 = vmatmul.mubr.bf16.vlgmr.msra.gmra.mrb[4].mxu0 %v1490_v12  ;;  %880 = vmatmul.mubr.bf16.vlgmr.msra.gmra.mrb[4].mxu1 %v1490_v12 }
  0xba   : > { %v385_v5 = vpop.permute.xlu0 %384 }
  0xc1   : > { %v1524_v7 = vpop.permute.xlu0 %389 }
 0x132   : > { %v752_v6 = vpop.f32.mrb[0].mxu0  ;;  %v795_v9 = vpop.f32.mrb[0].mxu1 }
 0x133   : > { %v753_v8 = vadd.f32 %v752_v6, %v385_v5  ;;  %v754_v10 = vpop.f32.mrb[1].mxu0  ;;  %v796_v11 = vadd.f32 %v795_v9, %v385_v5  ;;  %v797_v14 = vpop.f32.mrb[1].mxu1 }
 0x134   : > { %v755_v13 = vadd.f32 %v754_v10, %v385_v5  ;;  %v756_v15 = vpop.f32.mrb[2].mxu0  ;;  %v798_v17 = vadd.f32 %v797_v14, %v385_v5  ;;  %v799_v19 = vpop.f32.mrb[2].mxu1 }
 0x135   : > { %vm890_vm0 = vcmp.gt.f32.partialorder %v753_v8, 0.0  ;;  %v906_v16 = vmul.f32 0.2, %v753_v8  ;;  %v757_v18 = vadd.f32 %v756_v15, %v1524_v7  ;;  %v758_v12 = vpop.f32.mrb[3].mxu0  ;;  %vm892_vm1 = vcmp.gt.f32.partialorder %v796_v11, 0.0  ;;  %v801_v24 = vpop.f32.mrb[3].mxu1 }
 0x136   : > { %v908_v20 = vmul.f32 0.2, %v796_v11  ;;  %vm891_vm2 = vcmp.gt.f32.partialorder %v755_v13, 0.0  ;;  %v907_v21 = vmul.f32 0.2, %v755_v13  ;;  %vm893_vm3 = vcmp.gt.f32.partialorder %v798_v17, 0.0 }
 0x137   : > { %v922_v22 = vsel %vm890_vm0, %v753_v8, %v906_v16  ;;  %v909_v23 = vmul.f32 0.2, %v798_v17  ;;  %vm898_vm4 = vcmp.gt.f32.partialorder %v757_v18, 0.0  ;;  %v914_v27 = vmul.f32 0.2, %v757_v18 }
 0x138   : > { %v924_v25 = vsel %vm892_vm1, %v796_v11, %v908_v20  ;;  %v923_v26 = vsel %vm891_vm2, %v755_v13, %v907_v21  ;;  %v800_v28 = vadd.f32 %v799_v19, %v1524_v7  ;;  %v759_v31 = vadd.f32 %v758_v12, %v1524_v7 }
 0x139   : > { %v1180_v29 = vpack.c.bf16 %v923_v26, %v922_v22  ;;  %v925_v30 = vsel %vm893_vm3, %v798_v17, %v909_v23  ;;  %v802_v32 = vadd.f32 %v801_v24, %v1524_v7  ;;  %v930_v34 = vsel %vm898_vm4, %v757_v18, %v914_v27 }
 0x13a   : > { %v1181_v33 = vpack.c.bf16 %v925_v30, %v924_v25  ;;  %vm900_vm5 = vcmp.gt.f32.partialorder %v800_v28, 0.0  ;;  %v916_v35 = vmul.f32 0.2, %v800_v28  ;;  %vm899_vm6 = vcmp.gt.f32.partialorder %v759_v31, 0.0 }
 0x13b   : > { %986 = vst [vmem:[%s1532_s11] sm:$0xff] %v1180_v29  ;;  %v915_v36 = vmul.f32 0.2, %v759_v31  ;;  %vm901_vm7 = vcmp.gt.f32.partialorder %v802_v32, 0.0  ;;  %v917_v37 = vmul.f32 0.2, %v802_v32 }
 0x13c   : > { %987 = vst [vmem:[%s1532_s11 + $0x8] sm:$0xff] %v1181_v33  ;;  %v932_v38 = vsel %vm900_vm5, %v800_v28, %v916_v35 }
 0x13d   : > { %v931_v39 = vsel %vm899_vm6, %v759_v31, %v915_v36  ;;  %v933_v0 = vsel %vm901_vm7, %v802_v32, %v917_v37 }
 0x13e   : > { %v1184_v40 = vpack.c.bf16 %v931_v39, %v930_v34  ;;  %v1185_v41 = vpack.c.bf16 %v933_v0, %v932_v38 }
 0x140   : > { %990 = vst [vmem:[%s1532_s11 + $0x20] sm:$0xff] %v1184_v40  ;;  %991 = vst [vmem:[%s1532_s11 + $0x28] sm:$0xff] %v1185_v41 }
 0x143   : > { %v1018_v17 = vld [vmem:[%s1532_s11 + $0x8] sm:$0xff] (%p1291_p5) }
 0x144   : > { %1019 = vst [vmem:[%s1003_s21 + $0x8] sm:$0xff] (%p1291_p5), %v1018_v17 }
 0x147   : > { %v1024_v12 = vld [vmem:[%s1532_s11 + $0x20] sm:$0xff] (%p1291_p5)  ;;  %v1026_v20 = vld [vmem:[%s1532_s11 + $0x28] sm:$0xff] (%p1291_p5) }
 0x148   : > { %1025 = vst [vmem:[%s1003_s21 + $0x40] sm:$0xff] (%p1291_p5), %v1024_v12  ;;  %1027 = vst [vmem:[%s1003_s21 + $0x48] sm:$0xff] (%p1291_p5), %v1026_v20 }
 0x152   : > { %v838_v42 = vpop.f32.mrb[4].mxu0  ;;  %v881_v44 = vpop.f32.mrb[4].mxu1 }
 0x153   : > { %v839_v43 = vadd.f32 %v838_v42, %v385_v5  ;;  %v840_v45 = vpop.f32.mrb[5].mxu0  ;;  %v882_v46 = vadd.f32 %v881_v44, %v385_v5  ;;  %v883_v48 = vpop.f32.mrb[5].mxu1 }
 0x154   : > { %v841_v47 = vadd.f32 %v840_v45, %v385_v5  ;;  %v842_v49 = vpop.f32.mrb[6].mxu0  ;;  %v884_v51 = vadd.f32 %v883_v48, %v385_v5  ;;  %v885_v53 = vpop.f32.mrb[6].mxu1 }
 0x155   : > { %vm894_vm8 = vcmp.gt.f32.partialorder %v839_v43, 0.0  ;;  %v910_v50 = vmul.f32 0.2, %v839_v43  ;;  %v843_v52 = vadd.f32 %v842_v49, %v1524_v7  ;;  %v844_v54 = vpop.f32.mrb[7].mxu0  ;;  %vm896_vm9 = vcmp.gt.f32.partialorder %v882_v46, 0.0  ;;  %v887_v59 = vpop.f32.mrb[7].mxu1 }
 0x156   : > { %v912_v55 = vmul.f32 0.2, %v882_v46  ;;  %vm895_vm10 = vcmp.gt.f32.partialorder %v841_v47, 0.0  ;;  %v911_v56 = vmul.f32 0.2, %v841_v47  ;;  %vm897_vm11 = vcmp.gt.f32.partialorder %v884_v51, 0.0 }
 0x157   : > { %v926_v57 = vsel %vm894_vm8, %v839_v43, %v910_v50  ;;  %v913_v58 = vmul.f32 0.2, %v884_v51  ;;  %vm902_vm12 = vcmp.gt.f32.partialorder %v843_v52, 0.0  ;;  %v918_v62 = vmul.f32 0.2, %v843_v52 }
 0x158   : > { %v928_v60 = vsel %vm896_vm9, %v882_v46, %v912_v55  ;;  %v927_v61 = vsel %vm895_vm10, %v841_v47, %v911_v56  ;;  %v886_v63 = vadd.f32 %v885_v53, %v1524_v7  ;;  %v845_v3 = vadd.f32 %v844_v54, %v1524_v7 }
 0x159   : > { %v1182_v1 = vpack.c.bf16 %v927_v61, %v926_v57  ;;  %v929_v2 = vsel %vm897_vm11, %v884_v51, %v913_v58  ;;  %v888_v4 = vadd.f32 %v887_v59, %v1524_v7  ;;  %v934_v6 = vsel %vm902_vm12, %v843_v52, %v918_v62  ;;  %v1016_v7 = vld [vmem:[%s1532_s11] sm:$0xff] (%p1291_p5) }
 0x15a   : > { %v1183_v5 = vpack.c.bf16 %v929_v2, %v928_v60  ;;  %vm904_vm13 = vcmp.gt.f32.partialorder %v886_v63, 0.0  ;;  %v920_v8 = vmul.f32 0.2, %v886_v63  ;;  %vm903_vm14 = vcmp.gt.f32.partialorder %v845_v3, 0.0  ;;  %1000 = sbr.rel (!%p1291_p5) target bundleno = 361 (0x169), region = 59  ;;  %1017 = vst [vmem:[%s1003_s21] sm:$0xff] (%p1291_p5), %v1016_v7 }
 0x15b   : > { %988 = vst [vmem:[%s1532_s11 + $0x10] sm:$0xff] %v1182_v1  ;;  %v919_v9 = vmul.f32 0.2, %v845_v3  ;;  %vm905_vm15 = vcmp.gt.f32.partialorder %v888_v4, 0.0  ;;  %v921_v10 = vmul.f32 0.2, %v888_v4 }
 0x15c   : > { %989 = vst [vmem:[%s1532_s11 + $0x18] sm:$0xff] %v1183_v5  ;;  %v936_v11 = vsel %vm904_vm13, %v886_v63, %v920_v8 }
 0x15d   : > { %v935_v13 = vsel %vm903_vm14, %v845_v3, %v919_v9  ;;  %v937_v14 = vsel %vm905_vm15, %v888_v4, %v921_v10 }
 0x15e   : > { %v1186_v15 = vpack.c.bf16 %v935_v13, %v934_v6  ;;  %v1187_v16 = vpack.c.bf16 %v937_v14, %v936_v11 }
 0x160   : > { %992 = vst [vmem:[%s1532_s11 + $0x30] sm:$0xff] %v1186_v15  ;;  %993 = vst [vmem:[%s1532_s11 + $0x38] sm:$0xff] %v1187_v16 }
 0x162   : > { %v1020_v18 = vld [vmem:[%s1532_s11 + $0x10] sm:$0xff] }
 0x163   : > { %v1022_v19 = vld [vmem:[%s1532_s11 + $0x18] sm:$0xff]  ;;  %1021 = vst [vmem:[%s1003_s21 + $0x10] sm:$0xff] %v1020_v18 }
 0x164   : > { %1023 = vst [vmem:[%s1003_s21 + $0x18] sm:$0xff] %v1022_v19 }
 0x167   : > { %v1028_v21 = vld [vmem:[%s1532_s11 + $0x30] sm:$0xff]  ;;  %v1030_v22 = vld [vmem:[%s1532_s11 + $0x38] sm:$0xff] }
 0x168   : > { %1029 = vst [vmem:[%s1003_s21 + $0x50] sm:$0xff] %v1028_v21  ;;  %1031 = vst [vmem:[%s1003_s21 + $0x58] sm:$0xff] %v1030_v22 }
 0x169 PF: > { %p10_p10 = scmp.ge.s32.totalorder %s1278_s16, 4   ;;  %s1576_s12 = smov %s1234_s13 }
 0x16a   : > { %s1577_s13 = smov %s1289_s19  ;;  %s1578_s14 = smov %s1278_s16 }
 0x16b   :  { %12 = sbr.rel (!%p10_p10) target bundleno = 2 (0x2), region = 113 }

// kernel: discriminator_forward.7
= control target key start
LH: loop header
LB: loop body
LE: loop exit
PB: predicated region body
PF: predicated region fallthrough
CT: control target
= control target key end

     0   :  { %s1000_s12 = smov 0   ;;  %s1002_s13 = smov 0   ;;  %s1193_s0 = inlined_call_operand.vmem [shape: bf16[32,256], index: 0, kind: input, shape index: {}]   ;;  %s1194_s1 = inlined_call_operand.vmem [shape: bf16[256,512], index: 1, kind: input, shape index: {}]   ;;  %s1195_s2 = inlined_call_operand.vmem [shape: f32[32,1], index: 2, kind: input, shape index: {}]   ;;  %s1196_s3 = inlined_call_operand.vmem [shape: bf16[32,512], index: 3, kind: output, shape index: {}]  }
   0x1   :  { %s1004_s14 = smov 0  }
   0x2 LB: > { %s781_s15 = sadd.s32 4294967295, %s977_s14   ;;  %s1017_s16 = sadd.s32 1, %s977_s14   ;;  %s977_s14 = sphi %s1004_s14, %s1200_s14   ;;  %s973_s13 = sphi %s1002_s13, %s1199_s13   ;;  %s969_s12 = sphi %s1000_s12, %s1198_s12  }
   0x3   : > { %s38_s17 = ssub.s32 %s977_s14, %s1017_s16  ;;  %s41_s18 = sadd.s32 1, %s973_s13 }
   0x4   : > { %p39_p0 = scmp.eq.s32.totalorder %s38_s17, 0  ;;  %p48_p1 = scmp.ne.s32.totalorder %s973_s13, %s969_s12 }
   0x5   : > { %p49_p2 = scmp.eq.s32.totalorder %s977_s14, 0  ;;  %p99_p3 = scmp.eq.s32.totalorder %s781_s15, 1 }
   0x6   : > { %s1028_s19 = scalar_select %p39_p0, %s973_s13, %s41_s18  }
   0x7   : > { %p50_p4 = por %p49_p2, %p48_p1  ;;  %p1030_p5 = por %p99_p3, %p48_p1 }
   0x8   : > { %p784_p6 = scmp.ge.s32.totalorder %s977_s14, 2 }
   0xa   : > { %127 = sbr.rel (%p784_p6) target bundleno = 37 (0x25), region = 24 }
  0x11   : > { %130 = sbr.rel (!%p50_p4) target bundleno = 37 (0x25), region = 28  ;;  %s132_s21 = sand.u32 (%p50_p4), 1, %s973_s13  }
  0x12   : > { %s836_s22 = sshll.u32 (%p50_p4), %s977_s14, 3  ;;  %s785_s23 = sshll.u32 (%p50_p4), %s132_s21, 8 }
  0x13   : > { %s1040_s26 = scalar_lea.vmem (%p50_p4), %s1194_s1, %s836_s22  ;;  %s1045_s27 = scalar_lea.vmem (%p50_p4), [#allocation2], %s785_s23 }
  0x14   : > { %v227_v0 = vld [vmem:[%s1040_s26] sm:$0xff] (%p50_p4)  ;;  %v229_v1 = vld [vmem:[%s1040_s26 + $0x10] sm:$0xff] (%p50_p4) }
  0x15   : > { %v231_v2 = vld [vmem:[%s1040_s26 + $0x20] sm:$0xff] (%p50_p4)  ;;  %228 = vst [vmem:[%s1045_s27] sm:$0xff] (%p50_p4), %v227_v0  ;;  %230 = vst [vmem:[%s1045_s27 + $0x8] sm:$0xff] (%p50_p4), %v229_v1  ;;  %v233_v3 = vld [vmem:[%s1040_s26 + $0x30] sm:$0xff] (%p50_p4) }
  0x16   : > { %232 = vst [vmem:[%s1045_s27 + $0x10] sm:$0xff] (%p50_p4), %v231_v2  ;;  %v235_v4 = vld [vmem:[%s1040_s26 + $0x40] sm:$0xff] (%p50_p4)  ;;  %v237_v5 = vld [vmem:[%s1040_s26 + $0x50] sm:$0xff] (%p50_p4)  ;;  %234 = vst [vmem:[%s1045_s27 + $0x18] sm:$0xff] (%p50_p4), %v233_v3 }
  0x17   : > { %236 = vst [vmem:[%s1045_s27 + $0x20] sm:$0xff] (%p50_p4), %v235_v4  ;;  %238 = vst [vmem:[%s1045_s27 + $0x28] sm:$0xff] (%p50_p4), %v237_v5  ;;  %v239_v6 = vld [vmem:[%s1040_s26 + $0x60] sm:$0xff] (%p50_p4)  ;;  %v241_v7 = vld [vmem:[%s1040_s26 + $0x70] sm:$0xff] (%p50_p4) }
  0x18   : > { %v243_v8 = vld [vmem:[%s1040_s26 + $0x80] sm:$0xff]  ;;  %240 = vst [vmem:[%s1045_s27 + $0x30] sm:$0xff] %v239_v6  ;;  %242 = vst [vmem:[%s1045_s27 + $0x38] sm:$0xff] %v241_v7  ;;  %v245_v9 = vld [vmem:[%s1040_s26 + $0x90] sm:$0xff] }
  0x19   : > { %244 = vst [vmem:[%s1045_s27 + $0x40] sm:$0xff] %v243_v8  ;;  %v247_v10 = vld [vmem:[%s1040_s26 + $0xa0] sm:$0xff]  ;;  %v249_v11 = vld [vmem:[%s1040_s26 + $0xb0] sm:$0xff]  ;;  %246 = vst [vmem:[%s1045_s27 + $0x48] sm:$0xff] %v245_v9 }
  0x1a   : > { %248 = vst [vmem:[%s1045_s27 + $0x50] sm:$0xff] %v247_v10  ;;  %250 = vst [vmem:[%s1045_s27 + $0x58] sm:$0xff] %v249_v11  ;;  %v251_v12 = vld [vmem:[%s1040_s26 + $0xc0] sm:$0xff]  ;;  %v253_v13 = vld [vmem:[%s1040_s26 + $0xd0] sm:$0xff] }
  0x1b   : > { %v255_v14 = vld [vmem:[%s1040_s26 + $0xe0] sm:$0xff]  ;;  %252 = vst [vmem:[%s1045_s27 + $0x60] sm:$0xff] %v251_v12  ;;  %254 = vst [vmem:[%s1045_s27 + $0x68] sm:$0xff] %v253_v13  ;;  %v257_v15 = vld [vmem:[%s1040_s26 + $0xf0] sm:$0xff] }
  0x1c   : > { %256 = vst [vmem:[%s1045_s27 + $0x70] sm:$0xff] %v255_v14  ;;  %v259_v16 = vld [vmem:[%s1040_s26 + $0x100] sm:$0xff]  ;;  %v261_v17 = vld [vmem:[%s1040_s26 + $0x110] sm:$0xff]  ;;  %258 = vst [vmem:[%s1045_s27 + $0x78] sm:$0xff] %v257_v15 }
  0x1d   : > { %260 = vst [vmem:[%s1045_s27 + $0x80] sm:$0xff] %v259_v16  ;;  %262 = vst [vmem:[%s1045_s27 + $0x88] sm:$0xff] %v261_v17  ;;  %v263_v18 = vld [vmem:[%s1040_s26 + $0x120] sm:$0xff]  ;;  %v265_v19 = vld [vmem:[%s1040_s26 + $0x130] sm:$0xff] }
  0x1e   : > { %v267_v20 = vld [vmem:[%s1040_s26 + $0x140] sm:$0xff]  ;;  %264 = vst [vmem:[%s1045_s27 + $0x90] sm:$0xff] %v263_v18  ;;  %266 = vst [vmem:[%s1045_s27 + $0x98] sm:$0xff] %v265_v19  ;;  %v269_v21 = vld [vmem:[%s1040_s26 + $0x150] sm:$0xff] }
  0x1f   : > { %268 = vst [vmem:[%s1045_s27 + $0xa0] sm:$0xff] %v267_v20  ;;  %v271_v22 = vld [vmem:[%s1040_s26 + $0x160] sm:$0xff]  ;;  %v273_v23 = vld [vmem:[%s1040_s26 + $0x170] sm:$0xff]  ;;  %270 = vst [vmem:[%s1045_s27 + $0xa8] sm:$0xff] %v269_v21 }
  0x20   : > { %272 = vst [vmem:[%s1045_s27 + $0xb0] sm:$0xff] %v271_v22  ;;  %274 = vst [vmem:[%s1045_s27 + $0xb8] sm:$0xff] %v273_v23  ;;  %v275_v24 = vld [vmem:[%s1040_s26 + $0x180] sm:$0xff]  ;;  %v277_v25 = vld [vmem:[%s1040_s26 + $0x190] sm:$0xff] }
  0x21   : > { %v279_v26 = vld [vmem:[%s1040_s26 + $0x1a0] sm:$0xff]  ;;  %276 = vst [vmem:[%s1045_s27 + $0xc0] sm:$0xff] %v275_v24  ;;  %278 = vst [vmem:[%s1045_s27 + $0xc8] sm:$0xff] %v277_v25  ;;  %v281_v27 = vld [vmem:[%s1040_s26 + $0x1b0] sm:$0xff] }
  0x22   : > { %280 = vst [vmem:[%s1045_s27 + $0xd0] sm:$0xff] %v279_v26  ;;  %v283_v28 = vld [vmem:[%s1040_s26 + $0x1c0] sm:$0xff]  ;;  %v285_v29 = vld [vmem:[%s1040_s26 + $0x1d0] sm:$0xff]  ;;  %282 = vst [vmem:[%s1045_s27 + $0xd8] sm:$0xff] %v281_v27 }
  0x23   : > { %284 = vst [vmem:[%s1045_s27 + $0xe0] sm:$0xff] %v283_v28  ;;  %286 = vst [vmem:[%s1045_s27 + $0xe8] sm:$0xff] %v285_v29  ;;  %v287_v30 = vld [vmem:[%s1040_s26 + $0x1e0] sm:$0xff]  ;;  %v289_v31 = vld [vmem:[%s1040_s26 + $0x1f0] sm:$0xff] }
  0x24   : > { %288 = vst [vmem:[%s1045_s27 + $0xf0] sm:$0xff] %v287_v30  ;;  %290 = vst [vmem:[%s1045_s27 + $0xf8] sm:$0xff] %v289_v31 }
  0x25 PF: > { %p788_p7 = scmp.ge.s32.totalorder %s977_s14, 1  ;;  %p295_p8 = scmp.lt.s32.totalorder %s977_s14, 3 }
  0x27   : > { %p296_p9 = pnand %p788_p7, %p295_p8 }
  0x28   : > { %s302_s28 = sand.u32 (!%p296_p9), 1, %s969_s12   ;;  %v951_v32 = vld [vmem:[%s1193_s0 + $0x4] ss:$8 sps:$4 sm:$0xff] (!%p296_p9)   ;;  %v979_v33 = vmov (!%p296_p9), 0   ;;  %v954_v34 = vld [vmem:[%s1193_s0 + $0x14] ss:$8 sps:$4 sm:$0xff] (!%p296_p9)  }
  0x29   : > { %299 = sbr.rel (%p296_p9) target bundleno = 342 (0x156), region = 66  ;;  %s789_s29 = sshll.u32 (!%p296_p9), %s302_s28, 8  ;;  %900 = vset.pattern.permute.xlu1 (!%p296_p9), %v979_v33  ;;  %899 = vset.pattern.permute.xlu0 (!%p296_p9), %v979_v33  ;;  %v364_v35 = vld [vmem:[%s1195_s2 + $0x10] sm:$0xff] (!%p296_p9)  ;;  %v362_v49 = vld [vmem:[%s1195_s2] sm:$0xff] (!%p296_p9)  ;;  %v365_v50 = vld [vmem:[%s1195_s2 + $0x18] sm:$0xff] (!%p296_p9) }
  0x2a   : > { %s1122_s9 = scalar_lea.vmem (!%p296_p9), [#allocation2], %s789_s29  ;;  %598 = vmatprep.mubr.bf16.mxu0 (!%p296_p9), %v951_v32  ;;  %378 = vperm.xlu1 (!%p296_p9), %900, %v364_v35   ;;  %v363_v52 = vld [vmem:[%s1195_s2 + $0x8] sm:$0xff] (!%p296_p9)  ;;  %v952_v8 = vld [vmem:[%s1193_s0 + $0x10] ss:$8 sps:$4 sm:$0xff] (!%p296_p9)   ;;  %s1173_s27 = sshll.u32 (!%p296_p9), %s302_s28, 5 }
  0x2b   : > { %v901_v36 = vld [vmem:[%s1122_s9 + $0x4] ss:$8 sps:$4 sm:$0xff] (!%p296_p9)   ;;  %v903_v37 = vld [vmem:[%s1122_s9] ss:$8 sps:$4 sm:$0xff] (!%p296_p9)   ;;  %608 = vmatprep.mubr.bf16.mxu1 (!%p296_p9), %v954_v34  ;;  %v904_v38 = vld [vmem:[%s1122_s9 + $0x14] ss:$8 sps:$4 sm:$0xff] (!%p296_p9)   ;;  %368 = vperm.xlu0 (!%p296_p9), %899, %v362_v49  }
  0x2c   : > { %566 = vmatprep.subr.bf16.mxu0 (!%p296_p9), %v901_v36  ;;  %842 = vmatprep.subr.bf16.mxu1 (!%p296_p9), %v901_v36  ;;  %v906_v39 = vld [vmem:[%s1122_s9 + $0x10] ss:$8 sps:$4 sm:$0xff] (!%p296_p9)   ;;  %v907_v40 = vld [vmem:[%s1122_s9 + $0x24] ss:$8 sps:$4 sm:$0xff] (!%p296_p9)   ;;  %v909_v41 = vld [vmem:[%s1122_s9 + $0x20] ss:$8 sps:$4 sm:$0xff] (!%p296_p9)  }
  0x2d   : > { %567 = vmatpush1.bf16.msra.mxu0 (!%p296_p9), %v903_v37  ;;  %858 = vmatpush1.bf16.msra.mxu1 (!%p296_p9), %v903_v37  ;;  %v910_v42 = vld [vmem:[%s1122_s9 + $0x34] ss:$8 sps:$4 sm:$0xff] (!%p296_p9)   ;;  %v912_v43 = vld [vmem:[%s1122_s9 + $0x30] ss:$8 sps:$4 sm:$0xff] (!%p296_p9)   ;;  %v913_v44 = vld [vmem:[%s1122_s9 + $0x44] ss:$8 sps:$4 sm:$0xff] (!%p296_p9)  }
  0x2e   : > { %568 = vmatprep.subr.bf16.mxu0 (!%p296_p9), %v904_v38  ;;  %843 = vmatprep.subr.bf16.mxu1 (!%p296_p9), %v904_v38  ;;  %v915_v45 = vld [vmem:[%s1122_s9 + $0x40] ss:$8 sps:$4 sm:$0xff] (!%p296_p9)   ;;  %v916_v46 = vld [vmem:[%s1122_s9 + $0x54] ss:$8 sps:$4 sm:$0xff] (!%p296_p9)   ;;  %v918_v47 = vld [vmem:[%s1122_s9 + $0x50] ss:$8 sps:$4 sm:$0xff] (!%p296_p9)  }
  0x2f   : > { %v919_v48 = vld [vmem:[%s1122_s9 + $0x64] ss:$8 sps:$4 sm:$0xff] (!%p296_p9)   ;;  %383 = vperm.xlu1 (!%p296_p9), %900, %v365_v50   ;;  %v921_v51 = vld [vmem:[%s1122_s9 + $0x60] ss:$8 sps:$4 sm:$0xff] (!%p296_p9)   ;;  %v922_v53 = vld [vmem:[%s1122_s9 + $0x74] ss:$8 sps:$4 sm:$0xff] (!%p296_p9)   ;;  %373 = vperm.xlu0 (!%p296_p9), %899, %v363_v52  }
  0x30   : > { %v924_v54 = vld [vmem:[%s1122_s9 + $0x70] ss:$8 sps:$4 sm:$0xff]   ;;  %v925_v55 = vld [vmem:[%s1122_s9 + $0x84] ss:$8 sps:$4 sm:$0xff]   ;;  %v927_v56 = vld [vmem:[%s1122_s9 + $0x80] ss:$8 sps:$4 sm:$0xff]  }
  0x31   : > { %569 = vmatpush1.bf16.msra.mxu0 %v906_v39  ;;  %859 = vmatpush1.bf16.msra.mxu1 %v906_v39  ;;  %v928_v57 = vld [vmem:[%s1122_s9 + $0x94] ss:$8 sps:$4 sm:$0xff]   ;;  %v930_v58 = vld [vmem:[%s1122_s9 + $0x90] ss:$8 sps:$4 sm:$0xff]   ;;  %v931_v59 = vld [vmem:[%s1122_s9 + $0xa4] ss:$8 sps:$4 sm:$0xff]  }
  0x32   : > { %570 = vmatprep.subr.bf16.mxu0 %v907_v40  ;;  %844 = vmatprep.subr.bf16.mxu1 %v907_v40  ;;  %v933_v60 = vld [vmem:[%s1122_s9 + $0xa0] ss:$8 sps:$4 sm:$0xff]   ;;  %v934_v61 = vld [vmem:[%s1122_s9 + $0xb4] ss:$8 sps:$4 sm:$0xff]   ;;  %v936_v62 = vld [vmem:[%s1122_s9 + $0xb0] ss:$8 sps:$4 sm:$0xff]  }
  0x33   : > { %v937_v63 = vld [vmem:[%s1122_s9 + $0xc4] ss:$8 sps:$4 sm:$0xff]   ;;  %v939_v0 = vld [vmem:[%s1122_s9 + $0xc0] ss:$8 sps:$4 sm:$0xff]   ;;  %v940_v1 = vld [vmem:[%s1122_s9 + $0xd4] ss:$8 sps:$4 sm:$0xff]  }
  0x34   : > { %v942_v2 = vld [vmem:[%s1122_s9 + $0xd0] ss:$8 sps:$4 sm:$0xff]   ;;  %v943_v3 = vld [vmem:[%s1122_s9 + $0xe4] ss:$8 sps:$4 sm:$0xff]   ;;  %v945_v4 = vld [vmem:[%s1122_s9 + $0xe0] ss:$8 sps:$4 sm:$0xff]  }
  0x35   : > { %571 = vmatpush1.bf16.msra.mxu0 %v909_v41  ;;  %860 = vmatpush1.bf16.msra.mxu1 %v909_v41  ;;  %v946_v5 = vld [vmem:[%s1122_s9 + $0xf4] ss:$8 sps:$4 sm:$0xff]   ;;  %v948_v6 = vld [vmem:[%s1122_s9 + $0xf0] ss:$8 sps:$4 sm:$0xff]   ;;  %v949_v7 = vld [vmem:[%s1193_s0] ss:$8 sps:$4 sm:$0xff]  }
  0x36   : > { %572 = vmatprep.subr.bf16.mxu0 %v910_v42  ;;  %845 = vmatprep.subr.bf16.mxu1 %v910_v42  ;;  %s323_s12 = scalar_lea.vmem [#allocation3], %s1173_s27  ;;  %s841_s28 = sshll.u32 (%p1030_p5), %s781_s15, 3 }
  0x37   : > { %s680_s4 = scalar_lea.vmem (%p1030_p5), %s1196_s3, %s841_s28 }
  0x39   : > { %573 = vmatpush1.bf16.msra.mxu0 %v912_v43  ;;  %861 = vmatpush1.bf16.msra.mxu1 %v912_v43 }
  0x3a   : > { %574 = vmatprep.subr.bf16.mxu0 %v913_v44  ;;  %846 = vmatprep.subr.bf16.mxu1 %v913_v44 }
  0x3d   : > { %575 = vmatpush1.bf16.msra.mxu0 %v915_v45  ;;  %862 = vmatpush1.bf16.msra.mxu1 %v915_v45 }
  0x3e   : > { %576 = vmatprep.subr.bf16.mxu0 %v916_v46  ;;  %847 = vmatprep.subr.bf16.mxu1 %v916_v46 }
  0x41   : > { %577 = vmatpush1.bf16.msra.mxu0 %v918_v47  ;;  %863 = vmatpush1.bf16.msra.mxu1 %v918_v47 }
  0x42   : > { %578 = vmatprep.subr.bf16.mxu0 %v919_v48  ;;  %848 = vmatprep.subr.bf16.mxu1 %v919_v48 }
  0x45   : > { %579 = vmatpush1.bf16.msra.mxu0 %v921_v51  ;;  %864 = vmatpush1.bf16.msra.mxu1 %v921_v51 }
  0x46   : > { %580 = vmatprep.subr.bf16.mxu0 %v922_v53  ;;  %849 = vmatprep.subr.bf16.mxu1 %v922_v53 }
  0x49   : > { %581 = vmatpush1.bf16.msra.mxu0 %v924_v54  ;;  %865 = vmatpush1.bf16.msra.mxu1 %v924_v54 }
  0x4a   : > { %582 = vmatprep.subr.bf16.mxu0 %v925_v55  ;;  %850 = vmatprep.subr.bf16.mxu1 %v925_v55 }
  0x4d   : > { %583 = vmatpush1.bf16.msra.mxu0 %v927_v56  ;;  %866 = vmatpush1.bf16.msra.mxu1 %v927_v56 }
  0x4e   : > { %584 = vmatprep.subr.bf16.mxu0 %v928_v57  ;;  %851 = vmatprep.subr.bf16.mxu1 %v928_v57 }
  0x51   : > { %585 = vmatpush1.bf16.msra.mxu0 %v930_v58  ;;  %867 = vmatpush1.bf16.msra.mxu1 %v930_v58 }
  0x52   : > { %586 = vmatprep.subr.bf16.mxu0 %v931_v59  ;;  %852 = vmatprep.subr.bf16.mxu1 %v931_v59 }
  0x55   : > { %587 = vmatpush1.bf16.msra.mxu0 %v933_v60  ;;  %868 = vmatpush1.bf16.msra.mxu1 %v933_v60 }
  0x56   : > { %588 = vmatprep.subr.bf16.mxu0 %v934_v61  ;;  %853 = vmatprep.subr.bf16.mxu1 %v934_v61 }
  0x59   : > { %589 = vmatpush1.bf16.msra.mxu0 %v936_v62  ;;  %869 = vmatpush1.bf16.msra.mxu1 %v936_v62 }
  0x5a   : > { %590 = vmatprep.subr.bf16.mxu0 %v937_v63  ;;  %854 = vmatprep.subr.bf16.mxu1 %v937_v63 }
  0x5d   : > { %591 = vmatpush1.bf16.msra.mxu0 %v939_v0  ;;  %870 = vmatpush1.bf16.msra.mxu1 %v939_v0 }
  0x5e   : > { %592 = vmatprep.subr.bf16.mxu0 %v940_v1  ;;  %855 = vmatprep.subr.bf16.mxu1 %v940_v1 }
  0x61   : > { %593 = vmatpush1.bf16.msra.mxu0 %v942_v2  ;;  %871 = vmatpush1.bf16.msra.mxu1 %v942_v2 }
  0x62   : > { %594 = vmatprep.subr.bf16.mxu0 %v943_v3  ;;  %856 = vmatprep.subr.bf16.mxu1 %v943_v3 }
  0x65   : > { %595 = vmatpush1.bf16.msra.mxu0 %v945_v4  ;;  %872 = vmatpush1.bf16.msra.mxu1 %v945_v4 }
  0x66   : > { %596 = vmatprep.subr.bf16.mxu0 %v946_v5  ;;  %857 = vmatprep.subr.bf16.mxu1 %v946_v5 }
  0x69   : > { %597 = vmatpush1.bf16.msra.mxu0 %v948_v6  ;;  %873 = vmatpush1.bf16.msra.mxu1 %v948_v6 }
  0x6c   : > { %599 = vmatmul.mubr.bf16.vlgmr.msra.gmra.mrb[0].mxu0 %v949_v7  ;;  %609 = vmatmul.mubr.bf16.vlgmr.msra.gmra.mrb[0].mxu1 %v952_v8 }
  0xa9   : > { %v379_v9 = vpop.permute.xlu1 %378 }
  0xaa   : > { %v369_v10 = vpop.permute.xlu0 %368 }
  0xae   : > { %v384_v23 = vpop.permute.xlu1 %383  ;;  %v374_v24 = vpop.permute.xlu0 %373 }
 0x13f   : > { %v600_v11 = vpop.f32.mrb[0].mxu0  ;;  %v610_v12 = vpop.f32.mrb[0].mxu1 }
 0x140   : > { %v601_v13 = vadd.f32 %v600_v11, %v369_v10  ;;  %v611_v14 = vadd.f32 %v610_v12, %v379_v9  ;;  %v602_v15 = vpop.f32.mrb[1].mxu0  ;;  %v612_v16 = vpop.f32.mrb[1].mxu1 }
 0x141   : > { %v603_v17 = vadd.f32 %v602_v15, %v369_v10  ;;  %v613_v18 = vadd.f32 %v612_v16, %v379_v9  ;;  %v604_v19 = vpop.f32.mrb[2].mxu0  ;;  %v614_v20 = vpop.f32.mrb[2].mxu1 }
 0x142   : > { %vm619_vm0 = vcmp.gt.f32.partialorder %v601_v13, 0.0  ;;  %v627_v21 = vmul.f32 0.2, %v601_v13  ;;  %vm623_vm1 = vcmp.gt.f32.partialorder %v611_v14, 0.0  ;;  %v631_v22 = vmul.f32 0.2, %v611_v14 }
 0x143   : > { %vm620_vm2 = vcmp.gt.f32.partialorder %v603_v17, 0.0  ;;  %v628_v25 = vmul.f32 0.2, %v603_v17  ;;  %vm624_vm3 = vcmp.gt.f32.partialorder %v613_v18, 0.0  ;;  %v632_v26 = vmul.f32 0.2, %v613_v18 }
 0x144   : > { %v635_v27 = vsel %vm619_vm0, %v601_v13, %v627_v21  ;;  %v639_v28 = vsel %vm623_vm1, %v611_v14, %v631_v22  ;;  %v605_v29 = vadd.f32 %v604_v19, %v374_v24  ;;  %v615_v30 = vadd.f32 %v614_v20, %v384_v23  ;;  %v606_v31 = vpop.f32.mrb[3].mxu0  ;;  %v616_v32 = vpop.f32.mrb[3].mxu1 }
 0x145   : > { %v636_v33 = vsel %vm620_vm2, %v603_v17, %v628_v25  ;;  %v640_v34 = vsel %vm624_vm3, %v613_v18, %v632_v26  ;;  %v607_v35 = vadd.f32 %v606_v31, %v374_v24  ;;  %v617_v36 = vadd.f32 %v616_v32, %v384_v23 }
 0x146   : > { %v837_v37 = vpack.c.bf16 %v636_v33, %v635_v27  ;;  %v839_v38 = vpack.c.bf16 %v640_v34, %v639_v28  ;;  %vm621_vm4 = vcmp.gt.f32.partialorder %v605_v29, 0.0  ;;  %v629_v39 = vmul.f32 0.2, %v605_v29 }
 0x147   : > { %vm625_vm5 = vcmp.gt.f32.partialorder %v615_v30, 0.0  ;;  %v633_v40 = vmul.f32 0.2, %v615_v30  ;;  %vm622_vm6 = vcmp.gt.f32.partialorder %v607_v35, 0.0  ;;  %v630_v41 = vmul.f32 0.2, %v607_v35 }
 0x148   : > { %667 = vst [vmem:[%s323_s12] sm:$0xff] %v837_v37  ;;  %669 = vst [vmem:[%s323_s12 + $0x10] sm:$0xff] %v839_v38  ;;  %v637_v42 = vsel %vm621_vm4, %v605_v29, %v629_v39  ;;  %vm626_vm7 = vcmp.gt.f32.partialorder %v617_v36, 0.0  ;;  %v634_v43 = vmul.f32 0.2, %v617_v36  ;;  %677 = sbr.rel (!%p1030_p5) target bundleno = 342 (0x156), region = 74 }
 0x149   : > { %v641_v44 = vsel %vm625_vm5, %v615_v30, %v633_v40  ;;  %v638_v45 = vsel %vm622_vm6, %v607_v35, %v630_v41 }
 0x14a   : > { %v838_v46 = vpack.c.bf16 %v638_v45, %v637_v42  ;;  %v642_v47 = vsel %vm626_vm7, %v617_v36, %v634_v43 }
 0x14b   : > { %v840_v48 = vpack.c.bf16 %v642_v47, %v641_v44 }
 0x14c   : > { %668 = vst [vmem:[%s323_s12 + $0x8] sm:$0xff] %v838_v46 }
 0x14d   : > { %670 = vst [vmem:[%s323_s12 + $0x18] sm:$0xff] %v840_v48 }
 0x14f   : > { %v714_v49 = vld [vmem:[%s323_s12] sm:$0xff]  ;;  %v718_v51 = vld [vmem:[%s323_s12 + $0x10] sm:$0xff] }
 0x150   : > { %715 = vst [vmem:[%s680_s4] sm:$0xff] %v714_v49  ;;  %719 = vst [vmem:[%s680_s4 + $0x20] sm:$0xff] %v718_v51 }
 0x153   : > { %v716_v50 = vld [vmem:[%s323_s12 + $0x8] sm:$0xff] }
 0x154   : > { %v720_v52 = vld [vmem:[%s323_s12 + $0x18] sm:$0xff]  ;;  %717 = vst [vmem:[%s680_s4 + $0x10] sm:$0xff] %v716_v50 }
 0x155   : > { %721 = vst [vmem:[%s680_s4 + $0x30] sm:$0xff] %v720_v52 }
 0x156 PF: > { %p10_p10 = scmp.ge.s32.totalorder %s1017_s16, 4   ;;  %s1198_s12 = smov %s973_s13 }
 0x157   : > { %s1199_s13 = smov %s1028_s19  ;;  %s1200_s14 = smov %s1017_s16 }
 0x158   :  { %12 = sbr.rel (!%p10_p10) target bundleno = 2 (0x2), region = 143 }

// kernel: discriminator_forward.8
= control target key start
LH: loop header
LB: loop body
LE: loop exit
PB: predicated region body
PF: predicated region fallthrough
CT: control target
= control target key end

     0   :  { %v839_v1 = vmov 0   ;;  %s1040_s1 = inlined_call_operand.vmem [shape: bf16[512,128], index: 1, kind: input, shape index: {}]   ;;  %s1041_s0 = inlined_call_operand.vmem [shape: bf16[64,512], index: 0, kind: input, shape index: {}]   ;;  %s1042_s2 = inlined_call_operand.vmem [shape: f32[64,1], index: 2, kind: input, shape index: {}]   ;;  %s1043_s3 = inlined_call_operand.vmem [shape: bf16[64,128], index: 3, kind: output, shape index: {}]  }
   0x1   :  { %v783_v0 = vld [vmem:[%s1040_s1 + $0x40] sm:$0xff]   ;;  %781 = vset.pattern.permute.xlu0 %v839_v1  ;;  %782 = vset.pattern.permute.xlu1 %v839_v1  ;;  %v787_v5 = vld [vmem:[%s1040_s1 + $0x48] sm:$0xff]   ;;  %v791_v9 = vld [vmem:[%s1040_s1 + $0x50] sm:$0xff]  }
   0x2   :  { %v784_v2 = vld [vmem:[%s1040_s1 + $0xc0] sm:$0xff]   ;;  %700 = vmatprep.subr.bf16.mxu0 %v783_v0  ;;  %v788_v6 = vld [vmem:[%s1040_s1 + $0xc8] sm:$0xff]   ;;  %v792_v10 = vld [vmem:[%s1040_s1 + $0xd0] sm:$0xff]  }
   0x3   :  { %v785_v3 = vld [vmem:[%s1040_s1] sm:$0xff]   ;;  %740 = vmatprep.subr.bf16.mxu1 %v784_v2  ;;  %v789_v7 = vld [vmem:[%s1040_s1 + $0x8] sm:$0xff]   ;;  %v793_v11 = vld [vmem:[%s1040_s1 + $0x10] sm:$0xff]  }
   0x4   :  { %v786_v4 = vld [vmem:[%s1040_s1 + $0x80] sm:$0xff]   ;;  %701 = vmatpush3.bf16.msra.mxu0 %v785_v3  ;;  %v790_v8 = vld [vmem:[%s1040_s1 + $0x88] sm:$0xff]   ;;  %v794_v12 = vld [vmem:[%s1040_s1 + $0x90] sm:$0xff]  }
   0x5   :  { %741 = vmatpush3.bf16.msra.mxu1 %v786_v4  ;;  %702 = vmatprep.subr.bf16.mxu0 %v787_v5  ;;  %v795_v13 = vld [vmem:[%s1040_s1 + $0x58] sm:$0xff]   ;;  %v799_v17 = vld [vmem:[%s1040_s1 + $0x60] sm:$0xff]   ;;  %v803_v21 = vld [vmem:[%s1040_s1 + $0x68] sm:$0xff]  }
   0x6   :  { %742 = vmatprep.subr.bf16.mxu1 %v788_v6  ;;  %v796_v14 = vld [vmem:[%s1040_s1 + $0xd8] sm:$0xff]   ;;  %v800_v18 = vld [vmem:[%s1040_s1 + $0xe0] sm:$0xff]   ;;  %v804_v22 = vld [vmem:[%s1040_s1 + $0xe8] sm:$0xff]  }
   0x7   :  { %v797_v15 = vld [vmem:[%s1040_s1 + $0x18] sm:$0xff]   ;;  %v801_v19 = vld [vmem:[%s1040_s1 + $0x20] sm:$0xff]   ;;  %v805_v23 = vld [vmem:[%s1040_s1 + $0x28] sm:$0xff]  }
   0x8   :  { %703 = vmatpush3.bf16.msra.mxu0 %v789_v7  ;;  %v798_v16 = vld [vmem:[%s1040_s1 + $0x98] sm:$0xff]   ;;  %v802_v20 = vld [vmem:[%s1040_s1 + $0xa0] sm:$0xff]   ;;  %v806_v24 = vld [vmem:[%s1040_s1 + $0xa8] sm:$0xff]  }
   0x9   :  { %743 = vmatpush3.bf16.msra.mxu1 %v790_v8  ;;  %704 = vmatprep.subr.bf16.mxu0 %v791_v9  ;;  %v807_v25 = vld [vmem:[%s1040_s1 + $0x70] sm:$0xff]   ;;  %v811_v29 = vld [vmem:[%s1040_s1 + $0x78] sm:$0xff]   ;;  %v95_v43 = vld [vmem:[%s1042_s2] sm:$0xff] }
   0xa   :  { %744 = vmatprep.subr.bf16.mxu1 %v792_v10  ;;  %v808_v26 = vld [vmem:[%s1040_s1 + $0xf0] sm:$0xff]   ;;  %v812_v30 = vld [vmem:[%s1040_s1 + $0xf8] sm:$0xff]   ;;  %105 = vperm.xlu0 %781, %v95_v43   ;;  %v96_v45 = vld [vmem:[%s1042_s2 + $0x8] sm:$0xff] }
   0xb   :  { %v809_v27 = vld [vmem:[%s1040_s1 + $0x30] sm:$0xff]   ;;  %v813_v31 = vld [vmem:[%s1040_s1 + $0x38] sm:$0xff]   ;;  %v99_v48 = vld [vmem:[%s1042_s2 + $0x20] sm:$0xff] }
   0xc   :  { %705 = vmatpush3.bf16.msra.mxu0 %v793_v11  ;;  %v810_v28 = vld [vmem:[%s1040_s1 + $0xb0] sm:$0xff]   ;;  %v814_v32 = vld [vmem:[%s1040_s1 + $0xb8] sm:$0xff]   ;;  %v100_v51 = vld [vmem:[%s1042_s2 + $0x28] sm:$0xff] }
   0xd   :  { %745 = vmatpush3.bf16.msra.mxu1 %v794_v12  ;;  %706 = vmatprep.subr.bf16.mxu0 %v795_v13  ;;  %v815_v33 = vld [vmem:[%s1041_s0] ss:$16 sps:$4 sm:$0xff]   ;;  %v817_v34 = vld [vmem:[%s1041_s0 + $0x4] ss:$16 sps:$4 sm:$0xff]   ;;  %v818_v35 = vld [vmem:[%s1041_s0 + $0x8] ss:$16 sps:$4 sm:$0xff]  }
   0xe   :  { %746 = vmatprep.subr.bf16.mxu1 %v796_v14  ;;  %v820_v36 = vld [vmem:[%s1041_s0 + $0xc] ss:$16 sps:$4 sm:$0xff]   ;;  %447 = vmatprep.mubr.bf16.mxu0 %v817_v34  ;;  %v821_v37 = vld [vmem:[%s1041_s0 + $0x24] ss:$16 sps:$4 sm:$0xff]   ;;  %v825_v39 = vld [vmem:[%s1041_s0 + $0x20] ss:$16 sps:$4 sm:$0xff]  }
   0xf   :  { %512 = vmatprep.mubr.bf16.mxu1 %v820_v36  ;;  %v823_v38 = vld [vmem:[%s1041_s0 + $0x2c] ss:$16 sps:$4 sm:$0xff]   ;;  %v826_v40 = vld [vmem:[%s1041_s0 + $0x28] ss:$16 sps:$4 sm:$0xff]   ;;  %v827_v41 = vld [vmem:[%s1041_s0 + $0x44] ss:$16 sps:$4 sm:$0xff]   ;;  %110 = vperm.xlu0 %781, %v96_v45  }
  0x10   :  { %707 = vmatpush3.bf16.msra.mxu0 %v797_v15  ;;  %v829_v42 = vld [vmem:[%s1041_s0 + $0x4c] ss:$16 sps:$4 sm:$0xff]   ;;  %v97_v44 = vld [vmem:[%s1042_s2 + $0x10] sm:$0xff]  ;;  %v832_v49 = vld [vmem:[%s1041_s0 + $0x48] ss:$16 sps:$4 sm:$0xff]  }
  0x11   :  { %747 = vmatpush3.bf16.msra.mxu1 %v798_v16  ;;  %708 = vmatprep.subr.bf16.mxu0 %v799_v17  ;;  %v98_v46 = vld [vmem:[%s1042_s2 + $0x18] sm:$0xff]  ;;  %v831_v47 = vld [vmem:[%s1041_s0 + $0x40] ss:$16 sps:$4 sm:$0xff]   ;;  %v833_v50 = vld [vmem:[%s1041_s0 + $0x64] ss:$16 sps:$4 sm:$0xff]  }
  0x12   :  { %748 = vmatprep.subr.bf16.mxu1 %v800_v18  ;;  %115 = vperm.xlu1 %782, %v97_v44   ;;  %v835_v52 = vld [vmem:[%s1041_s0 + $0x6c] ss:$16 sps:$4 sm:$0xff]   ;;  %v101_v53 = vld [vmem:[%s1042_s2 + $0x30] sm:$0xff]  ;;  %v838_v56 = vld [vmem:[%s1041_s0 + $0x68] ss:$16 sps:$4 sm:$0xff]  }
  0x13   :  { %125 = vperm.xlu0 %781, %v99_v48   ;;  %v102_v54 = vld [vmem:[%s1042_s2 + $0x38] sm:$0xff]  ;;  %v837_v55 = vld [vmem:[%s1041_s0 + $0x60] ss:$16 sps:$4 sm:$0xff]  }
  0x14   :  { %709 = vmatpush3.bf16.msra.mxu0 %v801_v19 }
  0x15   :  { %749 = vmatpush3.bf16.msra.mxu1 %v802_v20  ;;  %710 = vmatprep.subr.bf16.mxu0 %v803_v21 }
  0x16   :  { %750 = vmatprep.subr.bf16.mxu1 %v804_v22  ;;  %120 = vperm.xlu1 %782, %v98_v46  }
  0x17   :  { %135 = vperm.xlu0 %781, %v101_v53  }
  0x18   :  { %711 = vmatpush3.bf16.msra.mxu0 %v805_v23 }
  0x19   :  { %751 = vmatpush3.bf16.msra.mxu1 %v806_v24  ;;  %712 = vmatprep.subr.bf16.mxu0 %v807_v25 }
  0x1a   :  { %752 = vmatprep.subr.bf16.mxu1 %v808_v26  ;;  %130 = vperm.xlu1 %782, %v100_v51  }
  0x1c   :  { %713 = vmatpush3.bf16.msra.mxu0 %v809_v27 }
  0x1d   :  { %753 = vmatpush3.bf16.msra.mxu1 %v810_v28  ;;  %714 = vmatprep.subr.bf16.mxu0 %v811_v29 }
  0x1e   :  { %754 = vmatprep.subr.bf16.mxu1 %v812_v30  ;;  %140 = vperm.xlu1 %782, %v102_v54  }
  0x20   :  { %715 = vmatpush3.bf16.msra.mxu0 %v813_v31 }
  0x21   :  { %755 = vmatpush3.bf16.msra.mxu1 %v814_v32 }
  0x23   :  { %448 = vmatmul.mubr.bf16.vlgmr.msra.gmra.mrb[0].mxu0 %v815_v33 }
  0x24   :  { %513 = vmatmul.mubr.bf16.vlgmr.msra.gmra.mrb[0].mxu1 %v818_v35  ;;  %455 = vmatprep.mubr.bf16.mxu0 %v821_v37 }
  0x25   :  { %520 = vmatprep.mubr.bf16.mxu1 %v823_v38 }
  0x2b   :  { %456 = vmatmul.mubr.bf16.gmra.mrb[4].mxu0 %v825_v39 }
  0x2c   :  { %521 = vmatmul.mubr.bf16.gmra.mrb[4].mxu1 %v826_v40  ;;  %463 = vmatprep.mubr.bf16.mxu0 %v827_v41 }
  0x2d   :  { %528 = vmatprep.mubr.bf16.mxu1 %v829_v42 }
  0x33   :  { %464 = vmatmul.mubr.bf16.gmra.mrb[8].mxu0 %v831_v47 }
  0x34   :  { %529 = vmatmul.mubr.bf16.gmra.mrb[8].mxu1 %v832_v49  ;;  %471 = vmatprep.mubr.bf16.mxu0 %v833_v50 }
  0x35   :  { %536 = vmatprep.mubr.bf16.mxu1 %v835_v52 }
  0x3b   :  { %472 = vmatmul.mubr.bf16.gmra.mrb[12].mxu0 %v837_v55 }
  0x3c   :  { %537 = vmatmul.mubr.bf16.gmra.mrb[12].mxu1 %v838_v56 }
  0x89   :  { %v106_v57 = vpop.permute.xlu0 %105 }
  0x8e   :  { %v111_v59 = vpop.permute.xlu0 %110 }
  0x91   :  { %v116_v10 = vpop.permute.xlu1 %115 }
  0x92   :  { %v126_v35 = vpop.permute.xlu0 %125 }
  0x95   :  { %v121_v29 = vpop.permute.xlu1 %120 }
  0x96   :  { %v136_v56 = vpop.permute.xlu0 %135 }
  0x99   :  { %v131_v52 = vpop.permute.xlu1 %130 }
  0xf6   :  { %v716_v58 = vpop.f32.mrb[0].mxu0 }
  0xf7   :  { %v756_v60 = vpop.f32.mrb[0].mxu1  ;;  %v717_v61 = vpop.f32.mrb[1].mxu0 }
  0xf8   :  { %v718_v62 = vadd.f32 %v717_v61, %v716_v58  ;;  %v757_v63 = vpop.f32.mrb[1].mxu1  ;;  %v719_v0 = vpop.f32.mrb[2].mxu0 }
  0xf9   :  { %v758_v1 = vadd.f32 %v757_v63, %v756_v60  ;;  %v759_v2 = vpop.f32.mrb[2].mxu1  ;;  %v720_v3 = vpop.f32.mrb[3].mxu0 }
  0xfa   :  { %v450_v4 = vadd.f32 %v718_v62, %v106_v57  ;;  %v721_v5 = vadd.f32 %v720_v3, %v719_v0  ;;  %v760_v6 = vpop.f32.mrb[3].mxu1 }
  0xfb   :  { %v761_v7 = vadd.f32 %v760_v6, %v759_v2 }
  0xfc   :  { %v515_v8 = vadd.f32 %v758_v1, %v450_v4  ;;  %v453_v9 = vadd.f32 %v721_v5, %v111_v59 }
  0xfe   :  { %v553_v11 = vmul.f32 0.2, %v515_v8  ;;  %v518_v12 = vadd.f32 %v761_v7, %v453_v9  ;;  %v722_v13 = vpop.f32.mrb[4].mxu0  ;;  %vm545_vm0 = vcmp.gt.f32.partialorder %v515_v8, 0.0 }
  0xff   :  { %v762_v14 = vpop.f32.mrb[4].mxu1  ;;  %v723_v15 = vpop.f32.mrb[5].mxu0 }
 0x100   :  { %vm546_vm1 = vcmp.gt.f32.partialorder %v518_v12, 0.0  ;;  %v554_v16 = vmul.f32 0.2, %v518_v12  ;;  %v724_v17 = vadd.f32 %v723_v15, %v722_v13  ;;  %v763_v18 = vpop.f32.mrb[5].mxu1  ;;  %v725_v19 = vpop.f32.mrb[6].mxu0  ;;  %v561_v23 = vsel %vm545_vm0, %v515_v8, %v553_v11 }
 0x101   :  { %v764_v20 = vadd.f32 %v763_v18, %v762_v14  ;;  %v765_v21 = vpop.f32.mrb[6].mxu1  ;;  %v726_v22 = vpop.f32.mrb[7].mxu0 }
 0x102   :  { %v562_v24 = vsel %vm546_vm1, %v518_v12, %v554_v16  ;;  %v458_v25 = vadd.f32 %v724_v17, %v116_v10  ;;  %v727_v26 = vadd.f32 %v726_v22, %v725_v19  ;;  %v766_v27 = vpop.f32.mrb[7].mxu1  ;;  %v141_v10 = vpop.permute.xlu1 %140 }
 0x103   :  { %v680_v28 = vpack.c.bf16 %v562_v24, %v561_v23  ;;  %v767_v30 = vadd.f32 %v766_v27, %v765_v21 }
 0x104   :  { %v523_v31 = vadd.f32 %v764_v20, %v458_v25  ;;  %v461_v32 = vadd.f32 %v727_v26, %v121_v29 }
 0x105   :  { %681 = vst [vmem:[%s1043_s3] sm:$0xff] %v680_v28  }
 0x106   :  { %v555_v33 = vmul.f32 0.2, %v523_v31  ;;  %v526_v34 = vadd.f32 %v767_v30, %v461_v32  ;;  %v728_v36 = vpop.f32.mrb[8].mxu0  ;;  %vm547_vm2 = vcmp.gt.f32.partialorder %v523_v31, 0.0 }
 0x107   :  { %v768_v37 = vpop.f32.mrb[8].mxu1  ;;  %v729_v38 = vpop.f32.mrb[9].mxu0 }
 0x108   :  { %vm548_vm3 = vcmp.gt.f32.partialorder %v526_v34, 0.0  ;;  %v556_v39 = vmul.f32 0.2, %v526_v34  ;;  %v730_v40 = vadd.f32 %v729_v38, %v728_v36  ;;  %v769_v41 = vpop.f32.mrb[9].mxu1  ;;  %v731_v42 = vpop.f32.mrb[10].mxu0  ;;  %v563_v46 = vsel %vm547_vm2, %v523_v31, %v555_v33 }
 0x109   :  { %v770_v43 = vadd.f32 %v769_v41, %v768_v37  ;;  %v771_v44 = vpop.f32.mrb[10].mxu1  ;;  %v732_v45 = vpop.f32.mrb[11].mxu0 }
 0x10a   :  { %v564_v47 = vsel %vm548_vm3, %v526_v34, %v556_v39  ;;  %v466_v48 = vadd.f32 %v730_v40, %v126_v35  ;;  %v733_v49 = vadd.f32 %v732_v45, %v731_v42  ;;  %v772_v50 = vpop.f32.mrb[11].mxu1 }
 0x10b   :  { %v685_v51 = vpack.c.bf16 %v564_v47, %v563_v46  ;;  %v773_v53 = vadd.f32 %v772_v50, %v771_v44 }
 0x10c   :  { %v531_v54 = vadd.f32 %v770_v43, %v466_v48  ;;  %v469_v55 = vadd.f32 %v733_v49, %v131_v52 }
 0x10d   :  { %697 = vst [vmem:[%s1043_s3 + $0x8] sm:$0xff] %v685_v51  }
 0x10e   :  { %v557_v57 = vmul.f32 0.2, %v531_v54  ;;  %v534_v58 = vadd.f32 %v773_v53, %v469_v55  ;;  %v734_v59 = vpop.f32.mrb[12].mxu0  ;;  %vm549_vm4 = vcmp.gt.f32.partialorder %v531_v54, 0.0 }
 0x10f   :  { %v774_v60 = vpop.f32.mrb[12].mxu1  ;;  %v735_v61 = vpop.f32.mrb[13].mxu0 }
 0x110   :  { %vm550_vm5 = vcmp.gt.f32.partialorder %v534_v58, 0.0  ;;  %v558_v62 = vmul.f32 0.2, %v534_v58  ;;  %v736_v63 = vadd.f32 %v735_v61, %v734_v59  ;;  %v775_v0 = vpop.f32.mrb[13].mxu1  ;;  %v737_v1 = vpop.f32.mrb[14].mxu0  ;;  %v565_v5 = vsel %vm549_vm4, %v531_v54, %v557_v57 }
 0x111   :  { %v776_v2 = vadd.f32 %v775_v0, %v774_v60  ;;  %v777_v3 = vpop.f32.mrb[14].mxu1  ;;  %v738_v4 = vpop.f32.mrb[15].mxu0 }
 0x112   :  { %v566_v6 = vsel %vm550_vm5, %v534_v58, %v558_v62  ;;  %v474_v7 = vadd.f32 %v736_v63, %v136_v56  ;;  %v739_v8 = vadd.f32 %v738_v4, %v737_v1  ;;  %v778_v9 = vpop.f32.mrb[15].mxu1 }
 0x113   :  { %v690_v11 = vpack.c.bf16 %v566_v6, %v565_v5  ;;  %v779_v12 = vadd.f32 %v778_v9, %v777_v3 }
 0x114   :  { %v539_v13 = vadd.f32 %v776_v2, %v474_v7  ;;  %v477_v14 = vadd.f32 %v739_v8, %v141_v10 }
 0x115   :  { %698 = vst [vmem:[%s1043_s3 + $0x10] sm:$0xff] %v690_v11  }
 0x116   :  { %v559_v15 = vmul.f32 0.2, %v539_v13  ;;  %v542_v16 = vadd.f32 %v779_v12, %v477_v14  ;;  %vm551_vm6 = vcmp.gt.f32.partialorder %v539_v13, 0.0 }
 0x118   :  { %vm552_vm7 = vcmp.gt.f32.partialorder %v542_v16, 0.0  ;;  %v560_v17 = vmul.f32 0.2, %v542_v16  ;;  %v567_v18 = vsel %vm551_vm6, %v539_v13, %v559_v15 }
 0x11a   :  { %v568_v19 = vsel %vm552_vm7, %v542_v16, %v560_v17 }
 0x11b   :  { %v695_v20 = vpack.c.bf16 %v568_v19, %v567_v18 }
 0x11d   :  { %699 = vst [vmem:[%s1043_s3 + $0x18] sm:$0xff] %v695_v20  }

// kernel: discriminator_forward.9
= control target key start
LH: loop header
LB: loop body
LE: loop exit
PB: predicated region body
PF: predicated region fallthrough
CT: control target
= control target key end

     0   :  { %v1914_v1 = vmov 0   ;;  %s2463_s1 = inlined_call_operand.vmem [shape: bf16[1024,128], index: 1, kind: input, shape index: {}]   ;;  %s2464_s0 = inlined_call_operand.vmem [shape: bf16[128,1024], index: 0, kind: input, shape index: {}]   ;;  %s2465_s2 = inlined_call_operand.vmem [shape: f32[128,1], index: 2, kind: input, shape index: {}]   ;;  %s2466_s3 = inlined_call_operand.vmem [shape: f32[128,128], index: 3, kind: output, shape index: {}]  }
   0x1   :  { %v1850_v0 = vld [vmem:[%s2463_s1 + $0x40] sm:$0xff]   ;;  %1848 = vset.pattern.permute.xlu0 %v1914_v1  ;;  %1849 = vset.pattern.permute.xlu1 %v1914_v1  ;;  %v1854_v5 = vld [vmem:[%s2463_s1 + $0x48] sm:$0xff]   ;;  %v1858_v9 = vld [vmem:[%s2463_s1 + $0x50] sm:$0xff]  }
   0x2   :  { %v1851_v2 = vld [vmem:[%s2463_s1 + $0xc0] sm:$0xff]   ;;  %1591 = vmatprep.subr.bf16.mxu0 %v1850_v0  ;;  %v1855_v6 = vld [vmem:[%s2463_s1 + $0xc8] sm:$0xff]   ;;  %v1859_v10 = vld [vmem:[%s2463_s1 + $0xd0] sm:$0xff]  }
   0x3   :  { %v1852_v3 = vld [vmem:[%s2463_s1] sm:$0xff]   ;;  %1655 = vmatprep.subr.bf16.mxu1 %v1851_v2  ;;  %v1856_v7 = vld [vmem:[%s2463_s1 + $0x8] sm:$0xff]   ;;  %v1860_v11 = vld [vmem:[%s2463_s1 + $0x10] sm:$0xff]  }
   0x4   :  { %v1853_v4 = vld [vmem:[%s2463_s1 + $0x80] sm:$0xff]   ;;  %1592 = vmatpush3.bf16.msra.mxu0 %v1852_v3  ;;  %v1857_v8 = vld [vmem:[%s2463_s1 + $0x88] sm:$0xff]   ;;  %v1861_v12 = vld [vmem:[%s2463_s1 + $0x90] sm:$0xff]  }
   0x5   :  { %1656 = vmatpush3.bf16.msra.mxu1 %v1853_v4  ;;  %1593 = vmatprep.subr.bf16.mxu0 %v1854_v5  ;;  %v1862_v13 = vld [vmem:[%s2463_s1 + $0x58] sm:$0xff]   ;;  %v1866_v17 = vld [vmem:[%s2463_s1 + $0x60] sm:$0xff]   ;;  %v1870_v21 = vld [vmem:[%s2463_s1 + $0x68] sm:$0xff]  }
   0x6   :  { %1657 = vmatprep.subr.bf16.mxu1 %v1855_v6  ;;  %v1863_v14 = vld [vmem:[%s2463_s1 + $0xd8] sm:$0xff]   ;;  %v1867_v18 = vld [vmem:[%s2463_s1 + $0xe0] sm:$0xff]   ;;  %v1871_v22 = vld [vmem:[%s2463_s1 + $0xe8] sm:$0xff]  }
   0x7   :  { %v1864_v15 = vld [vmem:[%s2463_s1 + $0x18] sm:$0xff]   ;;  %v1868_v19 = vld [vmem:[%s2463_s1 + $0x20] sm:$0xff]   ;;  %v1872_v23 = vld [vmem:[%s2463_s1 + $0x28] sm:$0xff]  }
   0x8   :  { %1594 = vmatpush3.bf16.msra.mxu0 %v1856_v7  ;;  %v1865_v16 = vld [vmem:[%s2463_s1 + $0x98] sm:$0xff]   ;;  %v1869_v20 = vld [vmem:[%s2463_s1 + $0xa0] sm:$0xff]   ;;  %v1873_v24 = vld [vmem:[%s2463_s1 + $0xa8] sm:$0xff]  }
   0x9   :  { %1658 = vmatpush3.bf16.msra.mxu1 %v1857_v8  ;;  %1595 = vmatprep.subr.bf16.mxu0 %v1858_v9  ;;  %v1874_v25 = vld [vmem:[%s2463_s1 + $0x70] sm:$0xff]   ;;  %v1878_v29 = vld [vmem:[%s2463_s1 + $0x78] sm:$0xff]   ;;  %v15_v33 = vld [vmem:[%s2464_s0] sm:$0xff] }
   0xa   :  { %1659 = vmatprep.subr.bf16.mxu1 %v1859_v10  ;;  %v1875_v26 = vld [vmem:[%s2463_s1 + $0xf0] sm:$0xff]   ;;  %v1879_v30 = vld [vmem:[%s2463_s1 + $0xf8] sm:$0xff]   ;;  %v19_v34 = vld [vmem:[%s2464_s0 + $0x20] sm:$0xff] }
   0xb   :  { %v1876_v27 = vld [vmem:[%s2463_s1 + $0x30] sm:$0xff]   ;;  %v1880_v31 = vld [vmem:[%s2463_s1 + $0x38] sm:$0xff]   ;;  %v16_v35 = vld [vmem:[%s2464_s0 + $0x8] sm:$0xff]  ;;  %v1463_v36 = vcombine.low %v15_v33, %v19_v34  ;;  %v1464_v37 = vcombine.high %v15_v33, %v19_v34 }
   0xc   :  { %1596 = vmatpush3.bf16.msra.mxu0 %v1860_v11  ;;  %v1877_v28 = vld [vmem:[%s2463_s1 + $0xb0] sm:$0xff]   ;;  %v1881_v32 = vld [vmem:[%s2463_s1 + $0xb8] sm:$0xff]   ;;  %v20_v38 = vld [vmem:[%s2464_s0 + $0x28] sm:$0xff] }
   0xd   :  { %1660 = vmatpush3.bf16.msra.mxu1 %v1861_v12  ;;  %1597 = vmatprep.subr.bf16.mxu0 %v1862_v13  ;;  %v1465_v39 = vcombine.low %v16_v35, %v20_v38  ;;  %v1466_v40 = vcombine.high %v16_v35, %v20_v38  ;;  %v1882_v41 = vld [vmem:[%s2463_s1 + $0x140] sm:$0xff]   ;;  %v24_v48 = vld [vmem:[%s2464_s0 + $0x48] sm:$0xff]  ;;  %v1890_v63 = vld [vmem:[%s2463_s1 + $0x150] sm:$0xff]  }
   0xe   :  { %1661 = vmatprep.subr.bf16.mxu1 %v1863_v14  ;;  %1039 = vmatprep.mubr.bf16.mxu0 %v1464_v37  ;;  %v1883_v42 = vld [vmem:[%s2463_s1 + $0x100] sm:$0xff]   ;;  %v28_v49 = vld [vmem:[%s2464_s0 + $0x68] sm:$0xff]  ;;  %v1891_v0 = vld [vmem:[%s2463_s1 + $0x110] sm:$0xff]  }
   0xf   :  { %1136 = vmatprep.mubr.bf16.mxu1 %v1466_v40  ;;  %v1884_v43 = vld [vmem:[%s2463_s1 + $0x1c0] sm:$0xff]   ;;  %v1474_v50 = vcombine.high %v24_v48, %v28_v49  ;;  %v1886_v51 = vld [vmem:[%s2463_s1 + $0x148] sm:$0xff]   ;;  %v1473_v54 = vcombine.low %v24_v48, %v28_v49  ;;  %v1892_v1 = vld [vmem:[%s2463_s1 + $0x1d0] sm:$0xff]  }
  0x10   :  { %1598 = vmatpush3.bf16.msra.mxu0 %v1864_v15  ;;  %v1885_v44 = vld [vmem:[%s2463_s1 + $0x180] sm:$0xff]   ;;  %v1887_v53 = vld [vmem:[%s2463_s1 + $0x108] sm:$0xff]   ;;  %v1893_v2 = vld [vmem:[%s2463_s1 + $0x190] sm:$0xff]  }
  0x11   :  { %1662 = vmatpush3.bf16.msra.mxu1 %v1865_v16  ;;  %1599 = vmatprep.subr.bf16.mxu0 %v1866_v17  ;;  %v23_v45 = vld [vmem:[%s2464_s0 + $0x40] sm:$0xff]  ;;  %v1888_v55 = vld [vmem:[%s2463_s1 + $0x1c8] sm:$0xff]   ;;  %v1894_v11 = vld [vmem:[%s2463_s1 + $0x158] sm:$0xff]  }
  0x12   :  { %1663 = vmatprep.subr.bf16.mxu1 %v1867_v18  ;;  %v27_v46 = vld [vmem:[%s2464_s0 + $0x60] sm:$0xff]  ;;  %v1889_v56 = vld [vmem:[%s2463_s1 + $0x188] sm:$0xff]   ;;  %v1895_v12 = vld [vmem:[%s2463_s1 + $0x118] sm:$0xff]  }
  0x13   :  { %v1472_v47 = vcombine.high %v23_v45, %v27_v46  ;;  %v1471_v52 = vcombine.low %v23_v45, %v27_v46  ;;  %v31_v57 = vld [vmem:[%s2464_s0 + $0x80] sm:$0xff]  ;;  %v32_v59 = vld [vmem:[%s2464_s0 + $0x88] sm:$0xff]  ;;  %v1896_v13 = vld [vmem:[%s2463_s1 + $0x1d8] sm:$0xff]  }
  0x14   :  { %1600 = vmatpush3.bf16.msra.mxu0 %v1868_v19  ;;  %v35_v58 = vld [vmem:[%s2464_s0 + $0xa0] sm:$0xff]  ;;  %v36_v60 = vld [vmem:[%s2464_s0 + $0xa8] sm:$0xff]  ;;  %v1897_v14 = vld [vmem:[%s2463_s1 + $0x198] sm:$0xff]  }
  0x15   :  { %1664 = vmatpush3.bf16.msra.mxu1 %v1869_v20  ;;  %1601 = vmatprep.subr.bf16.mxu0 %v1870_v21  ;;  %v1480_v61 = vcombine.high %v31_v57, %v35_v58  ;;  %v1482_v62 = vcombine.high %v32_v59, %v36_v60  ;;  %v1479_v3 = vcombine.low %v31_v57, %v35_v58  ;;  %v39_v4 = vld [vmem:[%s2464_s0 + $0xc0] sm:$0xff]  ;;  %v40_v6 = vld [vmem:[%s2464_s0 + $0xc8] sm:$0xff]  ;;  %v1907_v40 = vld [vmem:[%s2463_s1 + $0x130] sm:$0xff]  }
  0x16   :  { %1665 = vmatprep.subr.bf16.mxu1 %v1871_v22  ;;  %v43_v5 = vld [vmem:[%s2464_s0 + $0xe0] sm:$0xff]  ;;  %v1481_v7 = vcombine.low %v32_v59, %v36_v60  ;;  %v44_v9 = vld [vmem:[%s2464_s0 + $0xe8] sm:$0xff]  ;;  %v1911_v49 = vld [vmem:[%s2463_s1 + $0x138] sm:$0xff]  }
  0x17   :  { %v1488_v8 = vcombine.high %v39_v4, %v43_v5  ;;  %v1490_v10 = vcombine.high %v40_v6, %v44_v9  ;;  %v47_v15 = vld [vmem:[%s2464_s0 + $0x100] sm:$0xff]  ;;  %v48_v17 = vld [vmem:[%s2464_s0 + $0x108] sm:$0xff]  ;;  %v1487_v20 = vcombine.low %v39_v4, %v43_v5  ;;  %v1489_v22 = vcombine.low %v40_v6, %v44_v9  ;;  %v17_v4 = vld [vmem:[%s2464_s0 + $0x10] sm:$0xff] }
  0x18   :  { %1602 = vmatpush3.bf16.msra.mxu0 %v1872_v23  ;;  %v51_v16 = vld [vmem:[%s2464_s0 + $0x120] sm:$0xff]  ;;  %v52_v18 = vld [vmem:[%s2464_s0 + $0x128] sm:$0xff]  ;;  %v21_v5 = vld [vmem:[%s2464_s0 + $0x30] sm:$0xff] }
  0x19   :  { %1666 = vmatpush3.bf16.msra.mxu1 %v1873_v24  ;;  %1603 = vmatprep.subr.bf16.mxu0 %v1874_v25  ;;  %v1898_v19 = vld [vmem:[%s2463_s1 + $0x160] sm:$0xff]   ;;  %v1496_v23 = vcombine.high %v47_v15, %v51_v16  ;;  %v1498_v25 = vcombine.high %v48_v17, %v52_v18  ;;  %v1904_v33 = vld [vmem:[%s2463_s1 + $0x1e8] sm:$0xff]   ;;  %v1495_v35 = vcombine.low %v47_v15, %v51_v16  ;;  %v18_v6 = vld [vmem:[%s2464_s0 + $0x18] sm:$0xff] }
  0x1a   :  { %1667 = vmatprep.subr.bf16.mxu1 %v1875_v26  ;;  %v1899_v21 = vld [vmem:[%s2463_s1 + $0x120] sm:$0xff]   ;;  %v1905_v34 = vld [vmem:[%s2463_s1 + $0x1a8] sm:$0xff]   ;;  %v25_v16 = vld [vmem:[%s2464_s0 + $0x50] sm:$0xff] }
  0x1b   :  { %v1900_v24 = vld [vmem:[%s2463_s1 + $0x1e0] sm:$0xff]   ;;  %v64_v45 = vld [vmem:[%s2464_s0 + $0x188] sm:$0xff] }
  0x1c   :  { %1604 = vmatpush3.bf16.msra.mxu0 %v1876_v27  ;;  %v1901_v26 = vld [vmem:[%s2463_s1 + $0x1a0] sm:$0xff]   ;;  %v68_v46 = vld [vmem:[%s2464_s0 + $0x1a8] sm:$0xff] }
  0x1d   :  { %1668 = vmatpush3.bf16.msra.mxu1 %v1877_v28  ;;  %1605 = vmatprep.subr.bf16.mxu0 %v1878_v29  ;;  %v55_v27 = vld [vmem:[%s2464_s0 + $0x140] sm:$0xff]  ;;  %v1902_v29 = vld [vmem:[%s2463_s1 + $0x168] sm:$0xff]  }
  0x1e   :  { %1669 = vmatprep.subr.bf16.mxu1 %v1879_v30  ;;  %v59_v28 = vld [vmem:[%s2464_s0 + $0x160] sm:$0xff]  ;;  %v56_v30 = vld [vmem:[%s2464_s0 + $0x148] sm:$0xff] }
  0x1f   :  { %v1504_v37 = vcombine.high %v55_v27, %v59_v28  ;;  %v1503_v48 = vcombine.low %v55_v27, %v59_v28  ;;  %v207_v57 = vld [vmem:[%s2465_s2] sm:$0xff]  ;;  %v72_v58 = vld [vmem:[%s2464_s0 + $0x1c8] sm:$0xff]  ;;  %v33_v28 = vld [vmem:[%s2464_s0 + $0x90] sm:$0xff] }
  0x20   :  { %1606 = vmatpush3.bf16.msra.mxu0 %v1880_v31  ;;  %v60_v31 = vld [vmem:[%s2464_s0 + $0x168] sm:$0xff]  ;;  %225 = vperm.xlu0 %1848, %v207_v57   ;;  %v215_v15 = vld [vmem:[%s2465_s2 + $0x40] sm:$0xff]  ;;  %v58_v57 = vld [vmem:[%s2464_s0 + $0x158] sm:$0xff] }
  0x21   :  { %1670 = vmatpush3.bf16.msra.mxu1 %v1881_v32  ;;  %1719 = vmatprep.subr.bf16.mxu0 %v1882_v41  ;;  %v1903_v32 = vld [vmem:[%s2463_s1 + $0x128] sm:$0xff]   ;;  %v1506_v38 = vcombine.high %v56_v30, %v60_v31  ;;  %v1908_v41 = vld [vmem:[%s2463_s1 + $0x1f0] sm:$0xff]   ;;  %v219_v27 = vld [vmem:[%s2465_s2 + $0x60] sm:$0xff] }
  0x22   :  { %1783 = vmatprep.subr.bf16.mxu1 %v1884_v43  ;;  %v67_v43 = vld [vmem:[%s2464_s0 + $0x1a0] sm:$0xff]  ;;  %v76_v59 = vld [vmem:[%s2464_s0 + $0x1e8] sm:$0xff] }
  0x23   :  { %1040 = vmatmul.mubr.bf16.vlgmr.msra.gmra.mrb[0].mxu0 %v1463_v36  ;;  %v1497_v36 = vcombine.low %v48_v17, %v52_v18  ;;  %v29_v17 = vld [vmem:[%s2464_s0 + $0x70] sm:$0xff]  ;;  %v26_v18 = vld [vmem:[%s2464_s0 + $0x58] sm:$0xff] }
  0x24   :  { %1137 = vmatmul.mubr.bf16.vlgmr.msra.gmra.mrb[0].mxu1 %v1465_v39  ;;  %1720 = vmatpush3.bf16.msra.mxu0 %v1883_v42  ;;  %v1906_v39 = vld [vmem:[%s2463_s1 + $0x170] sm:$0xff]   ;;  %v63_v42 = vld [vmem:[%s2464_s0 + $0x180] sm:$0xff] }
  0x25   :  { %1784 = vmatpush3.bf16.msra.mxu1 %v1885_v44  ;;  %1047 = vmatprep.mubr.bf16.mxu0 %v1472_v47  ;;  %v1909_v44 = vld [vmem:[%s2463_s1 + $0x1b0] sm:$0xff]   ;;  %v1910_v47 = vld [vmem:[%s2463_s1 + $0x178] sm:$0xff]   ;;  %v1511_v60 = vcombine.low %v63_v42, %v67_v43 }
  0x26   :  { %1144 = vmatprep.mubr.bf16.mxu1 %v1474_v50  ;;  %1721 = vmatprep.subr.bf16.mxu0 %v1886_v51  ;;  %v1505_v50 = vcombine.low %v56_v30, %v60_v31  ;;  %v1512_v51 = vcombine.high %v63_v42, %v67_v43  ;;  %v34_v30 = vld [vmem:[%s2464_s0 + $0x98] sm:$0xff] }
  0x27   :  { %1785 = vmatprep.subr.bf16.mxu1 %v1888_v55  ;;  %v71_v55 = vld [vmem:[%s2464_s0 + $0x1c0] sm:$0xff]  ;;  %v38_v31 = vld [vmem:[%s2464_s0 + $0xb8] sm:$0xff] }
  0x28   :  { %1722 = vmatpush3.bf16.msra.mxu0 %v1887_v53  ;;  %v1514_v53 = vcombine.high %v64_v45, %v68_v46  ;;  %v46_v42 = vld [vmem:[%s2464_s0 + $0xf8] sm:$0xff] }
  0x29   :  { %1786 = vmatpush3.bf16.msra.mxu1 %v1889_v56  ;;  %1723 = vmatprep.subr.bf16.mxu0 %v1890_v63  ;;  %v75_v56 = vld [vmem:[%s2464_s0 + $0x1e0] sm:$0xff]  ;;  %v1513_v63 = vcombine.low %v64_v45, %v68_v46 }
  0x2a   :  { %1787 = vmatprep.subr.bf16.mxu1 %v1892_v1  ;;  %v1522_v1 = vcombine.high %v72_v58, %v76_v59  ;;  %v1519_v9 = vcombine.low %v71_v55, %v75_v56 }
  0x2b   :  { %1048 = vmatmul.mubr.bf16.gmra.mrb[4].mxu0 %v1471_v52  ;;  %v1912_v52 = vld [vmem:[%s2463_s1 + $0x1f8] sm:$0xff]  }
  0x2c   :  { %1145 = vmatmul.mubr.bf16.gmra.mrb[4].mxu1 %v1473_v54  ;;  %1055 = vmatprep.mubr.bf16.mxu0 %v1480_v61  ;;  %v1913_v54 = vld [vmem:[%s2463_s1 + $0x1b8] sm:$0xff]   ;;  %v208_v61 = vld [vmem:[%s2465_s2 + $0x8] sm:$0xff] }
  0x2d   :  { %1152 = vmatprep.mubr.bf16.mxu1 %v1482_v62  ;;  %1724 = vmatpush3.bf16.msra.mxu0 %v1891_v0  ;;  %v209_v62 = vld [vmem:[%s2465_s2 + $0x10] sm:$0xff]  ;;  %v1520_v0 = vcombine.high %v71_v55, %v75_v56 }
  0x2e   :  { %1788 = vmatpush3.bf16.msra.mxu1 %v1893_v2  ;;  %1725 = vmatprep.subr.bf16.mxu0 %v1894_v11  ;;  %v210_v2 = vld [vmem:[%s2465_s2 + $0x18] sm:$0xff]  ;;  %v1521_v11 = vcombine.low %v72_v58, %v76_v59  ;;  %v57_v55 = vld [vmem:[%s2464_s0 + $0x150] sm:$0xff] }
  0x2f   :  { %1789 = vmatprep.subr.bf16.mxu1 %v1896_v13  ;;  %235 = vperm.xlu1 %1849, %v209_v62   ;;  %v61_v56 = vld [vmem:[%s2464_s0 + $0x170] sm:$0xff]  ;;  %v62_v58 = vld [vmem:[%s2464_s0 + $0x178] sm:$0xff] }
  0x30   :  { %230 = vperm.xlu0 %1848, %v208_v61   ;;  %v1508_v61 = vcombine.high %v57_v55, %v61_v56  ;;  %v1510_v62 = vcombine.high %v58_v57, %v62_v58 }
  0x31   :  { %1726 = vmatpush3.bf16.msra.mxu0 %v1895_v12  ;;  %v1468_v12 = vcombine.high %v17_v4, %v21_v5 }
  0x32   :  { %1790 = vmatpush3.bf16.msra.mxu1 %v1897_v14  ;;  %1727 = vmatprep.subr.bf16.mxu0 %v1898_v19  ;;  %v214_v14 = vld [vmem:[%s2465_s2 + $0x38] sm:$0xff] }
  0x33   :  { %1056 = vmatmul.mubr.bf16.gmra.mrb[8].mxu0 %v1479_v3  ;;  %1791 = vmatprep.subr.bf16.mxu1 %v1900_v24  ;;  %v211_v3 = vld [vmem:[%s2465_s2 + $0x20] sm:$0xff]  ;;  %v30_v19 = vld [vmem:[%s2464_s0 + $0x78] sm:$0xff]  ;;  %v1476_v24 = vcombine.high %v25_v16, %v29_v17 }
  0x34   :  { %1153 = vmatmul.mubr.bf16.gmra.mrb[8].mxu1 %v1481_v7  ;;  %1063 = vmatprep.mubr.bf16.mxu0 %v1488_v8  ;;  %v22_v7 = vld [vmem:[%s2464_s0 + $0x38] sm:$0xff]  ;;  %v212_v8 = vld [vmem:[%s2465_s2 + $0x28] sm:$0xff] }
  0x35   :  { %1160 = vmatprep.mubr.bf16.mxu1 %v1490_v10  ;;  %1728 = vmatpush3.bf16.msra.mxu0 %v1899_v21  ;;  %v213_v10 = vld [vmem:[%s2465_s2 + $0x30] sm:$0xff]  ;;  %v1470_v13 = vcombine.high %v18_v6, %v22_v7  ;;  %v1467_v21 = vcombine.low %v17_v4, %v21_v5  ;;  %v1509_v4 = vcombine.low %v58_v57, %v62_v58 }
  0x36   :  { %1792 = vmatpush3.bf16.msra.mxu1 %v1901_v26  ;;  %1729 = vmatprep.subr.bf16.mxu0 %v1902_v29  ;;  %v218_v26 = vld [vmem:[%s2465_s2 + $0x58] sm:$0xff]  ;;  %v37_v29 = vld [vmem:[%s2464_s0 + $0xb0] sm:$0xff] }
  0x37   :  { %1793 = vmatprep.subr.bf16.mxu1 %v1904_v33  ;;  %240 = vperm.xlu1 %1849, %v210_v2   ;;  %v1475_v33 = vcombine.low %v25_v16, %v29_v17  ;;  %v1483_v43 = vcombine.low %v33_v28, %v37_v29  ;;  %v70_v2 = vld [vmem:[%s2464_s0 + $0x1b8] sm:$0xff] }
  0x38   :  { %245 = vperm.xlu0 %1848, %v211_v3   ;;  %v1507_v3 = vcombine.low %v57_v55, %v61_v56 }
  0x39   :  { %1730 = vmatpush3.bf16.msra.mxu0 %v1903_v32  ;;  %v220_v32 = vld [vmem:[%s2465_s2 + $0x68] sm:$0xff] }
  0x3a   :  { %1794 = vmatpush3.bf16.msra.mxu1 %v1905_v34  ;;  %1731 = vmatprep.subr.bf16.mxu0 %v1906_v39  ;;  %v221_v34 = vld [vmem:[%s2465_s2 + $0x70] sm:$0xff] }
  0x3b   :  { %1064 = vmatmul.mubr.bf16.gmra.mrb[12].mxu0 %v1487_v20  ;;  %1795 = vmatprep.subr.bf16.mxu1 %v1908_v41  ;;  %v216_v20 = vld [vmem:[%s2465_s2 + $0x48] sm:$0xff]  ;;  %v41_v39 = vld [vmem:[%s2464_s0 + $0xd0] sm:$0xff]  ;;  %v42_v41 = vld [vmem:[%s2464_s0 + $0xd8] sm:$0xff] }
  0x3c   :  { %1161 = vmatmul.mubr.bf16.gmra.mrb[12].mxu1 %v1489_v22  ;;  %1071 = vmatprep.mubr.bf16.mxu0 %v1496_v23  ;;  %v217_v22 = vld [vmem:[%s2465_s2 + $0x50] sm:$0xff]  ;;  %v1469_v23 = vcombine.low %v18_v6, %v22_v7  ;;  %v1494_v46 = vcombine.high %v42_v41, %v46_v42 }
  0x3d   :  { %1168 = vmatprep.mubr.bf16.mxu1 %v1498_v25  ;;  %1732 = vmatpush3.bf16.msra.mxu0 %v1907_v40  ;;  %v1478_v25 = vcombine.high %v26_v18, %v30_v19  ;;  %v45_v40 = vld [vmem:[%s2464_s0 + $0xf0] sm:$0xff] }
  0x3e   :  { %1796 = vmatpush3.bf16.msra.mxu1 %v1909_v44  ;;  %1733 = vmatprep.subr.bf16.mxu0 %v1910_v47  ;;  %v1485_v44 = vcombine.low %v34_v30, %v38_v31  ;;  %v1492_v45 = vcombine.high %v41_v39, %v45_v40  ;;  %v49_v47 = vld [vmem:[%s2464_s0 + $0x110] sm:$0xff] }
  0x3f   :  { %1797 = vmatprep.subr.bf16.mxu1 %v1912_v52  ;;  %250 = vperm.xlu1 %1849, %v212_v8   ;;  %v1493_v52 = vcombine.low %v42_v41, %v46_v42  ;;  %v73_v7 = vld [vmem:[%s2464_s0 + $0x1d0] sm:$0xff] }
  0x40   :  { %255 = vperm.xlu0 %1848, %v213_v10   ;;  %v77_v8 = vld [vmem:[%s2464_s0 + $0x1f0] sm:$0xff]  ;;  %v78_v10 = vld [vmem:[%s2464_s0 + $0x1f8] sm:$0xff] }
  0x41   :  { %1734 = vmatpush3.bf16.msra.mxu0 %v1911_v49  ;;  %v50_v49 = vld [vmem:[%s2464_s0 + $0x118] sm:$0xff] }
  0x42   :  { %1798 = vmatpush3.bf16.msra.mxu1 %v1913_v54 }
  0x43   :  { %1072 = vmatmul.mubr.bf16.gmra.mrb[16].mxu0 %v1495_v35  ;;  %260 = vperm.xlu1 %1849, %v214_v14   ;;  %v1477_v35 = vcombine.low %v26_v18, %v30_v19 }
  0x44   :  { %1169 = vmatmul.mubr.bf16.gmra.mrb[16].mxu1 %v1497_v36  ;;  %1079 = vmatprep.mubr.bf16.mxu0 %v1504_v37  ;;  %v1484_v36 = vcombine.high %v33_v28, %v37_v29  ;;  %v1486_v37 = vcombine.high %v34_v30, %v38_v31 }
  0x45   :  { %1176 = vmatprep.mubr.bf16.mxu1 %v1506_v38  ;;  %265 = vperm.xlu0 %1848, %v215_v15   ;;  %v222_v38 = vld [vmem:[%s2465_s2 + $0x78] sm:$0xff]  ;;  %v1523_v15 = vcombine.low %v73_v7, %v77_v8 }
  0x47   :  { %270 = vperm.xlu1 %1849, %v216_v20  }
  0x49   :  { %275 = vperm.xlu0 %1848, %v217_v22  }
  0x4b   :  { %1080 = vmatmul.mubr.bf16.gmra.mrb[20].mxu0 %v1503_v48  ;;  %280 = vperm.xlu1 %1849, %v218_v26   ;;  %v53_v48 = vld [vmem:[%s2464_s0 + $0x130] sm:$0xff] }
  0x4c   :  { %1177 = vmatmul.mubr.bf16.gmra.mrb[20].mxu1 %v1505_v50  ;;  %1087 = vmatprep.mubr.bf16.mxu0 %v1512_v51  ;;  %v54_v50 = vld [vmem:[%s2464_s0 + $0x138] sm:$0xff]  ;;  %v1491_v51 = vcombine.low %v41_v39, %v45_v40  ;;  %v1499_v59 = vcombine.low %v49_v47, %v53_v48 }
  0x4d   :  { %1184 = vmatprep.mubr.bf16.mxu1 %v1514_v53  ;;  %285 = vperm.xlu0 %1848, %v219_v27   ;;  %v1500_v53 = vcombine.high %v49_v47, %v53_v48  ;;  %v1502_v54 = vcombine.high %v50_v49, %v54_v50 }
  0x4f   :  { %290 = vperm.xlu1 %1849, %v220_v32  }
  0x51   :  { %295 = vperm.xlu0 %1848, %v221_v34  }
  0x53   :  { %1088 = vmatmul.mubr.bf16.gmra.mrb[24].mxu0 %v1511_v60  ;;  %300 = vperm.xlu1 %1849, %v222_v38   ;;  %v1501_v60 = vcombine.low %v50_v49, %v54_v50 }
  0x54   :  { %1185 = vmatmul.mubr.bf16.gmra.mrb[24].mxu1 %v1513_v63  ;;  %1095 = vmatprep.mubr.bf16.mxu0 %v1520_v0  ;;  %v65_v63 = vld [vmem:[%s2464_s0 + $0x190] sm:$0xff] }
  0x55   :  { %1192 = vmatprep.mubr.bf16.mxu1 %v1522_v1  ;;  %v69_v0 = vld [vmem:[%s2464_s0 + $0x1b0] sm:$0xff]  ;;  %v66_v1 = vld [vmem:[%s2464_s0 + $0x198] sm:$0xff] }
  0x56   :  { %v1516_v5 = vcombine.high %v65_v63, %v69_v0  ;;  %v1518_v6 = vcombine.high %v66_v1, %v70_v2 }
  0x5b   :  { %1096 = vmatmul.mubr.bf16.gmra.mrb[28].mxu0 %v1519_v9  ;;  %v74_v9 = vld [vmem:[%s2464_s0 + $0x1d8] sm:$0xff] }
  0x5c   :  { %1193 = vmatmul.mubr.bf16.gmra.mrb[28].mxu1 %v1521_v11  ;;  %1233 = vmatprep.mubr.bf16.mxu0 %v1468_v12  ;;  %v1515_v11 = vcombine.low %v65_v63, %v69_v0  ;;  %v1517_v12 = vcombine.low %v66_v1, %v70_v2  ;;  %v1526_v14 = vcombine.high %v74_v9, %v78_v10 }
  0x5d   :  { %1330 = vmatprep.mubr.bf16.mxu1 %v1470_v13  ;;  %v1524_v13 = vcombine.high %v73_v7, %v77_v8  ;;  %v1525_v16 = vcombine.low %v74_v9, %v78_v10 }
  0x63   :  { %1234 = vmatmul.mubr.bf16.vlgmr.msra.gmra.mrb[32].mxu0 %v1467_v21 }
  0x64   :  { %1331 = vmatmul.mubr.bf16.vlgmr.msra.gmra.mrb[32].mxu1 %v1469_v23  ;;  %1241 = vmatprep.mubr.bf16.mxu0 %v1476_v24 }
  0x65   :  { %1338 = vmatprep.mubr.bf16.mxu1 %v1478_v25 }
  0x6b   :  { %1242 = vmatmul.mubr.bf16.gmra.mrb[36].mxu0 %v1475_v33 }
  0x6c   :  { %1339 = vmatmul.mubr.bf16.gmra.mrb[36].mxu1 %v1477_v35  ;;  %1249 = vmatprep.mubr.bf16.mxu0 %v1484_v36 }
  0x6d   :  { %1346 = vmatprep.mubr.bf16.mxu1 %v1486_v37 }
  0x73   :  { %1250 = vmatmul.mubr.bf16.gmra.mrb[40].mxu0 %v1483_v43 }
  0x74   :  { %1347 = vmatmul.mubr.bf16.gmra.mrb[40].mxu1 %v1485_v44  ;;  %1257 = vmatprep.mubr.bf16.mxu0 %v1492_v45 }
  0x75   :  { %1354 = vmatprep.mubr.bf16.mxu1 %v1494_v46 }
  0x7b   :  { %1258 = vmatmul.mubr.bf16.gmra.mrb[44].mxu0 %v1491_v51 }
  0x7c   :  { %1355 = vmatmul.mubr.bf16.gmra.mrb[44].mxu1 %v1493_v52  ;;  %1265 = vmatprep.mubr.bf16.mxu0 %v1500_v53 }
  0x7d   :  { %1362 = vmatprep.mubr.bf16.mxu1 %v1502_v54 }
  0x83   :  { %1266 = vmatmul.mubr.bf16.gmra.mrb[48].mxu0 %v1499_v59 }
  0x84   :  { %1363 = vmatmul.mubr.bf16.gmra.mrb[48].mxu1 %v1501_v60  ;;  %1273 = vmatprep.mubr.bf16.mxu0 %v1508_v61 }
  0x85   :  { %1370 = vmatprep.mubr.bf16.mxu1 %v1510_v62 }
  0x8b   :  { %1274 = vmatmul.mubr.bf16.gmra.mrb[52].mxu0 %v1507_v3 }
  0x8c   :  { %1371 = vmatmul.mubr.bf16.gmra.mrb[52].mxu1 %v1509_v4  ;;  %1281 = vmatprep.mubr.bf16.mxu0 %v1516_v5 }
  0x8d   :  { %1378 = vmatprep.mubr.bf16.mxu1 %v1518_v6 }
  0x93   :  { %1282 = vmatmul.mubr.bf16.gmra.mrb[56].mxu0 %v1515_v11 }
  0x94   :  { %1379 = vmatmul.mubr.bf16.gmra.mrb[56].mxu1 %v1517_v12  ;;  %1289 = vmatprep.mubr.bf16.mxu0 %v1524_v13 }
  0x95   :  { %1386 = vmatprep.mubr.bf16.mxu1 %v1526_v14 }
  0x9b   :  { %1290 = vmatmul.mubr.bf16.gmra.mrb[60].mxu0 %v1523_v15 }
  0x9c   :  { %1387 = vmatmul.mubr.bf16.gmra.mrb[60].mxu1 %v1525_v16 }
  0x9f   :  { %v226_v17 = vpop.permute.xlu0 %225 }
  0xae   :  { %v236_v18 = vpop.permute.xlu1 %235 }
  0xaf   :  { %v231_v20 = vpop.permute.xlu0 %230 }
  0xb6   :  { %v241_v37 = vpop.permute.xlu1 %240 }
  0xb7   :  { %v246_v52 = vpop.permute.xlu0 %245 }
  0xbe   :  { %v251_v55 = vpop.permute.xlu1 %250 }
  0xbf   :  { %v256_v6 = vpop.permute.xlu0 %255 }
  0xc2   :  { %v261_v9 = vpop.permute.xlu1 %260 }
  0xf6   :  { %v1607_v19 = vpop.f32.mrb[0].mxu0 }
  0xf7   :  { %v1671_v21 = vpop.f32.mrb[0].mxu1  ;;  %v1608_v22 = vpop.f32.mrb[1].mxu0 }
  0xf8   :  { %v1609_v23 = vadd.f32 %v1608_v22, %v1607_v19  ;;  %v1672_v24 = vpop.f32.mrb[1].mxu1  ;;  %v1610_v25 = vpop.f32.mrb[2].mxu0 }
  0xf9   :  { %v1673_v26 = vadd.f32 %v1672_v24, %v1671_v21  ;;  %v1674_v27 = vpop.f32.mrb[2].mxu1  ;;  %v1611_v28 = vpop.f32.mrb[3].mxu0 }
  0xfa   :  { %v1042_v29 = vadd.f32 %v1609_v23, %v226_v17  ;;  %v1612_v30 = vadd.f32 %v1611_v28, %v1610_v25  ;;  %v1675_v31 = vpop.f32.mrb[3].mxu1  ;;  %v266_v24 = vpop.permute.xlu0 %265 }
  0xfb   :  { %v1676_v32 = vadd.f32 %v1675_v31, %v1674_v27  ;;  %v271_v27 = vpop.permute.xlu1 %270 }
  0xfc   :  { %v2367_v33 = vadd.f32 %v1673_v26, %v1042_v29  ;;  %v1045_v34 = vadd.f32 %v1612_v30, %v231_v20 }
  0xfe   :  { %v2369_v35 = vadd.f32 %v1676_v32, %v1045_v34  ;;  %v1613_v36 = vpop.f32.mrb[4].mxu0 }
  0xff   :  { %v1677_v38 = vpop.f32.mrb[4].mxu1  ;;  %v1614_v39 = vpop.f32.mrb[5].mxu0 }
 0x100   :  { %v1615_v40 = vadd.f32 %v1614_v39, %v1613_v36  ;;  %v1678_v41 = vpop.f32.mrb[5].mxu1  ;;  %v1616_v42 = vpop.f32.mrb[6].mxu0 }
 0x101   :  { %v1679_v43 = vadd.f32 %v1678_v41, %v1677_v38  ;;  %v1680_v44 = vpop.f32.mrb[6].mxu1  ;;  %v1617_v45 = vpop.f32.mrb[7].mxu0 }
 0x102   :  { %v1050_v46 = vadd.f32 %v1615_v40, %v236_v18  ;;  %v1618_v47 = vadd.f32 %v1617_v45, %v1616_v42  ;;  %v1681_v48 = vpop.f32.mrb[7].mxu1 }
 0x103   :  { %v1682_v49 = vadd.f32 %v1681_v48, %v1680_v44  ;;  %v276_v44 = vpop.permute.xlu0 %275 }
 0x104   :  { %v2371_v50 = vadd.f32 %v1679_v43, %v1050_v46  ;;  %v1053_v51 = vadd.f32 %v1618_v47, %v241_v37  ;;  %v281_v47 = vpop.permute.xlu1 %280 }
 0x106   :  { %v2373_v53 = vadd.f32 %v1682_v49, %v1053_v51  ;;  %v1619_v54 = vpop.f32.mrb[8].mxu0 }
 0x107   :  { %v1683_v56 = vpop.f32.mrb[8].mxu1  ;;  %v1620_v57 = vpop.f32.mrb[9].mxu0 }
 0x108   :  { %v1621_v58 = vadd.f32 %v1620_v57, %v1619_v54  ;;  %v1684_v59 = vpop.f32.mrb[9].mxu1  ;;  %v1622_v60 = vpop.f32.mrb[10].mxu0 }
 0x109   :  { %v1685_v61 = vadd.f32 %v1684_v59, %v1683_v56  ;;  %v1686_v62 = vpop.f32.mrb[10].mxu1  ;;  %v1623_v63 = vpop.f32.mrb[11].mxu0 }
 0x10a   :  { %v1058_v0 = vadd.f32 %v1621_v58, %v246_v52  ;;  %v1624_v1 = vadd.f32 %v1623_v63, %v1622_v60  ;;  %v1687_v2 = vpop.f32.mrb[11].mxu1 }
 0x10b   :  { %v1688_v3 = vadd.f32 %v1687_v2, %v1686_v62 }
 0x10c   :  { %v2375_v4 = vadd.f32 %v1685_v61, %v1058_v0  ;;  %v1061_v5 = vadd.f32 %v1624_v1, %v251_v55  ;;  %v286_v0 = vpop.permute.xlu0 %285 }
 0x10e   :  { %v2377_v7 = vadd.f32 %v1688_v3, %v1061_v5  ;;  %v1625_v8 = vpop.f32.mrb[12].mxu0  ;;  %v291_v3 = vpop.permute.xlu1 %290 }
 0x10f   :  { %v1689_v10 = vpop.f32.mrb[12].mxu1  ;;  %v1626_v11 = vpop.f32.mrb[13].mxu0 }
 0x110   :  { %v1627_v12 = vadd.f32 %v1626_v11, %v1625_v8  ;;  %v1690_v13 = vpop.f32.mrb[13].mxu1  ;;  %v1628_v14 = vpop.f32.mrb[14].mxu0 }
 0x111   :  { %v1691_v15 = vadd.f32 %v1690_v13, %v1689_v10  ;;  %v1692_v16 = vpop.f32.mrb[14].mxu1  ;;  %v1629_v17 = vpop.f32.mrb[15].mxu0 }
 0x112   :  { %v1066_v18 = vadd.f32 %v1627_v12, %v256_v6  ;;  %v1630_v19 = vadd.f32 %v1629_v17, %v1628_v14  ;;  %v1693_v20 = vpop.f32.mrb[15].mxu1 }
 0x113   :  { %v1694_v21 = vadd.f32 %v1693_v20, %v1692_v16  ;;  %v296_v20 = vpop.permute.xlu0 %295 }
 0x114   :  { %v2379_v22 = vadd.f32 %v1691_v15, %v1066_v18  ;;  %v1069_v23 = vadd.f32 %v1630_v19, %v261_v9 }
 0x116   :  { %v2381_v25 = vadd.f32 %v1694_v21, %v1069_v23  ;;  %v1631_v26 = vpop.f32.mrb[16].mxu0 }
 0x117   :  { %v1695_v28 = vpop.f32.mrb[16].mxu1  ;;  %v1632_v29 = vpop.f32.mrb[17].mxu0 }
 0x118   :  { %v1633_v30 = vadd.f32 %v1632_v29, %v1631_v26  ;;  %v1696_v31 = vpop.f32.mrb[17].mxu1  ;;  %v1634_v32 = vpop.f32.mrb[18].mxu0 }
 0x119   :  { %v1697_v34 = vadd.f32 %v1696_v31, %v1695_v28  ;;  %v1698_v36 = vpop.f32.mrb[18].mxu1  ;;  %v1635_v37 = vpop.f32.mrb[19].mxu0 }
 0x11a   :  { %v1074_v38 = vadd.f32 %v1633_v30, %v266_v24  ;;  %v1636_v39 = vadd.f32 %v1635_v37, %v1634_v32  ;;  %v1699_v40 = vpop.f32.mrb[19].mxu1  ;;  %v301_v24 = vpop.permute.xlu1 %300 }
 0x11b   :  { %v1700_v41 = vadd.f32 %v1699_v40, %v1698_v36 }
 0x11c   :  { %v2383_v42 = vadd.f32 %v1697_v34, %v1074_v38  ;;  %v1077_v43 = vadd.f32 %v1636_v39, %v271_v27 }
 0x11e   :  { %v2385_v45 = vadd.f32 %v1700_v41, %v1077_v43  ;;  %v1637_v46 = vpop.f32.mrb[20].mxu0 }
 0x11f   :  { %v1701_v48 = vpop.f32.mrb[20].mxu1  ;;  %v1638_v49 = vpop.f32.mrb[21].mxu0 }
 0x120   :  { %v1639_v51 = vadd.f32 %v1638_v49, %v1637_v46  ;;  %v1702_v52 = vpop.f32.mrb[21].mxu1  ;;  %v1640_v54 = vpop.f32.mrb[22].mxu0 }
 0x121   :  { %v1703_v55 = vadd.f32 %v1702_v52, %v1701_v48  ;;  %v1704_v56 = vpop.f32.mrb[22].mxu1  ;;  %v1641_v57 = vpop.f32.mrb[23].mxu0 }
 0x122   :  { %v1082_v58 = vadd.f32 %v1639_v51, %v276_v44  ;;  %v1642_v59 = vadd.f32 %v1641_v57, %v1640_v54  ;;  %v1705_v60 = vpop.f32.mrb[23].mxu1 }
 0x123   :  { %v1706_v61 = vadd.f32 %v1705_v60, %v1704_v56 }
 0x124   :  { %v2387_v62 = vadd.f32 %v1703_v55, %v1082_v58  ;;  %v1085_v63 = vadd.f32 %v1642_v59, %v281_v47 }
 0x126   :  { %v2389_v1 = vadd.f32 %v1706_v61, %v1085_v63  ;;  %v1643_v2 = vpop.f32.mrb[24].mxu0 }
 0x127   :  { %v1707_v5 = vpop.f32.mrb[24].mxu1  ;;  %v1644_v6 = vpop.f32.mrb[25].mxu0 }
 0x128   :  { %v1645_v8 = vadd.f32 %v1644_v6, %v1643_v2  ;;  %v1708_v9 = vpop.f32.mrb[25].mxu1  ;;  %v1646_v10 = vpop.f32.mrb[26].mxu0 }
 0x129   :  { %v1709_v11 = vadd.f32 %v1708_v9, %v1707_v5  ;;  %v1710_v12 = vpop.f32.mrb[26].mxu1  ;;  %v1647_v13 = vpop.f32.mrb[27].mxu0 }
 0x12a   :  { %v1090_v14 = vadd.f32 %v1645_v8, %v286_v0  ;;  %v1648_v15 = vadd.f32 %v1647_v13, %v1646_v10  ;;  %v1711_v16 = vpop.f32.mrb[27].mxu1 }
 0x12b   :  { %v1712_v17 = vadd.f32 %v1711_v16, %v1710_v12 }
 0x12c   :  { %v2391_v18 = vadd.f32 %v1709_v11, %v1090_v14  ;;  %v1093_v19 = vadd.f32 %v1648_v15, %v291_v3 }
 0x12e   :  { %v2393_v21 = vadd.f32 %v1712_v17, %v1093_v19  ;;  %v1649_v23 = vpop.f32.mrb[28].mxu0 }
 0x12f   :  { %v1713_v26 = vpop.f32.mrb[28].mxu1  ;;  %v1650_v27 = vpop.f32.mrb[29].mxu0 }
 0x130   :  { %v1651_v28 = vadd.f32 %v1650_v27, %v1649_v23  ;;  %v1714_v29 = vpop.f32.mrb[29].mxu1  ;;  %v1652_v30 = vpop.f32.mrb[30].mxu0 }
 0x131   :  { %v1715_v31 = vadd.f32 %v1714_v29, %v1713_v26  ;;  %v1716_v32 = vpop.f32.mrb[30].mxu1  ;;  %v1653_v34 = vpop.f32.mrb[31].mxu0 }
 0x132   :  { %v1098_v36 = vadd.f32 %v1651_v28, %v296_v20  ;;  %v1654_v37 = vadd.f32 %v1653_v34, %v1652_v30  ;;  %v1717_v38 = vpop.f32.mrb[31].mxu1 }
 0x133   :  { %v1718_v39 = vadd.f32 %v1717_v38, %v1716_v32 }
 0x134   :  { %v2395_v40 = vadd.f32 %v1715_v31, %v1098_v36  ;;  %v1101_v41 = vadd.f32 %v1654_v37, %v301_v24 }
 0x136   :  { %v2397_v43 = vadd.f32 %v1718_v39, %v1101_v41  ;;  %v1735_v44 = vpop.f32.mrb[32].mxu0 }
 0x137   :  { %v1799_v46 = vpop.f32.mrb[32].mxu1  ;;  %v1736_v47 = vpop.f32.mrb[33].mxu0 }
 0x138   :  { %v1737_v48 = vadd.f32 %v1736_v47, %v1735_v44  ;;  %v1800_v49 = vpop.f32.mrb[33].mxu1  ;;  %v1738_v51 = vpop.f32.mrb[34].mxu0 }
 0x139   :  { %v1801_v52 = vadd.f32 %v1800_v49, %v1799_v46  ;;  %v1802_v54 = vpop.f32.mrb[34].mxu1  ;;  %v1739_v55 = vpop.f32.mrb[35].mxu0 }
 0x13a   :  { %v1236_v56 = vadd.f32 %v1737_v48, %v2367_v33  ;;  %v1740_v57 = vadd.f32 %v1739_v55, %v1738_v51  ;;  %v1803_v58 = vpop.f32.mrb[35].mxu1 }
 0x13b   :  { %v1804_v59 = vadd.f32 %v1803_v58, %v1802_v54 }
 0x13c   :  { %v1333_v60 = vadd.f32 %v1801_v52, %v1236_v56  ;;  %v1239_v61 = vadd.f32 %v1740_v57, %v2369_v35 }
 0x13e   :  { %vm1395_vm0 = vcmp.gt.f32.partialorder %v1333_v60, 0.0  ;;  %v1411_v63 = vmul.f32 0.2, %v1333_v60  ;;  %v1336_v0 = vadd.f32 %v1804_v59, %v1239_v61  ;;  %v1741_v2 = vpop.f32.mrb[36].mxu0 }
 0x13f   :  { %v1805_v3 = vpop.f32.mrb[36].mxu1  ;;  %v1742_v5 = vpop.f32.mrb[37].mxu0 }
 0x140   :  { %v1427_v6 = vsel %vm1395_vm0, %v1333_v60, %v1411_v63  ;;  %vm1396_vm1 = vcmp.gt.f32.partialorder %v1336_v0, 0.0  ;;  %v1412_v8 = vmul.f32 0.2, %v1336_v0  ;;  %v1743_v9 = vadd.f32 %v1742_v5, %v1741_v2  ;;  %v1806_v10 = vpop.f32.mrb[37].mxu1  ;;  %v1744_v11 = vpop.f32.mrb[38].mxu0 }
 0x141   :  { %1443 = vst [vmem:[%s2466_s3] sm:$0xff] %v1427_v6  ;;  %v1807_v33 = vadd.f32 %v1806_v10, %v1805_v3  ;;  %v1808_v12 = vpop.f32.mrb[38].mxu1  ;;  %v1745_v13 = vpop.f32.mrb[39].mxu0 }
 0x142   :  { %v1428_v35 = vsel %vm1396_vm1, %v1336_v0, %v1412_v8  ;;  %v1244_v14 = vadd.f32 %v1743_v9, %v2371_v50  ;;  %v1746_v15 = vadd.f32 %v1745_v13, %v1744_v11  ;;  %v1809_v16 = vpop.f32.mrb[39].mxu1 }
 0x143   :  { %1444 = vst [vmem:[%s2466_s3 + $0x8] sm:$0xff] %v1428_v35  ;;  %v1810_v17 = vadd.f32 %v1809_v16, %v1808_v12 }
 0x144   :  { %v1341_v19 = vadd.f32 %v1807_v33, %v1244_v14  ;;  %v1247_v20 = vadd.f32 %v1746_v15, %v2373_v53 }
 0x146   :  { %vm1397_vm2 = vcmp.gt.f32.partialorder %v1341_v19, 0.0  ;;  %v1413_v23 = vmul.f32 0.2, %v1341_v19  ;;  %v1344_v24 = vadd.f32 %v1810_v17, %v1247_v20  ;;  %v1747_v26 = vpop.f32.mrb[40].mxu0 }
 0x147   :  { %v1811_v27 = vpop.f32.mrb[40].mxu1  ;;  %v1748_v28 = vpop.f32.mrb[41].mxu0 }
 0x148   :  { %v1429_v29 = vsel %vm1397_vm2, %v1341_v19, %v1413_v23  ;;  %vm1398_vm3 = vcmp.gt.f32.partialorder %v1344_v24, 0.0  ;;  %v1414_v30 = vmul.f32 0.2, %v1344_v24  ;;  %v1749_v50 = vadd.f32 %v1748_v28, %v1747_v26  ;;  %v1812_v31 = vpop.f32.mrb[41].mxu1  ;;  %v1750_v32 = vpop.f32.mrb[42].mxu0 }
 0x149   :  { %1445 = vst [vmem:[%s2466_s3 + $0x10] sm:$0xff] %v1429_v29  ;;  %v1813_v34 = vadd.f32 %v1812_v31, %v1811_v27  ;;  %v1814_v36 = vpop.f32.mrb[42].mxu1  ;;  %v1751_v37 = vpop.f32.mrb[43].mxu0 }
 0x14a   :  { %v1430_v53 = vsel %vm1398_vm3, %v1344_v24, %v1414_v30  ;;  %v1252_v38 = vadd.f32 %v1749_v50, %v2375_v4  ;;  %v1752_v39 = vadd.f32 %v1751_v37, %v1750_v32  ;;  %v1815_v41 = vpop.f32.mrb[43].mxu1 }
 0x14b   :  { %1446 = vst [vmem:[%s2466_s3 + $0x18] sm:$0xff] %v1430_v53  ;;  %v1816_v44 = vadd.f32 %v1815_v41, %v1814_v36 }
 0x14c   :  { %v1349_v46 = vadd.f32 %v1813_v34, %v1252_v38  ;;  %v1255_v47 = vadd.f32 %v1752_v39, %v2377_v7 }
 0x14e   :  { %vm1399_vm4 = vcmp.gt.f32.partialorder %v1349_v46, 0.0  ;;  %v1415_v48 = vmul.f32 0.2, %v1349_v46  ;;  %v1352_v49 = vadd.f32 %v1816_v44, %v1255_v47  ;;  %v1753_v51 = vpop.f32.mrb[44].mxu0 }
 0x14f   :  { %v1817_v52 = vpop.f32.mrb[44].mxu1  ;;  %v1754_v54 = vpop.f32.mrb[45].mxu0 }
 0x150   :  { %v1431_v55 = vsel %vm1399_vm4, %v1349_v46, %v1415_v48  ;;  %vm1400_vm5 = vcmp.gt.f32.partialorder %v1352_v49, 0.0  ;;  %v1416_v56 = vmul.f32 0.2, %v1352_v49  ;;  %v1755_v4 = vadd.f32 %v1754_v54, %v1753_v51  ;;  %v1818_v57 = vpop.f32.mrb[45].mxu1  ;;  %v1756_v58 = vpop.f32.mrb[46].mxu0 }
 0x151   :  { %1447 = vst [vmem:[%s2466_s3 + $0x20] sm:$0xff] %v1431_v55  ;;  %v1819_v59 = vadd.f32 %v1818_v57, %v1817_v52  ;;  %v1820_v60 = vpop.f32.mrb[46].mxu1  ;;  %v1757_v61 = vpop.f32.mrb[47].mxu0 }
 0x152   :  { %v1432_v7 = vsel %vm1400_vm5, %v1352_v49, %v1416_v56  ;;  %v1260_v63 = vadd.f32 %v1755_v4, %v2379_v22  ;;  %v1758_v0 = vadd.f32 %v1757_v61, %v1756_v58  ;;  %v1821_v2 = vpop.f32.mrb[47].mxu1 }
 0x153   :  { %1448 = vst [vmem:[%s2466_s3 + $0x28] sm:$0xff] %v1432_v7  ;;  %v1822_v3 = vadd.f32 %v1821_v2, %v1820_v60 }
 0x154   :  { %v1357_v5 = vadd.f32 %v1819_v59, %v1260_v63  ;;  %v1263_v6 = vadd.f32 %v1758_v0, %v2381_v25 }
 0x156   :  { %vm1401_vm6 = vcmp.gt.f32.partialorder %v1357_v5, 0.0  ;;  %v1417_v8 = vmul.f32 0.2, %v1357_v5  ;;  %v1360_v9 = vadd.f32 %v1822_v3, %v1263_v6  ;;  %v1759_v10 = vpop.f32.mrb[48].mxu0 }
 0x157   :  { %v1823_v11 = vpop.f32.mrb[48].mxu1  ;;  %v1760_v33 = vpop.f32.mrb[49].mxu0 }
 0x158   :  { %v1433_v12 = vsel %vm1401_vm6, %v1357_v5, %v1417_v8  ;;  %vm1402_vm7 = vcmp.gt.f32.partialorder %v1360_v9, 0.0  ;;  %v1418_v13 = vmul.f32 0.2, %v1360_v9  ;;  %v1761_v22 = vadd.f32 %v1760_v33, %v1759_v10  ;;  %v1824_v35 = vpop.f32.mrb[49].mxu1  ;;  %v1762_v14 = vpop.f32.mrb[50].mxu0 }
 0x159   :  { %1449 = vst [vmem:[%s2466_s3 + $0x30] sm:$0xff] %v1433_v12  ;;  %v1825_v15 = vadd.f32 %v1824_v35, %v1823_v11  ;;  %v1826_v16 = vpop.f32.mrb[50].mxu1  ;;  %v1763_v17 = vpop.f32.mrb[51].mxu0 }
 0x15a   :  { %v1434_v25 = vsel %vm1402_vm7, %v1360_v9, %v1418_v13  ;;  %v1268_v19 = vadd.f32 %v1761_v22, %v2383_v42  ;;  %v1764_v20 = vadd.f32 %v1763_v17, %v1762_v14  ;;  %v1827_v23 = vpop.f32.mrb[51].mxu1 }
 0x15b   :  { %1450 = vst [vmem:[%s2466_s3 + $0x38] sm:$0xff] %v1434_v25  ;;  %v1828_v24 = vadd.f32 %v1827_v23, %v1826_v16 }
 0x15c   :  { %v1365_v26 = vadd.f32 %v1825_v15, %v1268_v19  ;;  %v1271_v27 = vadd.f32 %v1764_v20, %v2385_v45 }
 0x15e   :  { %vm1403_vm8 = vcmp.gt.f32.partialorder %v1365_v26, 0.0  ;;  %v1419_v28 = vmul.f32 0.2, %v1365_v26  ;;  %v1368_v29 = vadd.f32 %v1828_v24, %v1271_v27  ;;  %v1765_v30 = vpop.f32.mrb[52].mxu0 }
 0x15f   :  { %v1829_v50 = vpop.f32.mrb[52].mxu1  ;;  %v1766_v31 = vpop.f32.mrb[53].mxu0 }
 0x160   :  { %v1435_v32 = vsel %vm1403_vm8, %v1365_v26, %v1419_v28  ;;  %vm1404_vm9 = vcmp.gt.f32.partialorder %v1368_v29, 0.0  ;;  %v1420_v34 = vmul.f32 0.2, %v1368_v29  ;;  %v1767_v42 = vadd.f32 %v1766_v31, %v1765_v30  ;;  %v1830_v36 = vpop.f32.mrb[53].mxu1  ;;  %v1768_v37 = vpop.f32.mrb[54].mxu0 }
 0x161   :  { %1451 = vst [vmem:[%s2466_s3 + $0x40] sm:$0xff] %v1435_v32  ;;  %v1831_v53 = vadd.f32 %v1830_v36, %v1829_v50  ;;  %v1832_v38 = vpop.f32.mrb[54].mxu1  ;;  %v1769_v39 = vpop.f32.mrb[55].mxu0 }
 0x162   :  { %v1436_v45 = vsel %vm1404_vm9, %v1368_v29, %v1420_v34  ;;  %v1276_v41 = vadd.f32 %v1767_v42, %v2387_v62  ;;  %v1770_v44 = vadd.f32 %v1769_v39, %v1768_v37  ;;  %v1833_v46 = vpop.f32.mrb[55].mxu1 }
 0x163   :  { %1452 = vst [vmem:[%s2466_s3 + $0x48] sm:$0xff] %v1436_v45  ;;  %v1834_v47 = vadd.f32 %v1833_v46, %v1832_v38 }
 0x164   :  { %v1373_v48 = vadd.f32 %v1831_v53, %v1276_v41  ;;  %v1279_v49 = vadd.f32 %v1770_v44, %v2389_v1 }
 0x166   :  { %vm1405_vm10 = vcmp.gt.f32.partialorder %v1373_v48, 0.0  ;;  %v1421_v51 = vmul.f32 0.2, %v1373_v48  ;;  %v1376_v52 = vadd.f32 %v1834_v47, %v1279_v49  ;;  %v1771_v54 = vpop.f32.mrb[56].mxu0 }
 0x167   :  { %v1835_v55 = vpop.f32.mrb[56].mxu1  ;;  %v1772_v56 = vpop.f32.mrb[57].mxu0 }
 0x168   :  { %v1437_v4 = vsel %vm1405_vm10, %v1373_v48, %v1421_v51  ;;  %vm1406_vm11 = vcmp.gt.f32.partialorder %v1376_v52, 0.0  ;;  %v1422_v57 = vmul.f32 0.2, %v1376_v52  ;;  %v1773_v62 = vadd.f32 %v1772_v56, %v1771_v54  ;;  %v1836_v58 = vpop.f32.mrb[57].mxu1  ;;  %v1774_v59 = vpop.f32.mrb[58].mxu0 }
 0x169   :  { %1453 = vst [vmem:[%s2466_s3 + $0x50] sm:$0xff] %v1437_v4  ;;  %v1837_v60 = vadd.f32 %v1836_v58, %v1835_v55  ;;  %v1838_v61 = vpop.f32.mrb[58].mxu1  ;;  %v1775_v7 = vpop.f32.mrb[59].mxu0 }
 0x16a   :  { %v1438_v1 = vsel %vm1406_vm11, %v1376_v52, %v1422_v57  ;;  %v1284_v63 = vadd.f32 %v1773_v62, %v2391_v18  ;;  %v1776_v0 = vadd.f32 %v1775_v7, %v1774_v59  ;;  %v1839_v2 = vpop.f32.mrb[59].mxu1 }
 0x16b   :  { %1454 = vst [vmem:[%s2466_s3 + $0x58] sm:$0xff] %v1438_v1  ;;  %v1840_v3 = vadd.f32 %v1839_v2, %v1838_v61 }
 0x16c   :  { %v1381_v5 = vadd.f32 %v1837_v60, %v1284_v63  ;;  %v1287_v6 = vadd.f32 %v1776_v0, %v2393_v21 }
 0x16e   :  { %vm1407_vm12 = vcmp.gt.f32.partialorder %v1381_v5, 0.0  ;;  %v1423_v8 = vmul.f32 0.2, %v1381_v5  ;;  %v1384_v9 = vadd.f32 %v1840_v3, %v1287_v6  ;;  %v1777_v10 = vpop.f32.mrb[60].mxu0 }
 0x16f   :  { %v1841_v11 = vpop.f32.mrb[60].mxu1  ;;  %v1778_v33 = vpop.f32.mrb[61].mxu0 }
 0x170   :  { %v1439_v12 = vsel %vm1407_vm12, %v1381_v5, %v1423_v8  ;;  %vm1408_vm13 = vcmp.gt.f32.partialorder %v1384_v9, 0.0  ;;  %v1424_v13 = vmul.f32 0.2, %v1384_v9  ;;  %v1779_v18 = vadd.f32 %v1778_v33, %v1777_v10  ;;  %v1842_v22 = vpop.f32.mrb[61].mxu1  ;;  %v1780_v35 = vpop.f32.mrb[62].mxu0 }
 0x171   :  { %1455 = vst [vmem:[%s2466_s3 + $0x60] sm:$0xff] %v1439_v12  ;;  %v1843_v14 = vadd.f32 %v1842_v22, %v1841_v11  ;;  %v1844_v15 = vpop.f32.mrb[62].mxu1  ;;  %v1781_v16 = vpop.f32.mrb[63].mxu0 }
 0x172   :  { %v1440_v21 = vsel %vm1408_vm13, %v1384_v9, %v1424_v13  ;;  %v1292_v17 = vadd.f32 %v1779_v18, %v2395_v40  ;;  %v1782_v25 = vadd.f32 %v1781_v16, %v1780_v35  ;;  %v1845_v19 = vpop.f32.mrb[63].mxu1 }
 0x173   :  { %1456 = vst [vmem:[%s2466_s3 + $0x68] sm:$0xff] %v1440_v21  ;;  %v1846_v20 = vadd.f32 %v1845_v19, %v1844_v15 }
 0x174   :  { %v1389_v23 = vadd.f32 %v1843_v14, %v1292_v17  ;;  %v1295_v24 = vadd.f32 %v1782_v25, %v2397_v43 }
 0x176   :  { %vm1409_vm14 = vcmp.gt.f32.partialorder %v1389_v23, 0.0  ;;  %v1425_v26 = vmul.f32 0.2, %v1389_v23  ;;  %v1392_v27 = vadd.f32 %v1846_v20, %v1295_v24 }
 0x178   :  { %v1441_v28 = vsel %vm1409_vm14, %v1389_v23, %v1425_v26  ;;  %vm1410_vm15 = vcmp.gt.f32.partialorder %v1392_v27, 0.0  ;;  %v1426_v29 = vmul.f32 0.2, %v1392_v27 }
 0x179   :  { %1457 = vst [vmem:[%s2466_s3 + $0x70] sm:$0xff] %v1441_v28 }
 0x17a   :  { %v1442_v40 = vsel %vm1410_vm15, %v1392_v27, %v1426_v29 }
 0x17b   :  { %1458 = vst [vmem:[%s2466_s3 + $0x78] sm:$0xff] %v1442_v40 }

</bundles_post_ra>
